<compile_context>
chip_gen: v7x
topology: tpu7x:2x2x1
jax: 0.10.0
libtpu: 0.0.40
codegen_flags: <defaults>
</compile_context>

<pallas_src>
import functools

import jax
import jax.numpy as jnp
from jax.experimental import pallas as pl
from jax.experimental.pallas import tpu as pltpu


def lcrnn_kernel(x_ref, g_ref, wx_ref, w1_ref, w2_ref, watt_ref,
                 out_ref,
                 xp_ref, slab_ref, pd_ref,
                 *, chunk_len, batch, hidden_size, temp):
    H = hidden_size
    B = batch
    f32 = jnp.float32
    inv_temp = 1.0 / temp

    # ---- first chunk: zero the carried recurrent state.
    # slab lanes: [a1 (0:H) | b1 (H:2H) | next_a_00 (2H:3H) | next_a_10 (3H:4H)]
    @pl.when(pl.program_id(0) == 0)
    def _init():
        slab_ref[...] = jnp.zeros_like(slab_ref)
        pd_ref[...] = jnp.zeros_like(pd_ref)

    # ---- prologue: X-only parts of all six cell projections for the whole
    # chunk in one MXU call.  xp columns: [a00 | a10 | b11 | b01 | b00 | b10].
    xp_ref[...] = jnp.dot(x_ref[...], wx_ref[...], preferred_element_type=f32)

    zH = jnp.zeros((B, H), f32)

    slab0 = slab_ref[...]
    a1 = slab0[:, 0:H]          # value carries within the chunk
    b1 = slab0[:, H:2 * H]
    pd = pd_ref[...]            # prev_depth, integer-valued float (B, 1)

    # Trace-time unrolled recurrence over the chunk (chunk_len is static and
    # small; the grid handles the rest of the sequence).
    for t in range(chunk_len):
        r0 = t * B
        xp = xp_ref[r0:r0 + B, :]                  # (B, 6H) X-only partials
        g = g_ref[r0:r0 + B, :]                    # (B, 4)  gumbel noise

        pdH = jnp.broadcast_to(pd, (B, H))
        eq0 = pdH == 0.0
        gt0 = pdH > 0.0
        eq1 = pdH == 1.0
        gt1 = pdH > 1.0
        ge1 = pdH >= 1.0
        gt2 = pdH > 2.0

        # stage 1: one fused matmul from the persistent LHS slab for
        # [nofork_nojoin_a | fork_nojoin_a | fork_join_b | nofork_join_b].
        # (a00/a10 lanes of the slab are stale here but their w1 rows are 0.)
        y1 = xp[:, 0:4 * H] + jnp.dot(slab_ref[...], w1_ref[...],
                                      preferred_element_type=f32)
        nnj_a = y1[:, 0:H]
        fnj_a = y1[:, H:2 * H]          # X-only (b0 == 0): w1 column is zero
        fj_b = y1[:, 2 * H:3 * H]
        nfj_b = y1[:, 3 * H:4 * H]

        a00 = jnp.where(eq1, nnj_a, jnp.where(gt1, a1, zH))
        a10 = jnp.where(eq0, fnj_a, jnp.where(gt0, a1, zH))
        a11 = jnp.where(ge1, a1, zH)               # fork_join_a == prev a1
        a01 = jnp.where(gt2, a1, zH)               # nofork_join_a == prev a0 == 0

        slab_ref[:, 2 * H:3 * H] = a00
        slab_ref[:, 3 * H:4 * H] = a10

        # stage 2: one fused matmul for [nofork_nojoin_b | fork_nojoin_b]
        # (b1 lanes of the slab have zero w2 rows).
        y2 = xp[:, 4 * H:6 * H] + jnp.dot(slab_ref[...], w2_ref[...],
                                          preferred_element_type=f32)
        nnj_b = y2[:, 0:H]
        fnj_b = y2[:, H:2 * H]

        b00 = jnp.where(eq1, nnj_b, jnp.where(gt1, b1, zH))
        b11 = jnp.where(eq1, fj_b, jnp.where(gt1, b1, zH))
        b10 = jnp.where(eq0, fnj_b, jnp.where(gt0, b1, zH))
        b01 = jnp.where(gt2, b1, zH)

        # attention over the (ab_10, ab_11) half of next_state_flat; the
        # all-zero depth-0 rows of w_att were dropped at trace time.
        att_in = jnp.concatenate([a10, b10, a11, b11], axis=1)        # (B, 4H)
        zs = jax.nn.sigmoid(jnp.dot(att_in, watt_ref[...],
                                    preferred_element_type=f32))      # (B, 4)
        # RelaxedOneHotCategorical(temp, softmax(zs)).sample() with the
        # precomputed gumbels g; the log-softmax shift cancels in the softmax.
        sample = jax.nn.softmax((zs + g) * inv_temp, axis=1)

        # depth-validity mask and L2-normalized selection.
        m0 = (pd != 0.0).astype(f32)
        m1 = (pd != 1.0).astype(f32)
        mask = jnp.concatenate([m0, m0 * m1, m1, m0], axis=1)         # (B, 4)
        masked = mask * sample
        sumsq = jnp.sum(masked * masked, axis=1, keepdims=True)
        # x / max(||x||, 1e-12)  ==  x * rsqrt(max(||x||^2, 1e-24))
        sel = masked * jax.lax.rsqrt(jnp.maximum(sumsq, 1e-24))

        s0 = sel[:, 0:1]; s1 = sel[:, 1:2]; s2 = sel[:, 2:3]; s3 = sel[:, 3:4]
        s0h = jnp.broadcast_to(s0, (B, H))
        s1h = jnp.broadcast_to(s1, (B, H))
        s2h = jnp.broadcast_to(s2, (B, H))
        s3h = jnp.broadcast_to(s3, (B, H))

        new_a1 = s0h * a00 + s1h * a01 + s2h * a10 + s3h * a11
        new_b1 = s0h * b00 + s1h * b01 + s2h * b10 + s3h * b11

        # selection[:, k].long() truncates toward zero; sel >= 0 so floor.
        new_d = (jnp.floor(s0) * pd + jnp.floor(s1) * (pd - 1.0)
                 + jnp.floor(s2) * (pd + 1.0) + jnp.floor(s3) * pd)
        fj = jnp.concatenate([s2 + s3, s1 + s3], axis=1)              # (B, 2)

        # per-step output row (lane-dense padded buffer): [a1 | b1 | f j | pad]
        out_ref[r0:r0 + B, 0:H] = new_a1
        out_ref[r0:r0 + B, H:2 * H] = new_b1
        out_ref[r0:r0 + B, 2 * H:2 * H + 2] = fj

        # carry state: slab lanes for the next step's matmuls + value carries.
        slab_ref[:, 0:H] = new_a1
        slab_ref[:, H:2 * H] = new_b1
        a1, b1, pd = new_a1, new_b1, new_d

    pd_ref[...] = pd


def _fuse_weights(params, embed_size, hidden_size):
    """Build fused block-weight matrices at trace time (weights are (in, out))."""
    (w_a00, w_a10, w_b00, w_b11, w_b10, w_b01, w_att) = params
    E, H = embed_size, hidden_size

    # X-block of every projection, fused column-wise (E, 6H):
    # cols [a00 | a10 | b11 | b01 | b00 | b10]
    wx = jnp.concatenate(
        [w_a00[:E], w_a10[:E], w_b11[:E], w_b01[:E], w_b00[:E], w_b10[:E]],
        axis=1).astype(jnp.float32)

    # stage-1 state block (4H, 4H); LHS slab rows [a1 | b1 | a00 | a10],
    # cols [nofork_nojoin_a | fork_nojoin_a | fork_join_b | nofork_join_b].
    # Depth-0 (b0) inputs are identically zero -> their rows are dropped;
    # fork_nojoin_a has no live state input -> its column stays zero.
    w1 = jnp.zeros((4 * H, 4 * H), jnp.float32)
    w1 = w1.at[0:H, 0:H].set(w_a00[E + H:E + 2 * H])          # a1 -> nnj_a
    w1 = w1.at[H:2 * H, 2 * H:3 * H].set(w_b11[E:E + H])      # b1 -> fj_b
    w1 = w1.at[0:H, 3 * H:4 * H].set(w_b01[E + H:E + 2 * H])  # a1 -> nfj_b

    # stage-2 state block (4H, 2H); cols [nofork_nojoin_b | fork_nojoin_b]
    w2 = jnp.zeros((4 * H, 2 * H), jnp.float32)
    w2 = w2.at[0:H, 0:H].set(w_b00[E:E + H])                  # a1   -> nnj_b
    w2 = w2.at[2 * H:3 * H, 0:H].set(w_b00[E + H:E + 2 * H])  # a_00 -> nnj_b
    w2 = w2.at[3 * H:4 * H, H:2 * H].set(w_b10[E:E + H])      # a_10 -> fnj_b

    # attention: keep only rows that multiply non-zero state slots
    # (full input is [0(2H), a10, b10, 0(2H), a11, b11]).
    watt = jnp.concatenate([w_att[2 * H:4 * H], w_att[6 * H:8 * H]],
                           axis=0).astype(jnp.float32)
    return wx, w1, w2, watt


def lcrnn_forward(X, gumbel, params, hidden_size, temp=1.0, time_chunk=8):
    """X: (seq, B, E); gumbel: (seq, B, 4); params: 7 weight matrices (in, out)."""
    seq, B, E = X.shape
    H = hidden_size
    out_width = 2 * H + 2
    out_w_pad = max(128, ((out_width + 127) // 128) * 128)   # lane-dense output

    Tc = int(min(time_chunk, seq))
    n_chunks = -(-seq // Tc)
    seq_pad = n_chunks * Tc
    assert (Tc * B) % 8 == 0, "chunk rows (Tc*B) must be a multiple of 8 sublanes"

    if seq_pad != seq:
        # pad the time axis; padded steps produce garbage rows we slice off.
        X = jnp.concatenate(
            [X, jnp.zeros((seq_pad - seq, B, E), X.dtype)], axis=0)
        gumbel = jnp.concatenate(
            [gumbel, jnp.zeros((seq_pad - seq, B, 4), gumbel.dtype)], axis=0)

    wx, w1, w2, watt = _fuse_weights(params, E, H)
    x2 = X.reshape(seq_pad * B, E).astype(jnp.float32)
    g2 = gumbel.reshape(seq_pad * B, 4).astype(jnp.float32)

    kernel = functools.partial(lcrnn_kernel, chunk_len=Tc, batch=B,
                               hidden_size=H, temp=float(temp))

    grid_spec = pltpu.PrefetchScalarGridSpec(
        num_scalar_prefetch=0,
        grid=(n_chunks,),                     # sequential time chunks
        in_specs=[
            pl.BlockSpec((Tc * B, E), lambda i: (i, 0)),
            pl.BlockSpec((Tc * B, 4), lambda i: (i, 0)),
            pl.BlockSpec((E, 6 * H), lambda i: (0, 0)),
            pl.BlockSpec((4 * H, 4 * H), lambda i: (0, 0)),
            pl.BlockSpec((4 * H, 2 * H), lambda i: (0, 0)),
            pl.BlockSpec((4 * H, 4), lambda i: (0, 0)),
        ],
        out_specs=pl.BlockSpec((Tc * B, out_w_pad), lambda i: (i, 0)),
        scratch_shapes=[
            pltpu.VMEM((Tc * B, 6 * H), jnp.float32),   # per-chunk X partials
            pltpu.VMEM((B, 4 * H), jnp.float32),        # persistent LHS slab
            pltpu.VMEM((B, 1), jnp.float32),            # prev_depth carry
        ],
    )

    out2 = pl.pallas_call(
        kernel,
        out_shape=jax.ShapeDtypeStruct((seq_pad * B, out_w_pad), jnp.float32),
        grid_spec=grid_spec,
        compiler_params=pltpu.CompilerParams(
            dimension_semantics=("arbitrary",)),        # chunks carry state
    )(x2, g2, wx, w1, w2, watt)

    out = out2.reshape(seq_pad, B, out_w_pad)[:seq, :, :out_width]

    # Last-state outputs derived from the final row: depth-0 slots are zero,
    # slot 1 / f / j are exactly what the last step emitted.
    zero_slot = jnp.zeros((B, H), jnp.float32)
    last_a = jnp.stack([zero_slot, out[-1, :, 0:H]], axis=1)
    last_b = jnp.stack([zero_slot, out[-1, :, H:2 * H]], axis=1)
    f = out[-1, :, 2 * H:2 * H + 1]
    j = out[-1, :, 2 * H + 1:2 * H + 2]
    return out, last_a, last_b, f, j


if __name__ == "__main__":
    # LcRnn(input_size=32, hidden_size=64)  ->  cell hidden H = 64 // 2 = 32
    seq, B, E, model_hidden = 8, 8, 32, 64
    H = model_hidden // 2

    key = jax.random.PRNGKey(0)
    ks = jax.random.split(key, 9)

    def linw(k, fan_in, out):
        # nn.Linear-style init: U(-1/sqrt(fan_in), 1/sqrt(fan_in))
        bound = 1.0 / (fan_in ** 0.5)
        return jax.random.uniform(k, (fan_in, out), jnp.float32, -bound, bound)

    w_a00 = linw(ks[0], E + 2 * H, H)
    w_a10 = linw(ks[1], E + H, H)
    w_b00 = linw(ks[2], E + 2 * H, H)
    w_b11 = linw(ks[3], E + H, H)
    w_b10 = linw(ks[4], E + H, H)
    w_b01 = linw(ks[5], E + 2 * H, H)
    w_att = linw(ks[6], 8 * H, 4)
    params = (w_a00, w_a10, w_b00, w_b11, w_b10, w_b01, w_att)

    X = jax.random.normal(ks[7], (seq, B, E), jnp.float32)
    # deterministic replacement for RelaxedOneHotCategorical's randomness
    gumbel = jax.random.gumbel(ks[8], (seq, B, 4), jnp.float32)

    # time_chunk=4 -> two grid chunks, exercising the cross-chunk state carry.
    fwd = jax.jit(functools.partial(lcrnn_forward, hidden_size=H, temp=1.0,
                                    time_chunk=4))
    outs = fwd(X, gumbel, params)
    jax.block_until_ready(outs)

    layer_output, last_a, last_b, f, j = outs
    assert layer_output.shape == (seq, B, 2 * H + 2)
    assert last_a.shape == (B, 2, H) and last_b.shape == (B, 2, H)
    assert f.shape == (B, 1) and j.shape == (B, 1)
    assert bool(jnp.all(jnp.isfinite(layer_output)))
    print("KERNEL_OK")
</pallas_src>

<mosaic_0001>
module attributes {stable_mosaic.version = 11 : i64} {
  func.func @lcrnn_kernel(%arg0: i32, %arg1: memref<32x32xf32, #tpu.memory_space<vmem>>, %arg2: memref<32x4xf32, #tpu.memory_space<vmem>>, %arg3: memref<32x192xf32, #tpu.memory_space<vmem>>, %arg4: memref<128x128xf32, #tpu.memory_space<vmem>>, %arg5: memref<128x64xf32, #tpu.memory_space<vmem>>, %arg6: memref<128x4xf32, #tpu.memory_space<vmem>>, %arg7: memref<32x128xf32, #tpu.memory_space<vmem>>, %arg8: memref<32x192xf32, #tpu.memory_space<vmem>>, %arg9: memref<8x128xf32, #tpu.memory_space<vmem>>, %arg10: memref<8x1xf32, #tpu.memory_space<vmem>>) attributes {dimension_semantics = [#tpu.dimension_semantics<arbitrary>], iteration_bounds = array<i64: 2>, scalar_prefetch = 0 : i64, scratch_operands = 3 : i64, tpu.core_type = #tpu.core_type<tc>, window_params = [{transform_indices = @transform_0, window_bounds = array<i64: 32, 32>}, {transform_indices = @transform_1, window_bounds = array<i64: 32, 4>}, {pipeline_mode = #tpu.pipeline_mode<synchronous>, transform_indices = @transform_2, window_bounds = array<i64: 32, 192>}, {pipeline_mode = #tpu.pipeline_mode<synchronous>, transform_indices = @transform_3, window_bounds = array<i64: 128, 128>}, {pipeline_mode = #tpu.pipeline_mode<synchronous>, transform_indices = @transform_4, window_bounds = array<i64: 128, 64>}, {pipeline_mode = #tpu.pipeline_mode<synchronous>, transform_indices = @transform_5, window_bounds = array<i64: 128, 4>}, {transform_indices = @transform_6, window_bounds = array<i64: 32, 128>}]} {
    %c0_i32 = arith.constant 0 : i32
    %0 = arith.cmpi eq, %arg0, %c0_i32 : i32
    %1 = arith.extui %0 : i1 to i32
    %c0_i32_0 = arith.constant 0 : i32
    %2 = arith.cmpi ne, %1, %c0_i32_0 : i32
    scf.if %2 {
      %cst_199 = arith.constant 0.000000e+00 : f32
      %557 = vector.broadcast %cst_199 : f32 to vector<8x128xf32>
      %c0_200 = arith.constant 0 : index
      %c0_201 = arith.constant 0 : index
      %558 = vector.load %arg9[%c0_200, %c0_201] : memref<8x128xf32, #tpu.memory_space<vmem>>, vector<8x128xf32>
      tpu.vector_store %arg9[%c0_200, %c0_201], %557 {strides = array<i32>} : memref<8x128xf32, #tpu.memory_space<vmem>>, vector<8x128xf32>,
      %cst_202 = arith.constant 0.000000e+00 : f32
      %559 = vector.broadcast %cst_202 : f32 to vector<8x1xf32>
      %c0_203 = arith.constant 0 : index
      %c0_204 = arith.constant 0 : index
      %560 = vector.load %arg10[%c0_203, %c0_204] : memref<8x1xf32, #tpu.memory_space<vmem>>, vector<8x1xf32>
      tpu.vector_store %arg10[%c0_203, %c0_204], %559 {strides = array<i32>} : memref<8x1xf32, #tpu.memory_space<vmem>>, vector<8x1xf32>,
    } else {
    }
    %c0 = arith.constant 0 : index
    %c0_1 = arith.constant 0 : index
    %3 = vector.load %arg1[%c0, %c0_1] : memref<32x32xf32, #tpu.memory_space<vmem>>, vector<32x32xf32>
    %c0_2 = arith.constant 0 : index
    %c0_3 = arith.constant 0 : index
    %4 = vector.load %arg3[%c0_2, %c0_3] : memref<32x192xf32, #tpu.memory_space<vmem>>, vector<32x192xf32>
    %cst = arith.constant dense<0.000000e+00> : vector<32x192xf32>
    %5 = tpu.matmul %3, %4, %cst {dimension_numbers = #tpu.dot_dimension_numbers<[1], [0], [0], [1], [0, 0, 1, 1], [], []>} : vector<32x32xf32>, vector<32x192xf32>, vector<32x192xf32> -> vector<32x192xf32>
    %c0_4 = arith.constant 0 : index
    %c0_5 = arith.constant 0 : index
    %6 = vector.load %arg8[%c0_4, %c0_5] : memref<32x192xf32, #tpu.memory_space<vmem>>, vector<32x192xf32>
    tpu.vector_store %arg8[%c0_4, %c0_5], %5 {strides = array<i32>} : memref<32x192xf32, #tpu.memory_space<vmem>>, vector<32x192xf32>,
    %cst_6 = arith.constant 0.000000e+00 : f32
    %7 = vector.broadcast %cst_6 : f32 to vector<8x32xf32>
    %c0_7 = arith.constant 0 : index
    %c0_8 = arith.constant 0 : index
    %8 = vector.load %arg9[%c0_7, %c0_8] : memref<8x128xf32, #tpu.memory_space<vmem>>, vector<8x128xf32>
    %9 = vector.extract_strided_slice %8 {offsets = [0, 0], sizes = [8, 32], strides = [1, 1]} : vector<8x128xf32> to vector<8x32xf32>
    %10 = vector.extract_strided_slice %8 {offsets = [0, 32], sizes = [8, 32], strides = [1, 1]} : vector<8x128xf32> to vector<8x32xf32>
    %c0_9 = arith.constant 0 : index
    %c0_10 = arith.constant 0 : index
    %11 = vector.load %arg10[%c0_9, %c0_10] : memref<8x1xf32, #tpu.memory_space<vmem>>, vector<8x1xf32>
    %c0_11 = arith.constant 0 : index
    %c0_12 = arith.constant 0 : index
    %12 = vector.load %arg8[%c0_11, %c0_12] : memref<32x192xf32, #tpu.memory_space<vmem>>, vector<8x192xf32>
    %c0_13 = arith.constant 0 : index
    %c0_14 = arith.constant 0 : index
    %13 = vector.load %arg2[%c0_13, %c0_14] : memref<32x4xf32, #tpu.memory_space<vmem>>, vector<8x4xf32>
    %14 = vector.shape_cast %11 : vector<8x1xf32> to vector<8x1xf32>
    %15 = vector.broadcast %14 : vector<8x1xf32> to vector<8x32xf32>
    %cst_15 = arith.constant 0.000000e+00 : f32
    %16 = vector.broadcast %cst_15 : f32 to vector<8x32xf32>
    %17 = arith.cmpf oeq, %15, %16 : vector<8x32xf32>
    %cst_16 = arith.constant 0.000000e+00 : f32
    %18 = vector.broadcast %cst_16 : f32 to vector<8x32xf32>
    %19 = arith.cmpf ogt, %15, %18 : vector<8x32xf32>
    %cst_17 = arith.constant 1.000000e+00 : f32
    %20 = vector.broadcast %cst_17 : f32 to vector<8x32xf32>
    %21 = arith.cmpf oeq, %15, %20 : vector<8x32xf32>
    %cst_18 = arith.constant 1.000000e+00 : f32
    %22 = vector.broadcast %cst_18 : f32 to vector<8x32xf32>
    %23 = arith.cmpf ogt, %15, %22 : vector<8x32xf32>
    %cst_19 = arith.constant 1.000000e+00 : f32
    %24 = vector.broadcast %cst_19 : f32 to vector<8x32xf32>
    %25 = arith.cmpf oge, %15, %24 : vector<8x32xf32>
    %cst_20 = arith.constant 2.000000e+00 : f32
    %26 = vector.broadcast %cst_20 : f32 to vector<8x32xf32>
    %27 = arith.cmpf ogt, %15, %26 : vector<8x32xf32>
    %28 = vector.extract_strided_slice %12 {offsets = [0, 0], sizes = [8, 128], strides = [1, 1]} : vector<8x192xf32> to vector<8x128xf32>
    %c0_21 = arith.constant 0 : index
    %c0_22 = arith.constant 0 : index
    %29 = vector.load %arg9[%c0_21, %c0_22] : memref<8x128xf32, #tpu.memory_space<vmem>>, vector<8x128xf32>
    %c0_23 = arith.constant 0 : index
    %c0_24 = arith.constant 0 : index
    %30 = vector.load %arg4[%c0_23, %c0_24] : memref<128x128xf32, #tpu.memory_space<vmem>>, vector<128x128xf32>
    %cst_25 = arith.constant dense<0.000000e+00> : vector<8x128xf32>
    %31 = tpu.matmul %29, %30, %cst_25 {dimension_numbers = #tpu.dot_dimension_numbers<[1], [0], [0], [1], [0, 0, 1, 1], [], []>} : vector<8x128xf32>, vector<128x128xf32>, vector<8x128xf32> -> vector<8x128xf32>
    %32 = arith.addf %28, %31 : vector<8x128xf32>
    %33 = vector.extract_strided_slice %32 {offsets = [0, 0], sizes = [8, 32], strides = [1, 1]} : vector<8x128xf32> to vector<8x32xf32>
    %34 = vector.extract_strided_slice %32 {offsets = [0, 32], sizes = [8, 32], strides = [1, 1]} : vector<8x128xf32> to vector<8x32xf32>
    %35 = vector.extract_strided_slice %32 {offsets = [0, 64], sizes = [8, 32], strides = [1, 1]} : vector<8x128xf32> to vector<8x32xf32>
    %36 = arith.select %23, %9, %7 : vector<8x32xi1>, vector<8x32xf32>
    %37 = arith.select %21, %33, %36 : vector<8x32xi1>, vector<8x32xf32>
    %38 = arith.select %19, %9, %7 : vector<8x32xi1>, vector<8x32xf32>
    %39 = arith.select %17, %34, %38 : vector<8x32xi1>, vector<8x32xf32>
    %40 = arith.select %25, %9, %7 : vector<8x32xi1>, vector<8x32xf32>
    %41 = arith.select %27, %9, %7 : vector<8x32xi1>, vector<8x32xf32>
    %c0_26 = arith.constant 0 : index
    %c64 = arith.constant 64 : index
    %42 = vector.load %arg9[%c0_26, %c64] : memref<8x128xf32, #tpu.memory_space<vmem>>, vector<8x32xf32>
    tpu.vector_store %arg9[%c0_26, %c64], %37 {strides = array<i32>} : memref<8x128xf32, #tpu.memory_space<vmem>>, vector<8x32xf32>,
    %c0_27 = arith.constant 0 : index
    %c96 = arith.constant 96 : index
    %43 = vector.load %arg9[%c0_27, %c96] : memref<8x128xf32, #tpu.memory_space<vmem>>, vector<8x32xf32>
    tpu.vector_store %arg9[%c0_27, %c96], %39 {strides = array<i32>} : memref<8x128xf32, #tpu.memory_space<vmem>>, vector<8x32xf32>,
    %44 = vector.extract_strided_slice %12 {offsets = [0, 128], sizes = [8, 64], strides = [1, 1]} : vector<8x192xf32> to vector<8x64xf32>
    %c0_28 = arith.constant 0 : index
    %c0_29 = arith.constant 0 : index
    %45 = vector.load %arg9[%c0_28, %c0_29] : memref<8x128xf32, #tpu.memory_space<vmem>>, vector<8x128xf32>
    %c0_30 = arith.constant 0 : index
    %c0_31 = arith.constant 0 : index
    %46 = vector.load %arg5[%c0_30, %c0_31] : memref<128x64xf32, #tpu.memory_space<vmem>>, vector<128x64xf32>
    %cst_32 = arith.constant dense<0.000000e+00> : vector<8x64xf32>
    %47 = tpu.matmul %45, %46, %cst_32 {dimension_numbers = #tpu.dot_dimension_numbers<[1], [0], [0], [1], [0, 0, 1, 1], [], []>} : vector<8x128xf32>, vector<128x64xf32>, vector<8x64xf32> -> vector<8x64xf32>
    %48 = arith.addf %44, %47 : vector<8x64xf32>
    %49 = vector.extract_strided_slice %48 {offsets = [0, 0], sizes = [8, 32], strides = [1, 1]} : vector<8x64xf32> to vector<8x32xf32>
    %50 = vector.extract_strided_slice %48 {offsets = [0, 32], sizes = [8, 32], strides = [1, 1]} : vector<8x64xf32> to vector<8x32xf32>
    %51 = arith.select %23, %10, %7 : vector<8x32xi1>, vector<8x32xf32>
    %52 = arith.select %21, %49, %51 : vector<8x32xi1>, vector<8x32xf32>
    %53 = arith.select %23, %10, %7 : vector<8x32xi1>, vector<8x32xf32>
    %54 = arith.select %21, %35, %53 : vector<8x32xi1>, vector<8x32xf32>
    %55 = arith.select %19, %10, %7 : vector<8x32xi1>, vector<8x32xf32>
    %56 = arith.select %17, %50, %55 : vector<8x32xi1>, vector<8x32xf32>
    %57 = arith.select %27, %10, %7 : vector<8x32xi1>, vector<8x32xf32>
    %58 = tpu.concatenate %39, %56, %40, %54 in 1 : vector<8x32xf32>, vector<8x32xf32>, vector<8x32xf32>, vector<8x32xf32> -> vector<8x128xf32>
    %c0_33 = arith.constant 0 : index
    %c0_34 = arith.constant 0 : index
    %59 = vector.load %arg6[%c0_33, %c0_34] : memref<128x4xf32, #tpu.memory_space<vmem>>, vector<128x4xf32>
    %cst_35 = arith.constant dense<0.000000e+00> : vector<8x4xf32>
    %60 = tpu.matmul %58, %59, %cst_35 {dimension_numbers = #tpu.dot_dimension_numbers<[1], [0], [0], [1], [0, 0, 1, 1], [], []>} : vector<8x128xf32>, vector<128x4xf32>, vector<8x4xf32> -> vector<8x4xf32>
    %61 = arith.negf %60 : vector<8x4xf32>
    %62 = math.exp %61 : vector<8x4xf32>
    %cst_36 = arith.constant 1.000000e+00 : f32
    %63 = vector.broadcast %cst_36 : f32 to vector<8x4xf32>
    %64 = arith.addf %63, %62 : vector<8x4xf32>
    %65 = arith.divf %63, %64 : vector<8x4xf32>
    %66 = arith.addf %65, %13 : vector<8x4xf32>
    %cst_37 = arith.constant 1.000000e+00 : f32
    %67 = vector.broadcast %cst_37 : f32 to vector<8x4xf32>
    %68 = arith.mulf %66, %67 : vector<8x4xf32>
    %cst_38 = arith.constant dense<0xFF800000> : vector<8xf32>
    %69 = vector.multi_reduction <maximumf>, %68, %cst_38 [1] : vector<8x4xf32> to vector<8xf32>
    %cst_39 = arith.constant 0xFF800000 : f32
    %70 = vector.broadcast %cst_39 : f32 to vector<8xf32>
    %71 = arith.maximumf %70, %69 : vector<8xf32>
    %72 = vector.shape_cast %71 : vector<8xf32> to vector<8x1xf32>
    %73 = vector.broadcast %72 : vector<8x1xf32> to vector<8x4xf32>
    %74 = arith.subf %68, %73 : vector<8x4xf32>
    %75 = math.exp %74 : vector<8x4xf32>
    %cst_40 = arith.constant dense<0.000000e+00> : vector<8xf32>
    %76 = vector.multi_reduction <add>, %75, %cst_40 [1] : vector<8x4xf32> to vector<8xf32>
    %77 = vector.shape_cast %76 : vector<8xf32> to vector<8x1xf32>
    %78 = vector.broadcast %77 : vector<8x1xf32> to vector<8x4xf32>
    %79 = arith.divf %75, %78 : vector<8x4xf32>
    %cst_41 = arith.constant 0.000000e+00 : f32
    %80 = vector.broadcast %cst_41 : f32 to vector<8x1xf32>
    %81 = arith.cmpf one, %11, %80 : vector<8x1xf32>
    %82 = arith.extui %81 : vector<8x1xi1> to vector<8x1xi32>
    %83 = arith.sitofp %82 : vector<8x1xi32> to vector<8x1xf32>
    %cst_42 = arith.constant 1.000000e+00 : f32
    %84 = vector.broadcast %cst_42 : f32 to vector<8x1xf32>
    %85 = arith.cmpf one, %11, %84 : vector<8x1xf32>
    %86 = arith.extui %85 : vector<8x1xi1> to vector<8x1xi32>
    %87 = arith.sitofp %86 : vector<8x1xi32> to vector<8x1xf32>
    %88 = arith.mulf %83, %87 : vector<8x1xf32>
    %89 = tpu.concatenate %83, %88, %87, %83 in 1 : vector<8x1xf32>, vector<8x1xf32>, vector<8x1xf32>, vector<8x1xf32> -> vector<8x4xf32>
    %90 = arith.mulf %89, %79 : vector<8x4xf32>
    %91 = arith.mulf %90, %90 : vector<8x4xf32>
    %cst_43 = arith.constant dense<0.000000e+00> : vector<8xf32>
    %92 = vector.multi_reduction <add>, %91, %cst_43 [1] : vector<8x4xf32> to vector<8xf32>
    %93 = vector.shape_cast %92 : vector<8xf32> to vector<8x1xf32>
    %cst_44 = arith.constant 1.000000e-24 : f32
    %94 = vector.broadcast %cst_44 : f32 to vector<8x1xf32>
    %95 = arith.maximumf %93, %94 : vector<8x1xf32>
    %96 = math.rsqrt %95 : vector<8x1xf32>
    %97 = vector.broadcast %96 : vector<8x1xf32> to vector<8x4xf32>
    %98 = arith.mulf %90, %97 : vector<8x4xf32>
    %99 = vector.extract_strided_slice %98 {offsets = [0, 0], sizes = [8, 1], strides = [1, 1]} : vector<8x4xf32> to vector<8x1xf32>
    %100 = vector.extract_strided_slice %98 {offsets = [0, 1], sizes = [8, 1], strides = [1, 1]} : vector<8x4xf32> to vector<8x1xf32>
    %101 = vector.extract_strided_slice %98 {offsets = [0, 2], sizes = [8, 1], strides = [1, 1]} : vector<8x4xf32> to vector<8x1xf32>
    %102 = vector.extract_strided_slice %98 {offsets = [0, 3], sizes = [8, 1], strides = [1, 1]} : vector<8x4xf32> to vector<8x1xf32>
    %103 = vector.shape_cast %99 : vector<8x1xf32> to vector<8x1xf32>
    %104 = vector.broadcast %103 : vector<8x1xf32> to vector<8x32xf32>
    %105 = vector.shape_cast %100 : vector<8x1xf32> to vector<8x1xf32>
    %106 = vector.broadcast %105 : vector<8x1xf32> to vector<8x32xf32>
    %107 = vector.shape_cast %101 : vector<8x1xf32> to vector<8x1xf32>
    %108 = vector.broadcast %107 : vector<8x1xf32> to vector<8x32xf32>
    %109 = vector.shape_cast %102 : vector<8x1xf32> to vector<8x1xf32>
    %110 = vector.broadcast %109 : vector<8x1xf32> to vector<8x32xf32>
    %111 = arith.mulf %104, %37 : vector<8x32xf32>
    %112 = arith.mulf %106, %41 : vector<8x32xf32>
    %113 = arith.addf %111, %112 : vector<8x32xf32>
    %114 = arith.mulf %108, %39 : vector<8x32xf32>
    %115 = arith.addf %113, %114 : vector<8x32xf32>
    %116 = arith.mulf %110, %40 : vector<8x32xf32>
    %117 = arith.addf %115, %116 : vector<8x32xf32>
    %118 = arith.mulf %104, %52 : vector<8x32xf32>
    %119 = arith.mulf %106, %57 : vector<8x32xf32>
    %120 = arith.addf %118, %119 : vector<8x32xf32>
    %121 = arith.mulf %108, %56 : vector<8x32xf32>
    %122 = arith.addf %120, %121 : vector<8x32xf32>
    %123 = arith.mulf %110, %54 : vector<8x32xf32>
    %124 = arith.addf %122, %123 : vector<8x32xf32>
    %125 = math.floor %99 : vector<8x1xf32>
    %126 = arith.mulf %125, %11 : vector<8x1xf32>
    %127 = math.floor %100 : vector<8x1xf32>
    %cst_45 = arith.constant 1.000000e+00 : f32
    %128 = vector.broadcast %cst_45 : f32 to vector<8x1xf32>
    %129 = arith.subf %11, %128 : vector<8x1xf32>
    %130 = arith.mulf %127, %129 : vector<8x1xf32>
    %131 = arith.addf %126, %130 : vector<8x1xf32>
    %132 = math.floor %101 : vector<8x1xf32>
    %cst_46 = arith.constant 1.000000e+00 : f32
    %133 = vector.broadcast %cst_46 : f32 to vector<8x1xf32>
    %134 = arith.addf %11, %133 : vector<8x1xf32>
    %135 = arith.mulf %132, %134 : vector<8x1xf32>
    %136 = arith.addf %131, %135 : vector<8x1xf32>
    %137 = math.floor %102 : vector<8x1xf32>
    %138 = arith.mulf %137, %11 : vector<8x1xf32>
    %139 = arith.addf %136, %138 : vector<8x1xf32>
    %140 = arith.addf %101, %102 : vector<8x1xf32>
    %141 = arith.addf %100, %102 : vector<8x1xf32>
    %142 = tpu.concatenate %140, %141 in 1 : vector<8x1xf32>, vector<8x1xf32> -> vector<8x2xf32>
    %c0_47 = arith.constant 0 : index
    %c0_48 = arith.constant 0 : index
    %143 = vector.load %arg7[%c0_47, %c0_48] : memref<32x128xf32, #tpu.memory_space<vmem>>, vector<8x32xf32>
    tpu.vector_store %arg7[%c0_47, %c0_48], %117 {strides = array<i32>} : memref<32x128xf32, #tpu.memory_space<vmem>>, vector<8x32xf32>,
    %c0_49 = arith.constant 0 : index
    %c32 = arith.constant 32 : index
    %144 = vector.load %arg7[%c0_49, %c32] : memref<32x128xf32, #tpu.memory_space<vmem>>, vector<8x32xf32>
    tpu.vector_store %arg7[%c0_49, %c32], %124 {strides = array<i32>} : memref<32x128xf32, #tpu.memory_space<vmem>>, vector<8x32xf32>,
    %c0_50 = arith.constant 0 : index
    %c64_51 = arith.constant 64 : index
    %145 = vector.load %arg7[%c0_50, %c64_51] : memref<32x128xf32, #tpu.memory_space<vmem>>, vector<8x2xf32>
    tpu.vector_store %arg7[%c0_50, %c64_51], %142 {strides = array<i32>} : memref<32x128xf32, #tpu.memory_space<vmem>>, vector<8x2xf32>,
    %c0_52 = arith.constant 0 : index
    %c0_53 = arith.constant 0 : index
    %146 = vector.load %arg9[%c0_52, %c0_53] : memref<8x128xf32, #tpu.memory_space<vmem>>, vector<8x32xf32>
    tpu.vector_store %arg9[%c0_52, %c0_53], %117 {strides = array<i32>} : memref<8x128xf32, #tpu.memory_space<vmem>>, vector<8x32xf32>,
    %c0_54 = arith.constant 0 : index
    %c32_55 = arith.constant 32 : index
    %147 = vector.load %arg9[%c0_54, %c32_55] : memref<8x128xf32, #tpu.memory_space<vmem>>, vector<8x32xf32>
    tpu.vector_store %arg9[%c0_54, %c32_55], %124 {strides = array<i32>} : memref<8x128xf32, #tpu.memory_space<vmem>>, vector<8x32xf32>,
    %c8 = arith.constant 8 : index
    %c0_56 = arith.constant 0 : index
    %148 = vector.load %arg8[%c8, %c0_56] : memref<32x192xf32, #tpu.memory_space<vmem>>, vector<8x192xf32>
    %c8_57 = arith.constant 8 : index
    %c0_58 = arith.constant 0 : index
    %149 = vector.load %arg2[%c8_57, %c0_58] : memref<32x4xf32, #tpu.memory_space<vmem>>, vector<8x4xf32>
    %150 = vector.shape_cast %139 : vector<8x1xf32> to vector<8x1xf32>
    %151 = vector.broadcast %150 : vector<8x1xf32> to vector<8x32xf32>
    %cst_59 = arith.constant 0.000000e+00 : f32
    %152 = vector.broadcast %cst_59 : f32 to vector<8x32xf32>
    %153 = arith.cmpf oeq, %151, %152 : vector<8x32xf32>
    %cst_60 = arith.constant 0.000000e+00 : f32
    %154 = vector.broadcast %cst_60 : f32 to vector<8x32xf32>
    %155 = arith.cmpf ogt, %151, %154 : vector<8x32xf32>
    %cst_61 = arith.constant 1.000000e+00 : f32
    %156 = vector.broadcast %cst_61 : f32 to vector<8x32xf32>
    %157 = arith.cmpf oeq, %151, %156 : vector<8x32xf32>
    %cst_62 = arith.constant 1.000000e+00 : f32
    %158 = vector.broadcast %cst_62 : f32 to vector<8x32xf32>
    %159 = arith.cmpf ogt, %151, %158 : vector<8x32xf32>
    %cst_63 = arith.constant 1.000000e+00 : f32
    %160 = vector.broadcast %cst_63 : f32 to vector<8x32xf32>
    %161 = arith.cmpf oge, %151, %160 : vector<8x32xf32>
    %cst_64 = arith.constant 2.000000e+00 : f32
    %162 = vector.broadcast %cst_64 : f32 to vector<8x32xf32>
    %163 = arith.cmpf ogt, %151, %162 : vector<8x32xf32>
    %164 = vector.extract_strided_slice %148 {offsets = [0, 0], sizes = [8, 128], strides = [1, 1]} : vector<8x192xf32> to vector<8x128xf32>
    %c0_65 = arith.constant 0 : index
    %c0_66 = arith.constant 0 : index
    %165 = vector.load %arg9[%c0_65, %c0_66] : memref<8x128xf32, #tpu.memory_space<vmem>>, vector<8x128xf32>
    %c0_67 = arith.constant 0 : index
    %c0_68 = arith.constant 0 : index
    %166 = vector.load %arg4[%c0_67, %c0_68] : memref<128x128xf32, #tpu.memory_space<vmem>>, vector<128x128xf32>
    %cst_69 = arith.constant dense<0.000000e+00> : vector<8x128xf32>
    %167 = tpu.matmul %165, %166, %cst_69 {dimension_numbers = #tpu.dot_dimension_numbers<[1], [0], [0], [1], [0, 0, 1, 1], [], []>} : vector<8x128xf32>, vector<128x128xf32>, vector<8x128xf32> -> vector<8x128xf32>
    %168 = arith.addf %164, %167 : vector<8x128xf32>
    %169 = vector.extract_strided_slice %168 {offsets = [0, 0], sizes = [8, 32], strides = [1, 1]} : vector<8x128xf32> to vector<8x32xf32>
    %170 = vector.extract_strided_slice %168 {offsets = [0, 32], sizes = [8, 32], strides = [1, 1]} : vector<8x128xf32> to vector<8x32xf32>
    %171 = vector.extract_strided_slice %168 {offsets = [0, 64], sizes = [8, 32], strides = [1, 1]} : vector<8x128xf32> to vector<8x32xf32>
    %172 = arith.select %159, %117, %7 : vector<8x32xi1>, vector<8x32xf32>
    %173 = arith.select %157, %169, %172 : vector<8x32xi1>, vector<8x32xf32>
    %174 = arith.select %155, %117, %7 : vector<8x32xi1>, vector<8x32xf32>
    %175 = arith.select %153, %170, %174 : vector<8x32xi1>, vector<8x32xf32>
    %176 = arith.select %161, %117, %7 : vector<8x32xi1>, vector<8x32xf32>
    %177 = arith.select %163, %117, %7 : vector<8x32xi1>, vector<8x32xf32>
    %c0_70 = arith.constant 0 : index
    %c64_71 = arith.constant 64 : index
    %178 = vector.load %arg9[%c0_70, %c64_71] : memref<8x128xf32, #tpu.memory_space<vmem>>, vector<8x32xf32>
    tpu.vector_store %arg9[%c0_70, %c64_71], %173 {strides = array<i32>} : memref<8x128xf32, #tpu.memory_space<vmem>>, vector<8x32xf32>,
    %c0_72 = arith.constant 0 : index
    %c96_73 = arith.constant 96 : index
    %179 = vector.load %arg9[%c0_72, %c96_73] : memref<8x128xf32, #tpu.memory_space<vmem>>, vector<8x32xf32>
    tpu.vector_store %arg9[%c0_72, %c96_73], %175 {strides = array<i32>} : memref<8x128xf32, #tpu.memory_space<vmem>>, vector<8x32xf32>,
    %180 = vector.extract_strided_slice %148 {offsets = [0, 128], sizes = [8, 64], strides = [1, 1]} : vector<8x192xf32> to vector<8x64xf32>
    %c0_74 = arith.constant 0 : index
    %c0_75 = arith.constant 0 : index
    %181 = vector.load %arg9[%c0_74, %c0_75] : memref<8x128xf32, #tpu.memory_space<vmem>>, vector<8x128xf32>
    %c0_76 = arith.constant 0 : index
    %c0_77 = arith.constant 0 : index
    %182 = vector.load %arg5[%c0_76, %c0_77] : memref<128x64xf32, #tpu.memory_space<vmem>>, vector<128x64xf32>
    %cst_78 = arith.constant dense<0.000000e+00> : vector<8x64xf32>
    %183 = tpu.matmul %181, %182, %cst_78 {dimension_numbers = #tpu.dot_dimension_numbers<[1], [0], [0], [1], [0, 0, 1, 1], [], []>} : vector<8x128xf32>, vector<128x64xf32>, vector<8x64xf32> -> vector<8x64xf32>
    %184 = arith.addf %180, %183 : vector<8x64xf32>
    %185 = vector.extract_strided_slice %184 {offsets = [0, 0], sizes = [8, 32], strides = [1, 1]} : vector<8x64xf32> to vector<8x32xf32>
    %186 = vector.extract_strided_slice %184 {offsets = [0, 32], sizes = [8, 32], strides = [1, 1]} : vector<8x64xf32> to vector<8x32xf32>
    %187 = arith.select %159, %124, %7 : vector<8x32xi1>, vector<8x32xf32>
    %188 = arith.select %157, %185, %187 : vector<8x32xi1>, vector<8x32xf32>
    %189 = arith.select %159, %124, %7 : vector<8x32xi1>, vector<8x32xf32>
    %190 = arith.select %157, %171, %189 : vector<8x32xi1>, vector<8x32xf32>
    %191 = arith.select %155, %124, %7 : vector<8x32xi1>, vector<8x32xf32>
    %192 = arith.select %153, %186, %191 : vector<8x32xi1>, vector<8x32xf32>
    %193 = arith.select %163, %124, %7 : vector<8x32xi1>, vector<8x32xf32>
    %194 = tpu.concatenate %175, %192, %176, %190 in 1 : vector<8x32xf32>, vector<8x32xf32>, vector<8x32xf32>, vector<8x32xf32> -> vector<8x128xf32>
    %c0_79 = arith.constant 0 : index
    %c0_80 = arith.constant 0 : index
    %195 = vector.load %arg6[%c0_79, %c0_80] : memref<128x4xf32, #tpu.memory_space<vmem>>, vector<128x4xf32>
    %cst_81 = arith.constant dense<0.000000e+00> : vector<8x4xf32>
    %196 = tpu.matmul %194, %195, %cst_81 {dimension_numbers = #tpu.dot_dimension_numbers<[1], [0], [0], [1], [0, 0, 1, 1], [], []>} : vector<8x128xf32>, vector<128x4xf32>, vector<8x4xf32> -> vector<8x4xf32>
    %197 = arith.negf %196 : vector<8x4xf32>
    %198 = math.exp %197 : vector<8x4xf32>
    %cst_82 = arith.constant 1.000000e+00 : f32
    %199 = vector.broadcast %cst_82 : f32 to vector<8x4xf32>
    %200 = arith.addf %199, %198 : vector<8x4xf32>
    %201 = arith.divf %199, %200 : vector<8x4xf32>
    %202 = arith.addf %201, %149 : vector<8x4xf32>
    %cst_83 = arith.constant 1.000000e+00 : f32
    %203 = vector.broadcast %cst_83 : f32 to vector<8x4xf32>
    %204 = arith.mulf %202, %203 : vector<8x4xf32>
    %cst_84 = arith.constant dense<0xFF800000> : vector<8xf32>
    %205 = vector.multi_reduction <maximumf>, %204, %cst_84 [1] : vector<8x4xf32> to vector<8xf32>
    %cst_85 = arith.constant 0xFF800000 : f32
    %206 = vector.broadcast %cst_85 : f32 to vector<8xf32>
    %207 = arith.maximumf %206, %205 : vector<8xf32>
    %208 = vector.shape_cast %207 : vector<8xf32> to vector<8x1xf32>
    %209 = vector.broadcast %208 : vector<8x1xf32> to vector<8x4xf32>
    %210 = arith.subf %204, %209 : vector<8x4xf32>
    %211 = math.exp %210 : vector<8x4xf32>
    %cst_86 = arith.constant dense<0.000000e+00> : vector<8xf32>
    %212 = vector.multi_reduction <add>, %211, %cst_86 [1] : vector<8x4xf32> to vector<8xf32>
    %213 = vector.shape_cast %212 : vector<8xf32> to vector<8x1xf32>
    %214 = vector.broadcast %213 : vector<8x1xf32> to vector<8x4xf32>
    %215 = arith.divf %211, %214 : vector<8x4xf32>
    %cst_87 = arith.constant 0.000000e+00 : f32
    %216 = vector.broadcast %cst_87 : f32 to vector<8x1xf32>
    %217 = arith.cmpf one, %139, %216 : vector<8x1xf32>
    %218 = arith.extui %217 : vector<8x1xi1> to vector<8x1xi32>
    %219 = arith.sitofp %218 : vector<8x1xi32> to vector<8x1xf32>
    %cst_88 = arith.constant 1.000000e+00 : f32
    %220 = vector.broadcast %cst_88 : f32 to vector<8x1xf32>
    %221 = arith.cmpf one, %139, %220 : vector<8x1xf32>
    %222 = arith.extui %221 : vector<8x1xi1> to vector<8x1xi32>
    %223 = arith.sitofp %222 : vector<8x1xi32> to vector<8x1xf32>
    %224 = arith.mulf %219, %223 : vector<8x1xf32>
    %225 = tpu.concatenate %219, %224, %223, %219 in 1 : vector<8x1xf32>, vector<8x1xf32>, vector<8x1xf32>, vector<8x1xf32> -> vector<8x4xf32>
    %226 = arith.mulf %225, %215 : vector<8x4xf32>
    %227 = arith.mulf %226, %226 : vector<8x4xf32>
    %cst_89 = arith.constant dense<0.000000e+00> : vector<8xf32>
    %228 = vector.multi_reduction <add>, %227, %cst_89 [1] : vector<8x4xf32> to vector<8xf32>
    %229 = vector.shape_cast %228 : vector<8xf32> to vector<8x1xf32>
    %cst_90 = arith.constant 1.000000e-24 : f32
    %230 = vector.broadcast %cst_90 : f32 to vector<8x1xf32>
    %231 = arith.maximumf %229, %230 : vector<8x1xf32>
    %232 = math.rsqrt %231 : vector<8x1xf32>
    %233 = vector.broadcast %232 : vector<8x1xf32> to vector<8x4xf32>
    %234 = arith.mulf %226, %233 : vector<8x4xf32>
    %235 = vector.extract_strided_slice %234 {offsets = [0, 0], sizes = [8, 1], strides = [1, 1]} : vector<8x4xf32> to vector<8x1xf32>
    %236 = vector.extract_strided_slice %234 {offsets = [0, 1], sizes = [8, 1], strides = [1, 1]} : vector<8x4xf32> to vector<8x1xf32>
    %237 = vector.extract_strided_slice %234 {offsets = [0, 2], sizes = [8, 1], strides = [1, 1]} : vector<8x4xf32> to vector<8x1xf32>
    %238 = vector.extract_strided_slice %234 {offsets = [0, 3], sizes = [8, 1], strides = [1, 1]} : vector<8x4xf32> to vector<8x1xf32>
    %239 = vector.shape_cast %235 : vector<8x1xf32> to vector<8x1xf32>
    %240 = vector.broadcast %239 : vector<8x1xf32> to vector<8x32xf32>
    %241 = vector.shape_cast %236 : vector<8x1xf32> to vector<8x1xf32>
    %242 = vector.broadcast %241 : vector<8x1xf32> to vector<8x32xf32>
    %243 = vector.shape_cast %237 : vector<8x1xf32> to vector<8x1xf32>
    %244 = vector.broadcast %243 : vector<8x1xf32> to vector<8x32xf32>
    %245 = vector.shape_cast %238 : vector<8x1xf32> to vector<8x1xf32>
    %246 = vector.broadcast %245 : vector<8x1xf32> to vector<8x32xf32>
    %247 = arith.mulf %240, %173 : vector<8x32xf32>
    %248 = arith.mulf %242, %177 : vector<8x32xf32>
    %249 = arith.addf %247, %248 : vector<8x32xf32>
    %250 = arith.mulf %244, %175 : vector<8x32xf32>
    %251 = arith.addf %249, %250 : vector<8x32xf32>
    %252 = arith.mulf %246, %176 : vector<8x32xf32>
    %253 = arith.addf %251, %252 : vector<8x32xf32>
    %254 = arith.mulf %240, %188 : vector<8x32xf32>
    %255 = arith.mulf %242, %193 : vector<8x32xf32>
    %256 = arith.addf %254, %255 : vector<8x32xf32>
    %257 = arith.mulf %244, %192 : vector<8x32xf32>
    %258 = arith.addf %256, %257 : vector<8x32xf32>
    %259 = arith.mulf %246, %190 : vector<8x32xf32>
    %260 = arith.addf %258, %259 : vector<8x32xf32>
    %261 = math.floor %235 : vector<8x1xf32>
    %262 = arith.mulf %261, %139 : vector<8x1xf32>
    %263 = math.floor %236 : vector<8x1xf32>
    %cst_91 = arith.constant 1.000000e+00 : f32
    %264 = vector.broadcast %cst_91 : f32 to vector<8x1xf32>
    %265 = arith.subf %139, %264 : vector<8x1xf32>
    %266 = arith.mulf %263, %265 : vector<8x1xf32>
    %267 = arith.addf %262, %266 : vector<8x1xf32>
    %268 = math.floor %237 : vector<8x1xf32>
    %cst_92 = arith.constant 1.000000e+00 : f32
    %269 = vector.broadcast %cst_92 : f32 to vector<8x1xf32>
    %270 = arith.addf %139, %269 : vector<8x1xf32>
    %271 = arith.mulf %268, %270 : vector<8x1xf32>
    %272 = arith.addf %267, %271 : vector<8x1xf32>
    %273 = math.floor %238 : vector<8x1xf32>
    %274 = arith.mulf %273, %139 : vector<8x1xf32>
    %275 = arith.addf %272, %274 : vector<8x1xf32>
    %276 = arith.addf %237, %238 : vector<8x1xf32>
    %277 = arith.addf %236, %238 : vector<8x1xf32>
    %278 = tpu.concatenate %276, %277 in 1 : vector<8x1xf32>, vector<8x1xf32> -> vector<8x2xf32>
    %c8_93 = arith.constant 8 : index
    %c0_94 = arith.constant 0 : index
    %279 = vector.load %arg7[%c8_93, %c0_94] : memref<32x128xf32, #tpu.memory_space<vmem>>, vector<8x32xf32>
    tpu.vector_store %arg7[%c8_93, %c0_94], %253 {strides = array<i32>} : memref<32x128xf32, #tpu.memory_space<vmem>>, vector<8x32xf32>,
    %c8_95 = arith.constant 8 : index
    %c32_96 = arith.constant 32 : index
    %280 = vector.load %arg7[%c8_95, %c32_96] : memref<32x128xf32, #tpu.memory_space<vmem>>, vector<8x32xf32>
    tpu.vector_store %arg7[%c8_95, %c32_96], %260 {strides = array<i32>} : memref<32x128xf32, #tpu.memory_space<vmem>>, vector<8x32xf32>,
    %c8_97 = arith.constant 8 : index
    %c64_98 = arith.constant 64 : index
    %281 = vector.load %arg7[%c8_97, %c64_98] : memref<32x128xf32, #tpu.memory_space<vmem>>, vector<8x2xf32>
    tpu.vector_store %arg7[%c8_97, %c64_98], %278 {strides = array<i32>} : memref<32x128xf32, #tpu.memory_space<vmem>>, vector<8x2xf32>,
    %c0_99 = arith.constant 0 : index
    %c0_100 = arith.constant 0 : index
    %282 = vector.load %arg9[%c0_99, %c0_100] : memref<8x128xf32, #tpu.memory_space<vmem>>, vector<8x32xf32>
    tpu.vector_store %arg9[%c0_99, %c0_100], %253 {strides = array<i32>} : memref<8x128xf32, #tpu.memory_space<vmem>>, vector<8x32xf32>,
    %c0_101 = arith.constant 0 : index
    %c32_102 = arith.constant 32 : index
    %283 = vector.load %arg9[%c0_101, %c32_102] : memref<8x128xf32, #tpu.memory_space<vmem>>, vector<8x32xf32>
    tpu.vector_store %arg9[%c0_101, %c32_102], %260 {strides = array<i32>} : memref<8x128xf32, #tpu.memory_space<vmem>>, vector<8x32xf32>,
    %c16 = arith.constant 16 : index
    %c0_103 = arith.constant 0 : index
    %284 = vector.load %arg8[%c16, %c0_103] : memref<32x192xf32, #tpu.memory_space<vmem>>, vector<8x192xf32>
    %c16_104 = arith.constant 16 : index
    %c0_105 = arith.constant 0 : index
    %285 = vector.load %arg2[%c16_104, %c0_105] : memref<32x4xf32, #tpu.memory_space<vmem>>, vector<8x4xf32>
    %286 = vector.shape_cast %275 : vector<8x1xf32> to vector<8x1xf32>
    %287 = vector.broadcast %286 : vector<8x1xf32> to vector<8x32xf32>
    %cst_106 = arith.constant 0.000000e+00 : f32
    %288 = vector.broadcast %cst_106 : f32 to vector<8x32xf32>
    %289 = arith.cmpf oeq, %287, %288 : vector<8x32xf32>
    %cst_107 = arith.constant 0.000000e+00 : f32
    %290 = vector.broadcast %cst_107 : f32 to vector<8x32xf32>
    %291 = arith.cmpf ogt, %287, %290 : vector<8x32xf32>
    %cst_108 = arith.constant 1.000000e+00 : f32
    %292 = vector.broadcast %cst_108 : f32 to vector<8x32xf32>
    %293 = arith.cmpf oeq, %287, %292 : vector<8x32xf32>
    %cst_109 = arith.constant 1.000000e+00 : f32
    %294 = vector.broadcast %cst_109 : f32 to vector<8x32xf32>
    %295 = arith.cmpf ogt, %287, %294 : vector<8x32xf32>
    %cst_110 = arith.constant 1.000000e+00 : f32
    %296 = vector.broadcast %cst_110 : f32 to vector<8x32xf32>
    %297 = arith.cmpf oge, %287, %296 : vector<8x32xf32>
    %cst_111 = arith.constant 2.000000e+00 : f32
    %298 = vector.broadcast %cst_111 : f32 to vector<8x32xf32>
    %299 = arith.cmpf ogt, %287, %298 : vector<8x32xf32>
    %300 = vector.extract_strided_slice %284 {offsets = [0, 0], sizes = [8, 128], strides = [1, 1]} : vector<8x192xf32> to vector<8x128xf32>
    %c0_112 = arith.constant 0 : index
    %c0_113 = arith.constant 0 : index
    %301 = vector.load %arg9[%c0_112, %c0_113] : memref<8x128xf32, #tpu.memory_space<vmem>>, vector<8x128xf32>
    %c0_114 = arith.constant 0 : index
    %c0_115 = arith.constant 0 : index
    %302 = vector.load %arg4[%c0_114, %c0_115] : memref<128x128xf32, #tpu.memory_space<vmem>>, vector<128x128xf32>
    %cst_116 = arith.constant dense<0.000000e+00> : vector<8x128xf32>
    %303 = tpu.matmul %301, %302, %cst_116 {dimension_numbers = #tpu.dot_dimension_numbers<[1], [0], [0], [1], [0, 0, 1, 1], [], []>} : vector<8x128xf32>, vector<128x128xf32>, vector<8x128xf32> -> vector<8x128xf32>
    %304 = arith.addf %300, %303 : vector<8x128xf32>
    %305 = vector.extract_strided_slice %304 {offsets = [0, 0], sizes = [8, 32], strides = [1, 1]} : vector<8x128xf32> to vector<8x32xf32>
    %306 = vector.extract_strided_slice %304 {offsets = [0, 32], sizes = [8, 32], strides = [1, 1]} : vector<8x128xf32> to vector<8x32xf32>
    %307 = vector.extract_strided_slice %304 {offsets = [0, 64], sizes = [8, 32], strides = [1, 1]} : vector<8x128xf32> to vector<8x32xf32>
    %308 = arith.select %295, %253, %7 : vector<8x32xi1>, vector<8x32xf32>
    %309 = arith.select %293, %305, %308 : vector<8x32xi1>, vector<8x32xf32>
    %310 = arith.select %291, %253, %7 : vector<8x32xi1>, vector<8x32xf32>
    %311 = arith.select %289, %306, %310 : vector<8x32xi1>, vector<8x32xf32>
    %312 = arith.select %297, %253, %7 : vector<8x32xi1>, vector<8x32xf32>
    %313 = arith.select %299, %253, %7 : vector<8x32xi1>, vector<8x32xf32>
    %c0_117 = arith.constant 0 : index
    %c64_118 = arith.constant 64 : index
    %314 = vector.load %arg9[%c0_117, %c64_118] : memref<8x128xf32, #tpu.memory_space<vmem>>, vector<8x32xf32>
    tpu.vector_store %arg9[%c0_117, %c64_118], %309 {strides = array<i32>} : memref<8x128xf32, #tpu.memory_space<vmem>>, vector<8x32xf32>,
    %c0_119 = arith.constant 0 : index
    %c96_120 = arith.constant 96 : index
    %315 = vector.load %arg9[%c0_119, %c96_120] : memref<8x128xf32, #tpu.memory_space<vmem>>, vector<8x32xf32>
    tpu.vector_store %arg9[%c0_119, %c96_120], %311 {strides = array<i32>} : memref<8x128xf32, #tpu.memory_space<vmem>>, vector<8x32xf32>,
    %316 = vector.extract_strided_slice %284 {offsets = [0, 128], sizes = [8, 64], strides = [1, 1]} : vector<8x192xf32> to vector<8x64xf32>
    %c0_121 = arith.constant 0 : index
    %c0_122 = arith.constant 0 : index
    %317 = vector.load %arg9[%c0_121, %c0_122] : memref<8x128xf32, #tpu.memory_space<vmem>>, vector<8x128xf32>
    %c0_123 = arith.constant 0 : index
    %c0_124 = arith.constant 0 : index
    %318 = vector.load %arg5[%c0_123, %c0_124] : memref<128x64xf32, #tpu.memory_space<vmem>>, vector<128x64xf32>
    %cst_125 = arith.constant dense<0.000000e+00> : vector<8x64xf32>
    %319 = tpu.matmul %317, %318, %cst_125 {dimension_numbers = #tpu.dot_dimension_numbers<[1], [0], [0], [1], [0, 0, 1, 1], [], []>} : vector<8x128xf32>, vector<128x64xf32>, vector<8x64xf32> -> vector<8x64xf32>
    %320 = arith.addf %316, %319 : vector<8x64xf32>
    %321 = vector.extract_strided_slice %320 {offsets = [0, 0], sizes = [8, 32], strides = [1, 1]} : vector<8x64xf32> to vector<8x32xf32>
    %322 = vector.extract_strided_slice %320 {offsets = [0, 32], sizes = [8, 32], strides = [1, 1]} : vector<8x64xf32> to vector<8x32xf32>
    %323 = arith.select %295, %260, %7 : vector<8x32xi1>, vector<8x32xf32>
    %324 = arith.select %293, %321, %323 : vector<8x32xi1>, vector<8x32xf32>
    %325 = arith.select %295, %260, %7 : vector<8x32xi1>, vector<8x32xf32>
    %326 = arith.select %293, %307, %325 : vector<8x32xi1>, vector<8x32xf32>
    %327 = arith.select %291, %260, %7 : vector<8x32xi1>, vector<8x32xf32>
    %328 = arith.select %289, %322, %327 : vector<8x32xi1>, vector<8x32xf32>
    %329 = arith.select %299, %260, %7 : vector<8x32xi1>, vector<8x32xf32>
    %330 = tpu.concatenate %311, %328, %312, %326 in 1 : vector<8x32xf32>, vector<8x32xf32>, vector<8x32xf32>, vector<8x32xf32> -> vector<8x128xf32>
    %c0_126 = arith.constant 0 : index
    %c0_127 = arith.constant 0 : index
    %331 = vector.load %arg6[%c0_126, %c0_127] : memref<128x4xf32, #tpu.memory_space<vmem>>, vector<128x4xf32>
    %cst_128 = arith.constant dense<0.000000e+00> : vector<8x4xf32>
    %332 = tpu.matmul %330, %331, %cst_128 {dimension_numbers = #tpu.dot_dimension_numbers<[1], [0], [0], [1], [0, 0, 1, 1], [], []>} : vector<8x128xf32>, vector<128x4xf32>, vector<8x4xf32> -> vector<8x4xf32>
    %333 = arith.negf %332 : vector<8x4xf32>
    %334 = math.exp %333 : vector<8x4xf32>
    %cst_129 = arith.constant 1.000000e+00 : f32
    %335 = vector.broadcast %cst_129 : f32 to vector<8x4xf32>
    %336 = arith.addf %335, %334 : vector<8x4xf32>
    %337 = arith.divf %335, %336 : vector<8x4xf32>
    %338 = arith.addf %337, %285 : vector<8x4xf32>
    %cst_130 = arith.constant 1.000000e+00 : f32
    %339 = vector.broadcast %cst_130 : f32 to vector<8x4xf32>
    %340 = arith.mulf %338, %339 : vector<8x4xf32>
    %cst_131 = arith.constant dense<0xFF800000> : vector<8xf32>
    %341 = vector.multi_reduction <maximumf>, %340, %cst_131 [1] : vector<8x4xf32> to vector<8xf32>
    %cst_132 = arith.constant 0xFF800000 : f32
    %342 = vector.broadcast %cst_132 : f32 to vector<8xf32>
    %343 = arith.maximumf %342, %341 : vector<8xf32>
    %344 = vector.shape_cast %343 : vector<8xf32> to vector<8x1xf32>
    %345 = vector.broadcast %344 : vector<8x1xf32> to vector<8x4xf32>
    %346 = arith.subf %340, %345 : vector<8x4xf32>
    %347 = math.exp %346 : vector<8x4xf32>
    %cst_133 = arith.constant dense<0.000000e+00> : vector<8xf32>
    %348 = vector.multi_reduction <add>, %347, %cst_133 [1] : vector<8x4xf32> to vector<8xf32>
    %349 = vector.shape_cast %348 : vector<8xf32> to vector<8x1xf32>
    %350 = vector.broadcast %349 : vector<8x1xf32> to vector<8x4xf32>
    %351 = arith.divf %347, %350 : vector<8x4xf32>
    %cst_134 = arith.constant 0.000000e+00 : f32
    %352 = vector.broadcast %cst_134 : f32 to vector<8x1xf32>
    %353 = arith.cmpf one, %275, %352 : vector<8x1xf32>
    %354 = arith.extui %353 : vector<8x1xi1> to vector<8x1xi32>
    %355 = arith.sitofp %354 : vector<8x1xi32> to vector<8x1xf32>
    %cst_135 = arith.constant 1.000000e+00 : f32
    %356 = vector.broadcast %cst_135 : f32 to vector<8x1xf32>
    %357 = arith.cmpf one, %275, %356 : vector<8x1xf32>
    %358 = arith.extui %357 : vector<8x1xi1> to vector<8x1xi32>
    %359 = arith.sitofp %358 : vector<8x1xi32> to vector<8x1xf32>
    %360 = arith.mulf %355, %359 : vector<8x1xf32>
    %361 = tpu.concatenate %355, %360, %359, %355 in 1 : vector<8x1xf32>, vector<8x1xf32>, vector<8x1xf32>, vector<8x1xf32> -> vector<8x4xf32>
    %362 = arith.mulf %361, %351 : vector<8x4xf32>
    %363 = arith.mulf %362, %362 : vector<8x4xf32>
    %cst_136 = arith.constant dense<0.000000e+00> : vector<8xf32>
    %364 = vector.multi_reduction <add>, %363, %cst_136 [1] : vector<8x4xf32> to vector<8xf32>
    %365 = vector.shape_cast %364 : vector<8xf32> to vector<8x1xf32>
    %cst_137 = arith.constant 1.000000e-24 : f32
    %366 = vector.broadcast %cst_137 : f32 to vector<8x1xf32>
    %367 = arith.maximumf %365, %366 : vector<8x1xf32>
    %368 = math.rsqrt %367 : vector<8x1xf32>
    %369 = vector.broadcast %368 : vector<8x1xf32> to vector<8x4xf32>
    %370 = arith.mulf %362, %369 : vector<8x4xf32>
    %371 = vector.extract_strided_slice %370 {offsets = [0, 0], sizes = [8, 1], strides = [1, 1]} : vector<8x4xf32> to vector<8x1xf32>
    %372 = vector.extract_strided_slice %370 {offsets = [0, 1], sizes = [8, 1], strides = [1, 1]} : vector<8x4xf32> to vector<8x1xf32>
    %373 = vector.extract_strided_slice %370 {offsets = [0, 2], sizes = [8, 1], strides = [1, 1]} : vector<8x4xf32> to vector<8x1xf32>
    %374 = vector.extract_strided_slice %370 {offsets = [0, 3], sizes = [8, 1], strides = [1, 1]} : vector<8x4xf32> to vector<8x1xf32>
    %375 = vector.shape_cast %371 : vector<8x1xf32> to vector<8x1xf32>
    %376 = vector.broadcast %375 : vector<8x1xf32> to vector<8x32xf32>
    %377 = vector.shape_cast %372 : vector<8x1xf32> to vector<8x1xf32>
    %378 = vector.broadcast %377 : vector<8x1xf32> to vector<8x32xf32>
    %379 = vector.shape_cast %373 : vector<8x1xf32> to vector<8x1xf32>
    %380 = vector.broadcast %379 : vector<8x1xf32> to vector<8x32xf32>
    %381 = vector.shape_cast %374 : vector<8x1xf32> to vector<8x1xf32>
    %382 = vector.broadcast %381 : vector<8x1xf32> to vector<8x32xf32>
    %383 = arith.mulf %376, %309 : vector<8x32xf32>
    %384 = arith.mulf %378, %313 : vector<8x32xf32>
    %385 = arith.addf %383, %384 : vector<8x32xf32>
    %386 = arith.mulf %380, %311 : vector<8x32xf32>
    %387 = arith.addf %385, %386 : vector<8x32xf32>
    %388 = arith.mulf %382, %312 : vector<8x32xf32>
    %389 = arith.addf %387, %388 : vector<8x32xf32>
    %390 = arith.mulf %376, %324 : vector<8x32xf32>
    %391 = arith.mulf %378, %329 : vector<8x32xf32>
    %392 = arith.addf %390, %391 : vector<8x32xf32>
    %393 = arith.mulf %380, %328 : vector<8x32xf32>
    %394 = arith.addf %392, %393 : vector<8x32xf32>
    %395 = arith.mulf %382, %326 : vector<8x32xf32>
    %396 = arith.addf %394, %395 : vector<8x32xf32>
    %397 = math.floor %371 : vector<8x1xf32>
    %398 = arith.mulf %397, %275 : vector<8x1xf32>
    %399 = math.floor %372 : vector<8x1xf32>
    %cst_138 = arith.constant 1.000000e+00 : f32
    %400 = vector.broadcast %cst_138 : f32 to vector<8x1xf32>
    %401 = arith.subf %275, %400 : vector<8x1xf32>
    %402 = arith.mulf %399, %401 : vector<8x1xf32>
    %403 = arith.addf %398, %402 : vector<8x1xf32>
    %404 = math.floor %373 : vector<8x1xf32>
    %cst_139 = arith.constant 1.000000e+00 : f32
    %405 = vector.broadcast %cst_139 : f32 to vector<8x1xf32>
    %406 = arith.addf %275, %405 : vector<8x1xf32>
    %407 = arith.mulf %404, %406 : vector<8x1xf32>
    %408 = arith.addf %403, %407 : vector<8x1xf32>
    %409 = math.floor %374 : vector<8x1xf32>
    %410 = arith.mulf %409, %275 : vector<8x1xf32>
    %411 = arith.addf %408, %410 : vector<8x1xf32>
    %412 = arith.addf %373, %374 : vector<8x1xf32>
    %413 = arith.addf %372, %374 : vector<8x1xf32>
    %414 = tpu.concatenate %412, %413 in 1 : vector<8x1xf32>, vector<8x1xf32> -> vector<8x2xf32>
    %c16_140 = arith.constant 16 : index
    %c0_141 = arith.constant 0 : index
    %415 = vector.load %arg7[%c16_140, %c0_141] : memref<32x128xf32, #tpu.memory_space<vmem>>, vector<8x32xf32>
    tpu.vector_store %arg7[%c16_140, %c0_141], %389 {strides = array<i32>} : memref<32x128xf32, #tpu.memory_space<vmem>>, vector<8x32xf32>,
    %c16_142 = arith.constant 16 : index
    %c32_143 = arith.constant 32 : index
    %416 = vector.load %arg7[%c16_142, %c32_143] : memref<32x128xf32, #tpu.memory_space<vmem>>, vector<8x32xf32>
    tpu.vector_store %arg7[%c16_142, %c32_143], %396 {strides = array<i32>} : memref<32x128xf32, #tpu.memory_space<vmem>>, vector<8x32xf32>,
    %c16_144 = arith.constant 16 : index
    %c64_145 = arith.constant 64 : index
    %417 = vector.load %arg7[%c16_144, %c64_145] : memref<32x128xf32, #tpu.memory_space<vmem>>, vector<8x2xf32>
    tpu.vector_store %arg7[%c16_144, %c64_145], %414 {strides = array<i32>} : memref<32x128xf32, #tpu.memory_space<vmem>>, vector<8x2xf32>,
    %c0_146 = arith.constant 0 : index
    %c0_147 = arith.constant 0 : index
    %418 = vector.load %arg9[%c0_146, %c0_147] : memref<8x128xf32, #tpu.memory_space<vmem>>, vector<8x32xf32>
    tpu.vector_store %arg9[%c0_146, %c0_147], %389 {strides = array<i32>} : memref<8x128xf32, #tpu.memory_space<vmem>>, vector<8x32xf32>,
    %c0_148 = arith.constant 0 : index
    %c32_149 = arith.constant 32 : index
    %419 = vector.load %arg9[%c0_148, %c32_149] : memref<8x128xf32, #tpu.memory_space<vmem>>, vector<8x32xf32>
    tpu.vector_store %arg9[%c0_148, %c32_149], %396 {strides = array<i32>} : memref<8x128xf32, #tpu.memory_space<vmem>>, vector<8x32xf32>,
    %c24 = arith.constant 24 : index
    %c0_150 = arith.constant 0 : index
    %420 = vector.load %arg8[%c24, %c0_150] : memref<32x192xf32, #tpu.memory_space<vmem>>, vector<8x192xf32>
    %c24_151 = arith.constant 24 : index
    %c0_152 = arith.constant 0 : index
    %421 = vector.load %arg2[%c24_151, %c0_152] : memref<32x4xf32, #tpu.memory_space<vmem>>, vector<8x4xf32>
    %422 = vector.shape_cast %411 : vector<8x1xf32> to vector<8x1xf32>
    %423 = vector.broadcast %422 : vector<8x1xf32> to vector<8x32xf32>
    %cst_153 = arith.constant 0.000000e+00 : f32
    %424 = vector.broadcast %cst_153 : f32 to vector<8x32xf32>
    %425 = arith.cmpf oeq, %423, %424 : vector<8x32xf32>
    %cst_154 = arith.constant 0.000000e+00 : f32
    %426 = vector.broadcast %cst_154 : f32 to vector<8x32xf32>
    %427 = arith.cmpf ogt, %423, %426 : vector<8x32xf32>
    %cst_155 = arith.constant 1.000000e+00 : f32
    %428 = vector.broadcast %cst_155 : f32 to vector<8x32xf32>
    %429 = arith.cmpf oeq, %423, %428 : vector<8x32xf32>
    %cst_156 = arith.constant 1.000000e+00 : f32
    %430 = vector.broadcast %cst_156 : f32 to vector<8x32xf32>
    %431 = arith.cmpf ogt, %423, %430 : vector<8x32xf32>
    %cst_157 = arith.constant 1.000000e+00 : f32
    %432 = vector.broadcast %cst_157 : f32 to vector<8x32xf32>
    %433 = arith.cmpf oge, %423, %432 : vector<8x32xf32>
    %cst_158 = arith.constant 2.000000e+00 : f32
    %434 = vector.broadcast %cst_158 : f32 to vector<8x32xf32>
    %435 = arith.cmpf ogt, %423, %434 : vector<8x32xf32>
    %436 = vector.extract_strided_slice %420 {offsets = [0, 0], sizes = [8, 128], strides = [1, 1]} : vector<8x192xf32> to vector<8x128xf32>
    %c0_159 = arith.constant 0 : index
    %c0_160 = arith.constant 0 : index
    %437 = vector.load %arg9[%c0_159, %c0_160] : memref<8x128xf32, #tpu.memory_space<vmem>>, vector<8x128xf32>
    %c0_161 = arith.constant 0 : index
    %c0_162 = arith.constant 0 : index
    %438 = vector.load %arg4[%c0_161, %c0_162] : memref<128x128xf32, #tpu.memory_space<vmem>>, vector<128x128xf32>
    %cst_163 = arith.constant dense<0.000000e+00> : vector<8x128xf32>
    %439 = tpu.matmul %437, %438, %cst_163 {dimension_numbers = #tpu.dot_dimension_numbers<[1], [0], [0], [1], [0, 0, 1, 1], [], []>} : vector<8x128xf32>, vector<128x128xf32>, vector<8x128xf32> -> vector<8x128xf32>
    %440 = arith.addf %436, %439 : vector<8x128xf32>
    %441 = vector.extract_strided_slice %440 {offsets = [0, 0], sizes = [8, 32], strides = [1, 1]} : vector<8x128xf32> to vector<8x32xf32>
    %442 = vector.extract_strided_slice %440 {offsets = [0, 32], sizes = [8, 32], strides = [1, 1]} : vector<8x128xf32> to vector<8x32xf32>
    %443 = vector.extract_strided_slice %440 {offsets = [0, 64], sizes = [8, 32], strides = [1, 1]} : vector<8x128xf32> to vector<8x32xf32>
    %444 = arith.select %431, %389, %7 : vector<8x32xi1>, vector<8x32xf32>
    %445 = arith.select %429, %441, %444 : vector<8x32xi1>, vector<8x32xf32>
    %446 = arith.select %427, %389, %7 : vector<8x32xi1>, vector<8x32xf32>
    %447 = arith.select %425, %442, %446 : vector<8x32xi1>, vector<8x32xf32>
    %448 = arith.select %433, %389, %7 : vector<8x32xi1>, vector<8x32xf32>
    %449 = arith.select %435, %389, %7 : vector<8x32xi1>, vector<8x32xf32>
    %c0_164 = arith.constant 0 : index
    %c64_165 = arith.constant 64 : index
    %450 = vector.load %arg9[%c0_164, %c64_165] : memref<8x128xf32, #tpu.memory_space<vmem>>, vector<8x32xf32>
    tpu.vector_store %arg9[%c0_164, %c64_165], %445 {strides = array<i32>} : memref<8x128xf32, #tpu.memory_space<vmem>>, vector<8x32xf32>,
    %c0_166 = arith.constant 0 : index
    %c96_167 = arith.constant 96 : index
    %451 = vector.load %arg9[%c0_166, %c96_167] : memref<8x128xf32, #tpu.memory_space<vmem>>, vector<8x32xf32>
    tpu.vector_store %arg9[%c0_166, %c96_167], %447 {strides = array<i32>} : memref<8x128xf32, #tpu.memory_space<vmem>>, vector<8x32xf32>,
    %452 = vector.extract_strided_slice %420 {offsets = [0, 128], sizes = [8, 64], strides = [1, 1]} : vector<8x192xf32> to vector<8x64xf32>
    %c0_168 = arith.constant 0 : index
    %c0_169 = arith.constant 0 : index
    %453 = vector.load %arg9[%c0_168, %c0_169] : memref<8x128xf32, #tpu.memory_space<vmem>>, vector<8x128xf32>
    %c0_170 = arith.constant 0 : index
    %c0_171 = arith.constant 0 : index
    %454 = vector.load %arg5[%c0_170, %c0_171] : memref<128x64xf32, #tpu.memory_space<vmem>>, vector<128x64xf32>
    %cst_172 = arith.constant dense<0.000000e+00> : vector<8x64xf32>
    %455 = tpu.matmul %453, %454, %cst_172 {dimension_numbers = #tpu.dot_dimension_numbers<[1], [0], [0], [1], [0, 0, 1, 1], [], []>} : vector<8x128xf32>, vector<128x64xf32>, vector<8x64xf32> -> vector<8x64xf32>
    %456 = arith.addf %452, %455 : vector<8x64xf32>
    %457 = vector.extract_strided_slice %456 {offsets = [0, 0], sizes = [8, 32], strides = [1, 1]} : vector<8x64xf32> to vector<8x32xf32>
    %458 = vector.extract_strided_slice %456 {offsets = [0, 32], sizes = [8, 32], strides = [1, 1]} : vector<8x64xf32> to vector<8x32xf32>
    %459 = arith.select %431, %396, %7 : vector<8x32xi1>, vector<8x32xf32>
    %460 = arith.select %429, %457, %459 : vector<8x32xi1>, vector<8x32xf32>
    %461 = arith.select %431, %396, %7 : vector<8x32xi1>, vector<8x32xf32>
    %462 = arith.select %429, %443, %461 : vector<8x32xi1>, vector<8x32xf32>
    %463 = arith.select %427, %396, %7 : vector<8x32xi1>, vector<8x32xf32>
    %464 = arith.select %425, %458, %463 : vector<8x32xi1>, vector<8x32xf32>
    %465 = arith.select %435, %396, %7 : vector<8x32xi1>, vector<8x32xf32>
    %466 = tpu.concatenate %447, %464, %448, %462 in 1 : vector<8x32xf32>, vector<8x32xf32>, vector<8x32xf32>, vector<8x32xf32> -> vector<8x128xf32>
    %c0_173 = arith.constant 0 : index
    %c0_174 = arith.constant 0 : index
    %467 = vector.load %arg6[%c0_173, %c0_174] : memref<128x4xf32, #tpu.memory_space<vmem>>, vector<128x4xf32>
    %cst_175 = arith.constant dense<0.000000e+00> : vector<8x4xf32>
    %468 = tpu.matmul %466, %467, %cst_175 {dimension_numbers = #tpu.dot_dimension_numbers<[1], [0], [0], [1], [0, 0, 1, 1], [], []>} : vector<8x128xf32>, vector<128x4xf32>, vector<8x4xf32> -> vector<8x4xf32>
    %469 = arith.negf %468 : vector<8x4xf32>
    %470 = math.exp %469 : vector<8x4xf32>
    %cst_176 = arith.constant 1.000000e+00 : f32
    %471 = vector.broadcast %cst_176 : f32 to vector<8x4xf32>
    %472 = arith.addf %471, %470 : vector<8x4xf32>
    %473 = arith.divf %471, %472 : vector<8x4xf32>
    %474 = arith.addf %473, %421 : vector<8x4xf32>
    %cst_177 = arith.constant 1.000000e+00 : f32
    %475 = vector.broadcast %cst_177 : f32 to vector<8x4xf32>
    %476 = arith.mulf %474, %475 : vector<8x4xf32>
    %cst_178 = arith.constant dense<0xFF800000> : vector<8xf32>
    %477 = vector.multi_reduction <maximumf>, %476, %cst_178 [1] : vector<8x4xf32> to vector<8xf32>
    %cst_179 = arith.constant 0xFF800000 : f32
    %478 = vector.broadcast %cst_179 : f32 to vector<8xf32>
    %479 = arith.maximumf %478, %477 : vector<8xf32>
    %480 = vector.shape_cast %479 : vector<8xf32> to vector<8x1xf32>
    %481 = vector.broadcast %480 : vector<8x1xf32> to vector<8x4xf32>
    %482 = arith.subf %476, %481 : vector<8x4xf32>
    %483 = math.exp %482 : vector<8x4xf32>
    %cst_180 = arith.constant dense<0.000000e+00> : vector<8xf32>
    %484 = vector.multi_reduction <add>, %483, %cst_180 [1] : vector<8x4xf32> to vector<8xf32>
    %485 = vector.shape_cast %484 : vector<8xf32> to vector<8x1xf32>
    %486 = vector.broadcast %485 : vector<8x1xf32> to vector<8x4xf32>
    %487 = arith.divf %483, %486 : vector<8x4xf32>
    %cst_181 = arith.constant 0.000000e+00 : f32
    %488 = vector.broadcast %cst_181 : f32 to vector<8x1xf32>
    %489 = arith.cmpf one, %411, %488 : vector<8x1xf32>
    %490 = arith.extui %489 : vector<8x1xi1> to vector<8x1xi32>
    %491 = arith.sitofp %490 : vector<8x1xi32> to vector<8x1xf32>
    %cst_182 = arith.constant 1.000000e+00 : f32
    %492 = vector.broadcast %cst_182 : f32 to vector<8x1xf32>
    %493 = arith.cmpf one, %411, %492 : vector<8x1xf32>
    %494 = arith.extui %493 : vector<8x1xi1> to vector<8x1xi32>
    %495 = arith.sitofp %494 : vector<8x1xi32> to vector<8x1xf32>
    %496 = arith.mulf %491, %495 : vector<8x1xf32>
    %497 = tpu.concatenate %491, %496, %495, %491 in 1 : vector<8x1xf32>, vector<8x1xf32>, vector<8x1xf32>, vector<8x1xf32> -> vector<8x4xf32>
    %498 = arith.mulf %497, %487 : vector<8x4xf32>
    %499 = arith.mulf %498, %498 : vector<8x4xf32>
    %cst_183 = arith.constant dense<0.000000e+00> : vector<8xf32>
    %500 = vector.multi_reduction <add>, %499, %cst_183 [1] : vector<8x4xf32> to vector<8xf32>
    %501 = vector.shape_cast %500 : vector<8xf32> to vector<8x1xf32>
    %cst_184 = arith.constant 1.000000e-24 : f32
    %502 = vector.broadcast %cst_184 : f32 to vector<8x1xf32>
    %503 = arith.maximumf %501, %502 : vector<8x1xf32>
    %504 = math.rsqrt %503 : vector<8x1xf32>
    %505 = vector.broadcast %504 : vector<8x1xf32> to vector<8x4xf32>
    %506 = arith.mulf %498, %505 : vector<8x4xf32>
    %507 = vector.extract_strided_slice %506 {offsets = [0, 0], sizes = [8, 1], strides = [1, 1]} : vector<8x4xf32> to vector<8x1xf32>
    %508 = vector.extract_strided_slice %506 {offsets = [0, 1], sizes = [8, 1], strides = [1, 1]} : vector<8x4xf32> to vector<8x1xf32>
    %509 = vector.extract_strided_slice %506 {offsets = [0, 2], sizes = [8, 1], strides = [1, 1]} : vector<8x4xf32> to vector<8x1xf32>
    %510 = vector.extract_strided_slice %506 {offsets = [0, 3], sizes = [8, 1], strides = [1, 1]} : vector<8x4xf32> to vector<8x1xf32>
    %511 = vector.shape_cast %507 : vector<8x1xf32> to vector<8x1xf32>
    %512 = vector.broadcast %511 : vector<8x1xf32> to vector<8x32xf32>
    %513 = vector.shape_cast %508 : vector<8x1xf32> to vector<8x1xf32>
    %514 = vector.broadcast %513 : vector<8x1xf32> to vector<8x32xf32>
    %515 = vector.shape_cast %509 : vector<8x1xf32> to vector<8x1xf32>
    %516 = vector.broadcast %515 : vector<8x1xf32> to vector<8x32xf32>
    %517 = vector.shape_cast %510 : vector<8x1xf32> to vector<8x1xf32>
    %518 = vector.broadcast %517 : vector<8x1xf32> to vector<8x32xf32>
    %519 = arith.mulf %512, %445 : vector<8x32xf32>
    %520 = arith.mulf %514, %449 : vector<8x32xf32>
    %521 = arith.addf %519, %520 : vector<8x32xf32>
    %522 = arith.mulf %516, %447 : vector<8x32xf32>
    %523 = arith.addf %521, %522 : vector<8x32xf32>
    %524 = arith.mulf %518, %448 : vector<8x32xf32>
    %525 = arith.addf %523, %524 : vector<8x32xf32>
    %526 = arith.mulf %512, %460 : vector<8x32xf32>
    %527 = arith.mulf %514, %465 : vector<8x32xf32>
    %528 = arith.addf %526, %527 : vector<8x32xf32>
    %529 = arith.mulf %516, %464 : vector<8x32xf32>
    %530 = arith.addf %528, %529 : vector<8x32xf32>
    %531 = arith.mulf %518, %462 : vector<8x32xf32>
    %532 = arith.addf %530, %531 : vector<8x32xf32>
    %533 = math.floor %507 : vector<8x1xf32>
    %534 = arith.mulf %533, %411 : vector<8x1xf32>
    %535 = math.floor %508 : vector<8x1xf32>
    %cst_185 = arith.constant 1.000000e+00 : f32
    %536 = vector.broadcast %cst_185 : f32 to vector<8x1xf32>
    %537 = arith.subf %411, %536 : vector<8x1xf32>
    %538 = arith.mulf %535, %537 : vector<8x1xf32>
    %539 = arith.addf %534, %538 : vector<8x1xf32>
    %540 = math.floor %509 : vector<8x1xf32>
    %cst_186 = arith.constant 1.000000e+00 : f32
    %541 = vector.broadcast %cst_186 : f32 to vector<8x1xf32>
    %542 = arith.addf %411, %541 : vector<8x1xf32>
    %543 = arith.mulf %540, %542 : vector<8x1xf32>
    %544 = arith.addf %539, %543 : vector<8x1xf32>
    %545 = math.floor %510 : vector<8x1xf32>
    %546 = arith.mulf %545, %411 : vector<8x1xf32>
    %547 = arith.addf %544, %546 : vector<8x1xf32>
    %548 = arith.addf %509, %510 : vector<8x1xf32>
    %549 = arith.addf %508, %510 : vector<8x1xf32>
    %550 = tpu.concatenate %548, %549 in 1 : vector<8x1xf32>, vector<8x1xf32> -> vector<8x2xf32>
    %c24_187 = arith.constant 24 : index
    %c0_188 = arith.constant 0 : index
    %551 = vector.load %arg7[%c24_187, %c0_188] : memref<32x128xf32, #tpu.memory_space<vmem>>, vector<8x32xf32>
    tpu.vector_store %arg7[%c24_187, %c0_188], %525 {strides = array<i32>} : memref<32x128xf32, #tpu.memory_space<vmem>>, vector<8x32xf32>,
    %c24_189 = arith.constant 24 : index
    %c32_190 = arith.constant 32 : index
    %552 = vector.load %arg7[%c24_189, %c32_190] : memref<32x128xf32, #tpu.memory_space<vmem>>, vector<8x32xf32>
    tpu.vector_store %arg7[%c24_189, %c32_190], %532 {strides = array<i32>} : memref<32x128xf32, #tpu.memory_space<vmem>>, vector<8x32xf32>,
    %c24_191 = arith.constant 24 : index
    %c64_192 = arith.constant 64 : index
    %553 = vector.load %arg7[%c24_191, %c64_192] : memref<32x128xf32, #tpu.memory_space<vmem>>, vector<8x2xf32>
    tpu.vector_store %arg7[%c24_191, %c64_192], %550 {strides = array<i32>} : memref<32x128xf32, #tpu.memory_space<vmem>>, vector<8x2xf32>,
    %c0_193 = arith.constant 0 : index
    %c0_194 = arith.constant 0 : index
    %554 = vector.load %arg9[%c0_193, %c0_194] : memref<8x128xf32, #tpu.memory_space<vmem>>, vector<8x32xf32>
    tpu.vector_store %arg9[%c0_193, %c0_194], %525 {strides = array<i32>} : memref<8x128xf32, #tpu.memory_space<vmem>>, vector<8x32xf32>,
    %c0_195 = arith.constant 0 : index
    %c32_196 = arith.constant 32 : index
    %555 = vector.load %arg9[%c0_195, %c32_196] : memref<8x128xf32, #tpu.memory_space<vmem>>, vector<8x32xf32>
    tpu.vector_store %arg9[%c0_195, %c32_196], %532 {strides = array<i32>} : memref<8x128xf32, #tpu.memory_space<vmem>>, vector<8x32xf32>,
    %c0_197 = arith.constant 0 : index
    %c0_198 = arith.constant 0 : index
    %556 = vector.load %arg10[%c0_197, %c0_198] : memref<8x1xf32, #tpu.memory_space<vmem>>, vector<8x1xf32>
    tpu.vector_store %arg10[%c0_197, %c0_198], %547 {strides = array<i32>} : memref<8x1xf32, #tpu.memory_space<vmem>>, vector<8x1xf32>,
    return
  }
  func.func @transform_0(%arg0: i32) -> (i32, i32) {
    %c0_i32 = arith.constant 0 : i32
    %c0_i32_0 = arith.constant 0 : i32
    return %arg0, %c0_i32 : i32, i32
  }
  func.func @transform_1(%arg0: i32) -> (i32, i32) {
    %c0_i32 = arith.constant 0 : i32
    %c0_i32_0 = arith.constant 0 : i32
    return %arg0, %c0_i32 : i32, i32
  }
  func.func @transform_2(%arg0: i32) -> (i32, i32) {
    %c0_i32 = arith.constant 0 : i32
    %c0_i32_0 = arith.constant 0 : i32
    %c0_i32_1 = arith.constant 0 : i32
    return %c0_i32, %c0_i32_0 : i32, i32
  }
  func.func @transform_3(%arg0: i32) -> (i32, i32) {
    %c0_i32 = arith.constant 0 : i32
    %c0_i32_0 = arith.constant 0 : i32
    %c0_i32_1 = arith.constant 0 : i32
    return %c0_i32, %c0_i32_0 : i32, i32
  }
  func.func @transform_4(%arg0: i32) -> (i32, i32) {
    %c0_i32 = arith.constant 0 : i32
    %c0_i32_0 = arith.constant 0 : i32
    %c0_i32_1 = arith.constant 0 : i32
    return %c0_i32, %c0_i32_0 : i32, i32
  }
  func.func @transform_5(%arg0: i32) -> (i32, i32) {
    %c0_i32 = arith.constant 0 : i32
    %c0_i32_0 = arith.constant 0 : i32
    %c0_i32_1 = arith.constant 0 : i32
    return %c0_i32, %c0_i32_0 : i32, i32
  }
  func.func @transform_6(%arg0: i32) -> (i32, i32) {
    %c0_i32 = arith.constant 0 : i32
    %c0_i32_0 = arith.constant 0 : i32
    return %arg0, %c0_i32 : i32, i32
  }
}

</mosaic_0001>

<bundles_post_ra>
// kernel: lcrnn_forward.1
= control target key start
LH: loop header
LB: loop body
LE: loop exit
PB: predicated region body
PF: predicated region fallthrough
CT: control target
= control target key end

     0   :  { %s3479_s21 = smov 0   ;;  %s4715_s0 = inlined_call_operand.vmem [shape: f32[64,32], index: 0, kind: input, shape index: {}]   ;;  %s4716_s1 = inlined_call_operand.vmem [shape: f32[64,4], index: 1, kind: input, shape index: {}]   ;;  %s4717_s2 = inlined_call_operand.vmem [shape: f32[32,192], index: 2, kind: input, shape index: {}]   ;;  %s4718_s3 = inlined_call_operand.vmem [shape: f32[128,128], index: 3, kind: input, shape index: {}]   ;;  %s4719_s4 = inlined_call_operand.vmem [shape: f32[128,64], index: 4, kind: input, shape index: {}]   ;;  %s4720_s5 = inlined_call_operand.vmem [shape: f32[128,4], index: 5, kind: input, shape index: {}]   ;;  %s4721_s6 = inlined_call_operand.vmem [shape: f32[64,128], index: 6, kind: output, shape index: {}]  }
   0x1 LB: > { %s2381_s22 = sadd.s32 4294967295, %s3425_s21   ;;  %p2385_p0 = scmp.ge.s32.totalorder %s3425_s21, 1  ;;  %s3425_s21 = sphi %s3479_s21, %s16_s21  }
   0x2   : > { %p224_p1 = scmp.lt.s32.totalorder %s3425_s21, 3 }
   0x4   : > { %p225_p2 = pnand %p2385_p0, %p224_p1 }
   0x5   : > { %s2386_s23 = sshll.u32 (!%p225_p2), %s2381_s22, 2  ;;  %p2392_p4 = scmp.ne.s32.totalorder (!%p225_p2), %s2381_s22, 0 }
   0x6   : > { %228 = sbr.rel (%p225_p2) target bundleno = 7107 (0x1bc3), region = 44  ;;  %p260_p3 = scmp.lt.s32.totalorder (!%p225_p2), %s2386_s23, 7 }
   0xd   : > { %s4723_s23 = smov (!%p260_p3, %s2386_s23), 7  ;;  %280 = sbr.rel (%p2392_p4) target bundleno = 20 (0x14), region = 48 }
   0xe   : > { %s2387_s24 = sshll.u32 %s4723_s23, 3  ;;  %vm282_vm0 = vcmask (!%p2392_p4), 7168   ;;  %v3427_v0 = vmov (!%p2392_p4), 0.0  }
   0xf   : > { %s3490_s27 = scalar_lea.vmem %s4715_s0, %s2387_s24  ;;  %s3495_s30 = scalar_lea.vmem %s4716_s1, %s2387_s24  ;;  %281 = vst [vmem:[#allocation3] sm:$0xff] (!%p2392_p4), %v3427_v0  ;;  %283 = vst.msk [vmem:[#allocation4] sm:$0xff] (!%p2392_p4), %vm282_vm0, %v3427_v0 }
  0x10   : > { %s3500_s9 = scalar_lea.vmem %s4721_s6, %s2387_s24 }
  0x14 PF: > { %v423_v2 = vld [vmem:[%s4718_s3] sm:$0xff]  ;;  %v424_v3 = vld [vmem:[%s4718_s3 + $0x8] sm:$0xff]  ;;  %v3428_v4 = vmov 0   ;;  %v3429_v5 = vmov 0.0|0.0   ;;  %v425_v7 = vld [vmem:[%s4718_s3 + $0x10] sm:$0xff]  ;;  %v3430_v9 = vmov 0.0  }
  0x15   : > { %3360 = vset.pattern.permute.xlu0 %v3428_v4  ;;  %3047 = vmatprep.subr.bf16.mxu1 %v3429_v5  ;;  %v3512_v6 = vpack.c.bf16 %v424_v3, %v423_v2  ;;  %v426_v8 = vld [vmem:[%s4718_s3 + $0x18] sm:$0xff]  ;;  %v289_v11 = vld [vmem:[%s4717_s2 + $0x8] sm:$0xff]  ;;  %v288_v13 = vld [vmem:[%s4717_s2] sm:$0xff]  ;;  %vm3431_vm1 = vmmov 0   ;;  %vm296_vm2 = vcmask 261120   ;;  %s3432_s18 = smov 32  }
  0x16   : > { %v3502_v1 = vld [vmem:[#allocation4] sm:$0xff]  ;;  %373 = vmatprep.mubr.f32.mxu0 %v3430_v9  ;;  %v3523_v10 = vpack.c.bf16 %v426_v8, %v425_v7  ;;  %v291_v12 = vld [vmem:[%s4717_s2 + $0x18] sm:$0xff]  ;;  %2651 = vmatprep.mubr.msk.f32.mxu1 %vm3431_vm1, %v3430_v9  ;;  %v427_v14 = vld [vmem:[%s4718_s3 + $0x20] sm:$0xff]  ;;  %s3433_s11 = smov 64   ;;  %vm399_vm6 = vcmask 523264   ;;  %s3434_s10 = smov 96  }
  0x17   : > { %414 = vperm.xlu0 %3360, %v3502_v1   ;;  %3049 = vmatpush3.bf16.msra.mxu1 %v3512_v6  ;;  %v428_v15 = vld [vmem:[%s4718_s3 + $0x28] sm:$0xff]  ;;  %v3039_v16 = vpack.c.bf16 %v291_v12, %v289_v11  ;;  %v290_v17 = vld [vmem:[%s4717_s2 + $0x10] sm:$0xff]  ;;  %v295_v20 = vld [vmem:[%s4717_s2 + $0x38] sm:$0xff]  ;;  %vm524_vm9 = vcmask 785920   ;;  %vm530_vm10 = vcmask 1048320   ;;  %vm643_vm11 = vcmask 785408  }
  0x18   : > { %3050 = vmatprep.subr.bf16.mxu1 %v3429_v5  ;;  %3365 = vset.pattern.permute.xlu1 %v3428_v4  ;;  %v3041_v18 = vpack.c.bf16 %v290_v17, %v288_v13  ;;  %v293_v19 = vld [vmem:[%s4717_s2 + $0x28] sm:$0xff]  ;;  %v292_v21 = vld [vmem:[%s4717_s2 + $0x20] sm:$0xff]  ;;  %v294_v23 = vld [vmem:[%s4717_s2 + $0x30] sm:$0xff]  ;;  %v3560_v24 = vpack.c.bf16 %v428_v15, %v427_v14  ;;  %vm738_vm12 = vcmask 31744   ;;  %vm750_vm13 = vcmp.ne.f32.partialorder %v3502_v1, 0.0  ;;  %s3435_s7 = smov 1  }
  0x19   : > { %3040 = vmatprep.subr.bf16.mxu0 %v3039_v16  ;;  %v3043_v22 = vpack.c.bf16 %v295_v20, %v293_v19  ;;  %v3045_v25 = vpack.c.bf16 %v294_v23, %v292_v21  ;;  %v429_v26 = vld [vmem:[%s4718_s3 + $0x30] sm:$0xff]  ;;  %v430_v27 = vld [vmem:[%s4718_s3 + $0x38] sm:$0xff]  ;;  %v284_v29 = vld [vmem:[%s3490_s27] sm:$0xff]  ;;  %vm753_vm14 = vcmp.ne.f32.partialorder %v3502_v1, 1.0  ;;  %s3436_s8 = smov 3   ;;  %s3437_s12 = smov 2  }
  0x1a   : > { %3042 = vmatpush1.bf16.msra.mxu0 %v3041_v18  ;;  %v3570_v28 = vpack.c.bf16 %v430_v27, %v429_v26  ;;  %v431_v30 = vld [vmem:[%s4718_s3 + $0x40] sm:$0xff]  ;;  %v432_v31 = vld [vmem:[%s4718_s3 + $0x48] sm:$0xff]  ;;  %v433_v33 = vld [vmem:[%s4718_s3 + $0x50] sm:$0xff]  ;;  %vm769_vm15 = vcmask 7168   ;;  %vm771_vm0 = vcmask 15360   ;;  %s3441_s13 = smov 127  }
  0x1b   : > { %3052 = vmatpush3.bf16.msra.mxu1 %v3523_v10  ;;  %3044 = vmatprep.subr.bf16.mxu0 %v3043_v22  ;;  %v3583_v32 = vpack.c.bf16 %v432_v31, %v431_v30  ;;  %v434_v34 = vld [vmem:[%s4718_s3 + $0x58] sm:$0xff]  ;;  %v435_v36 = vld [vmem:[%s4718_s3 + $0x60] sm:$0xff]  ;;  %v436_v37 = vld [vmem:[%s4718_s3 + $0x68] sm:$0xff]  ;;  %s3443_s14 = smov 126  }
  0x1c   : > { %3053 = vmatprep.subr.bf16.mxu1 %v3429_v5  ;;  %v3594_v35 = vpack.c.bf16 %v434_v34, %v433_v33  ;;  %v3604_v38 = vpack.c.bf16 %v436_v37, %v435_v36  ;;  %v437_v39 = vld [vmem:[%s4718_s3 + $0x70] sm:$0xff]  ;;  %v438_v40 = vld [vmem:[%s4718_s3 + $0x78] sm:$0xff]  ;;  %v3618_v42 = vld [vmem:[#allocation3] sm:$0xff] }
  0x1d   : > { %v3614_v41 = vpack.c.bf16 %v438_v40, %v437_v39  ;;  %v533_v46 = vld [vmem:[%s4719_s4] sm:$0xff]  ;;  %v534_v47 = vld [vmem:[%s4719_s4 + $0x8] sm:$0xff]  ;;  %v535_v48 = vld [vmem:[%s4719_s4 + $0x10] sm:$0xff] }
  0x1e   : > { %3046 = vmatpush1.bf16.msra.mxu0 %v3045_v25  ;;  %v3645_v49 = vpack.c.bf16 %v534_v47, %v533_v46  ;;  %v536_v50 = vld [vmem:[%s4719_s4 + $0x18] sm:$0xff]  ;;  %v285_v52 = vld [vmem:[%s3490_s27 + $0x8] sm:$0xff]  ;;  %v537_v53 = vld [vmem:[%s4719_s4 + $0x20] sm:$0xff] }
  0x1f   : > { %3055 = vmatpush3.bf16.msra.mxu1 %v3560_v24  ;;  %3071 = vmatprep.subr.bf16.mxu0 %v3429_v5  ;;  %v3654_v51 = vpack.c.bf16 %v536_v50, %v535_v48  ;;  %v538_v54 = vld [vmem:[%s4719_s4 + $0x28] sm:$0xff]  ;;  %v539_v57 = vld [vmem:[%s4719_s4 + $0x30] sm:$0xff]  ;;  %v540_v58 = vld [vmem:[%s4719_s4 + $0x38] sm:$0xff] }
  0x20   : > { %3056 = vmatprep.subr.bf16.mxu1 %v3429_v5  ;;  %v3672_v56 = vpack.c.bf16 %v538_v54, %v537_v53  ;;  %v3682_v59 = vpack.c.bf16 %v540_v58, %v539_v57  ;;  %v541_v60 = vld [vmem:[%s4719_s4 + $0x40] sm:$0xff]  ;;  %v542_v61 = vld [vmem:[%s4719_s4 + $0x48] sm:$0xff]  ;;  %v543_v2 = vld [vmem:[%s4719_s4 + $0x50] sm:$0xff] }
  0x21   : > { %2393 = vmatmul.mubr.msk.f32.vlgmr.msra.gmra.mrb[0].mxu0 %vm296_vm2, %v284_v29  ;;  %v3692_v62 = vpack.c.bf16 %v542_v61, %v541_v60  ;;  %v544_v3 = vld [vmem:[%s4719_s4 + $0x58] sm:$0xff]  ;;  %v286_v8 = vld [vmem:[%s3490_s27 + $0x10] sm:$0xff]  ;;  %v545_v11 = vld [vmem:[%s4719_s4 + $0x60] sm:$0xff] }
  0x22   : > { %379 = vmatprep.mubr.f32.mxu0 %v3430_v9  ;;  %3073 = vmatpush3.bf16.msra.mxu0 %v3645_v49  ;;  %v3704_v7 = vpack.c.bf16 %v544_v3, %v543_v2  ;;  %v546_v12 = vld [vmem:[%s4719_s4 + $0x68] sm:$0xff]  ;;  %v287_v14 = vld [vmem:[%s3490_s27 + $0x18] sm:$0xff]  ;;  %v547_v15 = vld [vmem:[%s4719_s4 + $0x70] sm:$0xff]  ;;  %s3442_s27 = smov 125  }
  0x23   : > { %3058 = vmatpush3.bf16.msra.mxu1 %v3570_v28  ;;  %3074 = vmatprep.subr.bf16.mxu0 %v3429_v5  ;;  %v3716_v13 = vpack.c.bf16 %v546_v12, %v545_v11  ;;  %v548_v16 = vld [vmem:[%s4719_s4 + $0x78] sm:$0xff]  ;;  %v645_v22 = vld [vmem:[%s4720_s5] sm:$0xff]  ;;  %v646_v23 = vld [vmem:[%s4720_s5 + $0x8] sm:$0xff] }
  0x24   : > { %3059 = vmatprep.subr.bf16.mxu1 %v3429_v5  ;;  %v3729_v17 = vpack.c.bf16 %v548_v16, %v547_v15  ;;  %v647_v25 = vld [vmem:[%s4720_s5 + $0x10] sm:$0xff]  ;;  %v3752_v27 = vpack.c.bf16 %v646_v23, %v645_v22  ;;  %v648_v29 = vld [vmem:[%s4720_s5 + $0x18] sm:$0xff]  ;;  %v649_v33 = vld [vmem:[%s4720_s5 + $0x20] sm:$0xff] }
  0x25   : > { %2394 = vmatmul.mubr.msk.f32.gmra.mrb[2].mxu0 %vm296_vm2, %v285_v52  ;;  %v3759_v30 = vpack.c.bf16 %v648_v29, %v647_v25  ;;  %v650_v34 = vld [vmem:[%s4720_s5 + $0x28] sm:$0xff]  ;;  %v651_v37 = vld [vmem:[%s4720_s5 + $0x30] sm:$0xff]  ;;  %v652_v39 = vld [vmem:[%s4720_s5 + $0x38] sm:$0xff] }
  0x26   : > { %385 = vmatprep.mubr.f32.mxu0 %v3430_v9  ;;  %3076 = vmatpush3.bf16.msra.mxu0 %v3654_v51  ;;  %v3775_v36 = vpack.c.bf16 %v650_v34, %v649_v33  ;;  %v3787_v46 = vpack.c.bf16 %v652_v39, %v651_v37  ;;  %v653_v48 = vld [vmem:[%s4720_s5 + $0x40] sm:$0xff]  ;;  %v654_v50 = vld [vmem:[%s4720_s5 + $0x48] sm:$0xff]  ;;  %v655_v53 = vld [vmem:[%s4720_s5 + $0x50] sm:$0xff] }
  0x27   : > { %3061 = vmatpush3.bf16.msra.mxu1 %v3583_v32  ;;  %3077 = vmatprep.subr.bf16.mxu0 %v3429_v5  ;;  %v3804_v52 = vpack.c.bf16 %v654_v50, %v653_v48  ;;  %v656_v54 = vld [vmem:[%s4720_s5 + $0x58] sm:$0xff] }
  0x28   : > { %3062 = vmatprep.subr.bf16.mxu1 %v3429_v5  ;;  %v3814_v57 = vpack.c.bf16 %v656_v54, %v655_v53  ;;  %v660_v2 = vld [vmem:[%s4720_s5 + $0x78] sm:$0xff] }
  0x29   : > { %2395 = vmatmul.mubr.msk.f32.gmra.mrb[4].mxu0 %vm296_vm2, %v286_v8 }
  0x2a   : > { %3079 = vmatpush3.bf16.msra.mxu0 %v3672_v56  ;;  %391 = vmatprep.mubr.f32.mxu0 %v3430_v9 }
  0x2b   : > { %3064 = vmatpush3.bf16.msra.mxu1 %v3594_v35  ;;  %3080 = vmatprep.subr.bf16.mxu0 %v3429_v5 }
  0x2c   : > { %3065 = vmatprep.subr.bf16.mxu1 %v3429_v5 }
  0x2d   : > { %2396 = vmatmul.mubr.msk.f32.gmra.mrb[6].mxu0 %vm296_vm2, %v287_v14 }
  0x2e   : > { %3082 = vmatpush3.bf16.msra.mxu0 %v3682_v59  ;;  %2686 = vmatprep.mubr.msk.f32.mxu0 %vm3431_vm1, %v3430_v9 }
  0x2f   : > { %3067 = vmatpush3.bf16.msra.mxu1 %v3604_v38  ;;  %3083 = vmatprep.subr.bf16.mxu0 %v3429_v5 }
  0x30   : > { %3068 = vmatprep.subr.bf16.mxu1 %v3429_v5 }
  0x32   : > { %3085 = vmatpush3.bf16.msra.mxu0 %v3692_v62 }
  0x33   : > { %3070 = vmatpush3.bf16.msra.mxu1 %v3614_v41  ;;  %3086 = vmatprep.subr.bf16.mxu0 %v3429_v5 }
  0x34   : > { %3095 = vmatprep.subr.bf16.mxu1 %v3429_v5 }
  0x36   : > { %2652 = vmatmul.mubr.f32.vlgmr.msra.gmra.mrb[0].mxu1 %v3618_v42  ;;  %3088 = vmatpush3.bf16.msra.mxu0 %v3704_v7 }
  0x37   : > { %2721 = vmatprep.mubr.msk.f32.mxu1 %vm3431_vm1, %v3430_v9  ;;  %3089 = vmatprep.subr.bf16.mxu0 %v3429_v5 }
  0x38   : > { %3097 = vmatpush3.bf16.msra.mxu1 %v3752_v27 }
  0x39   : > { %3098 = vmatprep.subr.bf16.mxu1 %v3429_v5 }
  0x3a   : > { %3091 = vmatpush3.bf16.msra.mxu0 %v3716_v13 }
  0x3b   : > { %3092 = vmatprep.subr.bf16.mxu0 %v3429_v5 }
  0x3c   : > { %3100 = vmatpush3.bf16.msra.mxu1 %v3759_v30 }
  0x3d   : > { %3101 = vmatprep.subr.bf16.mxu1 %v3429_v5 }
  0x3e   : > { %3094 = vmatpush3.bf16.msra.mxu0 %v3729_v17 }
  0x3f   : > { %3119 = vmatprep.subr.bf16.mxu0 %v3429_v5 }
  0x40   : > { %3103 = vmatpush3.bf16.msra.mxu1 %v3775_v36 }
  0x41   : > { %3104 = vmatprep.subr.bf16.mxu1 %v3429_v5 }
  0x44   : > { %3106 = vmatpush3.bf16.msra.mxu1 %v3787_v46 }
  0x45   : > { %3107 = vmatprep.subr.bf16.mxu1 %v3429_v5 }
  0x48   : > { %3109 = vmatpush3.bf16.msra.mxu1 %v3804_v52 }
  0x49   : > { %3110 = vmatprep.subr.bf16.mxu1 %v3429_v5 }
  0x4c   : > { %3112 = vmatpush3.bf16.msra.mxu1 %v3814_v57 }
  0x4d   : > { %3113 = vmatprep.subr.bf16.mxu1 %v3429_v5 }
  0x96   : > { %v3624_v43 = vpop.permute.xlu0 %414 }
  0x97   : > { %vm418_vm3 = vcmp.gt.f32.partialorder %v3624_v43, 0.0  ;;  %vm420_vm4 = vcmp.gt.f32.partialorder %v3624_v43, 1.0  ;;  %vm421_vm5 = vcmp.ge.f32.partialorder %v3624_v43, 1.0  ;;  %vm419_vm7 = vcmp.eq.f32.partialorder %v3624_v43, 1.0 }
  0x98   : > { %v3629_v44 = vsel %vm418_vm3, %v3618_v42, 0.0  ;;  %v3634_v45 = vsel %vm420_vm4, %v3618_v42, 0.0  ;;  %v3667_v55 = vsel %vm421_vm5, %v3618_v42, 0.0  ;;  %vm417_vm8 = vcmp.eq.f32.partialorder %v3624_v43, 0.0 }
  0x99   : > { %514 = vrot.lane.b32.xlu0 %v3629_v44, %s3432_s18  ;;  %vm773_vm3 = vcmask 23552   ;;  %vm422_vm4 = vcmp.gt.f32.partialorder %v3624_v43, 2.0  ;;  %vm880_vm5 = vcmask 523520  }
  0x9d   : > { %625 = vrot.lane.b32.xlu0 %v3634_v45, %s3432_s18 }
  0xa1   : > { %634 = vrot.lane.b32.xlu0 %v3667_v55, %s3433_s11 }
  0xf4   : > { %v375_v63 = vpop.f32.mrb[0].mxu0 }
  0xf5   : > { %v377_v0 = vpop.f32.mrb[1].mxu0 }
  0xf6   : > { %400 = vst.msk [vmem:[#allocation2 + $0x8] sm:$0xff] %vm399_vm6, %v377_v0 }
  0xf8   : > { %v3818_v58 = vpop.f32.mrb[2].mxu0 }
  0xf9   : > { %v383_v60 = vpop.f32.mrb[3].mxu0 }
  0xfa   : > { %402 = vst.msk [vmem:[#allocation2 + $0x18] sm:$0xff] %vm399_vm6, %v383_v60 }
  0xfd   : > { %v410_v11 = vld [vmem:[#allocation2 + $0x8] sm:$0xff] }
 0x109   : > { %v505_v18 = vpop.f32.mrb[0].mxu1 }
 0x10a   : > { %v509_v19 = vadd.f32 %v505_v18, %v375_v63  ;;  %v2653_v20 = vpop.f32.mrb[1].mxu1 }
 0x10b   : > { %v515_v26 = vpop.permute.xlu0 %514 }
 0x10c   : > { %v3739_v21 = vsel %vm419_vm7, %v509_v19, %v3634_v45  ;;  %v3763_v31 = vsel %vm417_vm8, %v509_v19, %v515_v26 }
 0x10d   : > { %521 = vrot.lane.b32.xlu1 %v3739_v21, %s3433_s11 }
 0x10f   : > { %v626_v40 = vpop.permute.xlu0 %625 }
 0x110   : > { %v3791_v47 = vsel %vm419_vm7, %v509_v19, %v626_v40 }
 0x111   : > { %527 = vrot.lane.b32.xlu1 %v3763_v31, %s3433_s11 }
 0x113   : > { %v635_v18 = vpop.permute.xlu0 %634 }
 0x115   : > { %630 = vrot.lane.b32.xlu1 %v3763_v31, %s3434_s10 }
 0x119   : > { %638 = vrot.lane.b32.xlu1 %v3791_v47, %s3432_s18 }
 0x17f   : > { %v522_v61 = vpop.permute.xlu1 %521 }
 0x180   : > { %525 = vst.msk [vmem:[#allocation3] sm:$0xff] %vm524_vm9, %v522_v61 }
 0x183   : > { %v528_v63 = vpop.permute.xlu1 %527 }
 0x184   : > { %531 = vst.msk [vmem:[#allocation3] sm:$0xff] %vm530_vm10, %v528_v63 }
 0x187   : > { %v631_v8 = vpop.permute.xlu1 %630 }
 0x18b   : > { %v532_v0 = vld [vmem:[#allocation3] sm:$0xff]  ;;  %v639_v20 = vpop.permute.xlu1 %638 }
 0x18c   : > { %2687 = vmatmul.mubr.f32.vlgmr.msra.gmra.mrb[8].mxu0 %v532_v0 }
 0x18d   : > { %3121 = vmatpush3.bf16.msra.mxu0 %v3512_v6  ;;  %2756 = vmatprep.mubr.msk.f32.mxu0 %vm3431_vm1, %v3430_v9  ;;  %v3841_v6 = vpop.f32.mrb[4].mxu0 }
 0x18e   : > { %3122 = vmatprep.subr.bf16.mxu0 %v3429_v5 }
 0x191   : > { %3124 = vmatpush3.bf16.msra.mxu0 %v3523_v10  ;;  %v389_v10 = vpop.f32.mrb[5].mxu0 }
 0x192   : > { %3125 = vmatprep.subr.bf16.mxu0 %v3429_v5  ;;  %404 = vst.msk [vmem:[#allocation2 + $0x28] sm:$0xff] %vm399_vm6, %v389_v10 }
 0x195   : > { %3127 = vmatpush3.bf16.msra.mxu0 %v3560_v24  ;;  %v393_v24 = vpop.f32.mrb[6].mxu0 }
 0x196   : > { %3128 = vmatprep.subr.bf16.mxu0 %v3429_v5  ;;  %405 = vst [vmem:[#allocation2 + $0x30] sm:$0xff] %v393_v24 }
 0x199   : > { %3130 = vmatpush3.bf16.msra.mxu0 %v3570_v28  ;;  %v395_v28 = vpop.f32.mrb[7].mxu0 }
 0x19a   : > { %3131 = vmatprep.subr.bf16.mxu0 %v3429_v5  ;;  %406 = vst.msk [vmem:[#allocation2 + $0x38] sm:$0xff] %vm399_vm6, %v395_v28 }
 0x19d   : > { %3133 = vmatpush3.bf16.msra.mxu0 %v3583_v32  ;;  %v657_v32 = vld [vmem:[%s4720_s5 + $0x60] sm:$0xff] }
 0x19e   : > { %3134 = vmatprep.subr.bf16.mxu0 %v3429_v5 }
 0x1a1   : > { %3136 = vmatpush3.bf16.msra.mxu0 %v3594_v35  ;;  %v658_v35 = vld [vmem:[%s4720_s5 + $0x68] sm:$0xff] }
 0x1a2   : > { %3137 = vmatprep.subr.bf16.mxu0 %v3429_v5 }
 0x1a5   : > { %3139 = vmatpush3.bf16.msra.mxu0 %v3604_v38  ;;  %v3851_v38 = vpack.c.bf16 %v658_v35, %v657_v32  ;;  %v3438_v35 = vmov 1  }
 0x1a6   : > { %3140 = vmatprep.subr.bf16.mxu0 %v3429_v5  ;;  %3361 = vset.pattern.permute.xlu0 %v3438_v35 }
 0x1a7   : > { %3115 = vmatpush3.bf16.msra.mxu1 %v3851_v38 }
 0x1a8   : > { %3116 = vmatprep.subr.bf16.mxu1 %v3429_v5 }
 0x1a9   : > { %3142 = vmatpush3.bf16.msra.mxu0 %v3614_v41  ;;  %v659_v41 = vld [vmem:[%s4720_s5 + $0x70] sm:$0xff] }
 0x1aa   : > { %3167 = vmatprep.subr.bf16.mxu0 %v3429_v5  ;;  %v3861_v3 = vpack.c.bf16 %v660_v2, %v659_v41 }
 0x1ac   : > { %3118 = vmatpush3.bf16.msra.mxu1 %v3861_v3 }
 0x1ad   : > { %3143 = vmatprep.subr.bf16.mxu1 %v3429_v5 }
 0x25f   : > { %v615_v12 = vpop.f32.mrb[8].mxu0 }
 0x260   : > { %v3865_v14 = vadd.f32 %v615_v12, %v410_v11  ;;  %v2688_v15 = vpop.f32.mrb[9].mxu0  ;;  %v3439_v12 = vmov 2  }
 0x261   : > { %v3440_v15 = vmov 3  }
 0x262   : > { %v3871_v16 = vsel %vm417_vm8, %v3865_v14, %v3629_v44 }
 0x263   : > { %v641_v19 = vsel %vm296_vm2, %v631_v8, %v3871_v16 }
 0x264   : > { %v642_v22 = vsel %vm399_vm6, %v641_v19, %v635_v18  ;;  %v519_v18 = vsel %vm422_vm4, %v3618_v42, 0.0 }
 0x265   : > { %v644_v23 = vsel %vm643_vm11, %v642_v22, %v639_v20  ;;  %v2400_v22 = vadd.f32 -1.0, %v3502_v1 }
 0x266   : > { %2722 = vmatmul.mubr.f32.vlgmr.msra.gmra.mrb[2].mxu1 %v644_v23 }
 0x267   : > { %3145 = vmatpush3.bf16.msra.mxu1 %v3645_v49  ;;  %2791 = vmatprep.mubr.msk.f32.mxu1 %vm3431_vm1, %v3430_v9 }
 0x268   : > { %3146 = vmatprep.subr.bf16.mxu1 %v3429_v5 }
 0x26b   : > { %3148 = vmatpush3.bf16.msra.mxu1 %v3654_v51 }
 0x26c   : > { %3149 = vmatprep.subr.bf16.mxu1 %v3429_v5 }
 0x26f   : > { %3151 = vmatpush3.bf16.msra.mxu1 %v3672_v56 }
 0x270   : > { %3152 = vmatprep.subr.bf16.mxu1 %v3429_v5 }
 0x273   : > { %3154 = vmatpush3.bf16.msra.mxu1 %v3682_v59 }
 0x274   : > { %3155 = vmatprep.subr.bf16.mxu1 %v3429_v5 }
 0x277   : > { %3157 = vmatpush3.bf16.msra.mxu1 %v3692_v62  ;;  %v411_v62 = vld [vmem:[%s3495_s30] sm:$0xff] }
 0x278   : > { %3158 = vmatprep.subr.bf16.mxu1 %v3429_v5 }
 0x27b   : > { %3160 = vmatpush3.bf16.msra.mxu1 %v3704_v7 }
 0x27c   : > { %3161 = vmatprep.subr.bf16.mxu1 %v3429_v5 }
 0x27f   : > { %3163 = vmatpush3.bf16.msra.mxu1 %v3716_v13  ;;  %v2398_v13 = vsel %vm750_vm13, 1.0, %v3430_v9 }
 0x280   : > { %3164 = vmatprep.subr.bf16.mxu1 %v3429_v5 }
 0x283   : > { %3166 = vmatpush3.bf16.msra.mxu1 %v3729_v17  ;;  %v2399_v17 = vsel %vm753_vm14, 1.0, %v3430_v9 }
 0x284   : > { %3191 = vmatprep.subr.bf16.mxu1 %v3429_v5  ;;  %v756_v29 = vmul.f32 %v2399_v17, %v2398_v13 }
 0x339   : > { %v727_v44 = vpop.f32.mrb[2].mxu1 }
 0x33a   : > { %v2397_v49 = vmul.f32 -1.442695, %v727_v44  ;;  %v2723_v51 = vpop.f32.mrb[3].mxu1 }
 0x33c   : > { %3379 = vpow2.f32 %v2397_v49 }
 0x346   : > { %v3380_v56 = vpop.eup %3379 }
 0x347   : > { %v734_v59 = vadd.f32 1.0, %v3380_v56 }
 0x349   : > { %3381 = vrcp.f32 %v734_v59 }
 0x353   : > { %v3382_v25 = vpop.eup %3381 }
 0x354   : > { %v737_v7 = vadd.f32 %v3382_v25, %v411_v62 }
 0x356   : > { %v739_v26 = vsel %vm738_vm12, %v737_v7, -inf }
 0x357   : > { %740 = vmax.xlane.f32.xlu0 %v739_v26 }
 0x36d   : > { %758 = vrot.lane.b32.xlu0 %v756_v29, %s3435_s7  ;;  %v842_v29 = vadd.f32 1.0, %v3502_v1 }
 0x371   : > { %766 = vrot.lane.b32.xlu0 %v2398_v13, %s3436_s8 }
 0x3e4   : > { %v741_v33 = vpop.xlane.xlu0 %740 }
 0x3e5   : > { %v742_v34 = vsub.f32 %v737_v7, %v741_v33 }
 0x3e7   : > { %v743_v37 = vmul.f32 1.442695, %v742_v34 }
 0x3e8   : > { %v759_v50 = vpop.permute.xlu0 %758 }
 0x3e9   : > { %3383 = vpow2.f32 %v743_v37  ;;  %v770_v53 = vsel %vm769_vm15, %v2398_v13, %v759_v50 }
 0x3ec   : > { %v767_v61 = vpop.permute.xlu0 %766 }
 0x3f3   : > { %v3384_v39 = vpop.eup %3383 }
 0x3f4   : > { %v745_v40 = vsel %vm738_vm12, %v3384_v39, 0.0 }
 0x3f5   : > { %746 = vadd.xlane.f32.xlu1 %v745_v40 }
 0x406   : > { %762 = vrot.lane.b32.xlu1 %v2399_v17, %s3437_s12 }
 0x482   : > { %v747_v48 = vpop.xlane.xlu1 %746 }
 0x483   : > { %3385 = vrcp.f32 %v747_v48 }
 0x486   : > { %v763_v54 = vpop.permute.xlu1 %762 }
 0x487   : > { %v772_v60 = vsel %vm771_vm0, %v770_v53, %v763_v54 }
 0x488   : > { %v774_v10 = vsel %vm773_vm3, %v772_v60, %v767_v61 }
 0x48d   : > { %v3386_v63 = vpop.eup %3385 }
 0x48e   : > { %v749_v0 = vmul.f32 %v3386_v63, %v3384_v39 }
 0x490   : > { %v775_v24 = vmul.f32 %v774_v10, %v749_v0 }
 0x492   : > { %v776_v28 = vmul.f32 %v775_v24, %v775_v24 }
 0x494   : > { %v777_v32 = vsel %vm738_vm12, %v776_v28, 0.0 }
 0x495   : > { %778 = vadd.xlane.f32.xlu1 %v777_v32 }
 0x522   : > { %v779_v41 = vpop.xlane.xlu1 %778 }
 0x523   : > { %v780_v2 = vmax.f32 %v779_v41, 1e-24 }
 0x525   : > { %3387 = vrsqrt.f32 %v780_v2 }
 0x52f   : > { %v3388_v8 = vpop.eup %3387 }
 0x530   : > { %v3910_v11 = vmul.f32 %v3388_v8, %v775_v24 }
 0x532   : > { %789 = vperm.xlu0 %3361, %v3910_v11   ;;  %v829_v37 = vfloor.f32 %v3910_v11 }
 0x536   : > { %3362 = vset.pattern.permute.xlu0 %v3439_v12 }
 0x537   : > { %793 = vperm.xlu0 %3362, %v3910_v11  }
 0x53b   : > { %3363 = vset.pattern.permute.xlu0 %v3440_v15 }
 0x53c   : > { %797 = vperm.xlu0 %3363, %v3910_v11  }
 0x540   : > { %3364 = vset.pattern.permute.xlu0 %v3428_v4 }
 0x541   : > { %785 = vperm.xlu0 %3364, %v3910_v11  }
 0x545   : > { %621 = vrot.lane.b32.xlu0 %v3634_v45, %s3434_s10 }
 0x546   : > { %3366 = vset.pattern.permute.xlu0 %v3439_v12 }
 0x5b1   : > { %v790_v19 = vpop.permute.xlu0 %789 }
 0x5b2   : > { %v801_v20 = vmul.f32 %v790_v19, %v519_v18 }
 0x5b4   : > { %813 = vrot.lane.b32.xlu1 %v801_v20, %s3434_s10 }
 0x5b6   : > { %v794_v23 = vpop.permute.xlu0 %793 }
 0x5b7   : > { %v817_v44 = vmul.f32 %v794_v23, %v3871_v16  ;;  %v803_v42 = vmul.f32 %v794_v23, %v3763_v31 }
 0x5b8   : > { %833 = vrot.lane.b32.xlu1 %v2400_v22, %s3435_s7 }
 0x5b9   : > { %819 = vrot.lane.b32.xlu0 %v817_v44, %s3434_s10  ;;  %v891_v44 = vld [vmem:[#allocation2 + $0x18] sm:$0xff] }
 0x5bb   : > { %v798_v45 = vpop.permute.xlu0 %797 }
 0x5bc   : > { %v823_v49 = vmul.f32 %v798_v45, %v3791_v47  ;;  %853 = vrot.lane.b32.xlu1 %v3502_v1, %s3436_s8 }
 0x5be   : > { %825 = vrot.lane.b32.xlu0 %v823_v49, %s3433_s11 }
 0x5c0   : > { %v786_v51 = vpop.permute.xlu0 %785 }
 0x5c1   : > { %v800_v47 = vmul.f32 %v786_v51, %v3739_v21 }
 0x5c2   : > { %805 = vrot.lane.b32.xlu0 %v803_v42, %s3434_s10 }
 0x5c3   : > { %v802_v31 = vadd.f32 %v801_v20, %v800_v47 }
 0x5c4   : > { %v622_v56 = vpop.permute.xlu0 %621 }
 0x5c5   : > { %v624_v16 = vsel %vm419_vm7, %v3865_v14, %v622_v56  ;;  %v809_v14 = vmul.f32 %v798_v45, %v3667_v55 }
 0x5c6   : > { %v811_v62 = vmul.f32 %v786_v51, %v624_v16 }
 0x626   : > { %v814_v59 = vpop.permute.xlu1 %813 }
 0x627   : > { %v816_v7 = vadd.f32 %v814_v59, %v811_v62 }
 0x62a   : > { %v834_v33 = vpop.permute.xlu1 %833 }
 0x62b   : > { %v820_v25 = vpop.permute.xlu0 %819  ;;  %v836_v21 = vmul.f32 %v834_v33, %v829_v37 }
 0x62c   : > { %v822_v26 = vadd.f32 %v820_v25, %v816_v7 }
 0x62e   : > { %v854_v40 = vpop.permute.xlu1 %853 }
 0x62f   : > { %v856_v55 = vmul.f32 %v854_v40, %v829_v37 }
 0x630   : > { %v826_v13 = vpop.permute.xlu0 %825 }
 0x631   : > { %v3939_v17 = vadd.f32 %v826_v13, %v822_v26 }
 0x633   : > { %877 = vrot.lane.b32.xlu0 %v3939_v17, %s3432_s18 }
 0x634   : > { %v806_v43 = vpop.permute.xlu0 %805 }
 0x635   : > { %v808_v34 = vadd.f32 %v806_v43, %v802_v31 }
 0x637   : > { %v3946_v39 = vadd.f32 %v809_v14, %v808_v34  ;;  %844 = vrot.lane.b32.xlu0 %v842_v29, %s3437_s12  ;;  %v892_v29 = vld [vmem:[%s3495_s30 + $0x8] sm:$0xff] }
 0x639   : > { %875 = vst.msk [vmem:[%s3500_s9] sm:$0xff] %vm296_vm2, %v3946_v39  ;;  %888 = vst.msk [vmem:[#allocation3] sm:$0xff] %vm296_vm2, %v3946_v39 }
 0x63b   : > { %838 = vrot.lane.b32.xlu0 %v836_v21, %s3441_s13 }
 0x63f   : > { %858 = vrot.lane.b32.xlu0 %v856_v55, %s3442_s27 }
 0x6a5   : > { %v878_v48 = vpop.permute.xlu0 %877 }
 0x6a6   : > { %881 = vst.msk [vmem:[%s3500_s9] sm:$0xff] %vm880_vm5, %v878_v48  ;;  %889 = vst.msk [vmem:[#allocation3] sm:$0xff] %vm880_vm5, %v878_v48 }
 0x6a9   : > { %v845_v50 = vpop.permute.xlu0 %844 }
 0x6aa   : > { %v847_v53 = vmul.f32 %v845_v50, %v829_v37 }
 0x6ac   : > { %849 = vrot.lane.b32.xlu1 %v847_v53, %s3443_s14 }
 0x6ad   : > { %v904_v54 = vld [vmem:[#allocation3] sm:$0xff] }
 0x6ae   : > { %2757 = vmatmul.mubr.f32.vlgmr.msra.gmra.mrb[10].mxu0 %v904_v54 }
 0x6af   : > { %3169 = vmatpush3.bf16.msra.mxu0 %v3752_v27  ;;  %2826 = vmatprep.mubr.msk.f32.mxu0 %vm3431_vm1, %v3430_v9  ;;  %v839_v27 = vpop.permute.xlu0 %838 }
 0x6b0   : > { %3170 = vmatprep.subr.bf16.mxu0 %v3429_v5 }
 0x6b3   : > { %3172 = vmatpush3.bf16.msra.mxu0 %v3759_v30  ;;  %v830_v30 = vmul.f32 %v829_v37, %v3502_v1  ;;  %v859_v60 = vpop.permute.xlu0 %858 }
 0x6b4   : > { %3173 = vmatprep.subr.bf16.mxu0 %v3429_v5 }
 0x6b7   : > { %3175 = vmatpush3.bf16.msra.mxu0 %v3775_v36  ;;  %v841_v36 = vadd.f32 %v839_v27, %v830_v30 }
 0x6b8   : > { %3176 = vmatprep.subr.bf16.mxu0 %v3429_v5 }
 0x6bb   : > { %3178 = vmatpush3.bf16.msra.mxu0 %v3787_v46 }
 0x6bc   : > { %3179 = vmatprep.subr.bf16.mxu0 %v3429_v5 }
 0x6bf   : > { %3181 = vmatpush3.bf16.msra.mxu0 %v3804_v52 }
 0x6c0   : > { %3182 = vmatprep.subr.bf16.mxu0 %v3429_v5 }
 0x6c3   : > { %3184 = vmatpush3.bf16.msra.mxu0 %v3814_v57 }
 0x6c4   : > { %3185 = vmatprep.subr.bf16.mxu0 %v3429_v5 }
 0x6c7   : > { %3187 = vmatpush3.bf16.msra.mxu0 %v3851_v38 }
 0x6c8   : > { %3188 = vmatprep.subr.bf16.mxu0 %v3429_v5 }
 0x6cb   : > { %3190 = vmatpush3.bf16.msra.mxu0 %v3861_v3 }
 0x6cc   : > { %3215 = vmatprep.subr.bf16.mxu0 %v3429_v5 }
 0x71e   : > { %v850_v46 = vpop.permute.xlu1 %849 }
 0x71f   : > { %v852_v52 = vadd.f32 %v850_v46, %v841_v36 }
 0x721   : > { %v3979_v61 = vadd.f32 %v859_v60, %v852_v52 }
 0x723   : > { %895 = vperm.xlu1 %3365, %v3979_v61  }
 0x781   : > { %v987_v57 = vpop.f32.mrb[10].mxu0 }
 0x782   : > { %v991_v38 = vadd.f32 %v987_v57, %v3818_v58  ;;  %v2758_v63 = vpop.f32.mrb[11].mxu0 }
 0x7a2   : > { %v3983_v0 = vpop.permute.xlu1 %895 }
 0x7a3   : > { %vm899_vm7 = vcmp.gt.f32.partialorder %v3983_v0, 0.0  ;;  %vm900_vm8 = vcmp.eq.f32.partialorder %v3983_v0, 1.0  ;;  %vm901_vm13 = vcmp.gt.f32.partialorder %v3983_v0, 1.0  ;;  %vm898_vm14 = vcmp.eq.f32.partialorder %v3983_v0, 0.0 }
 0x7a4   : > { %v994_v1 = vsel %vm899_vm7, %v3946_v39, 0.0  ;;  %v992_v3 = vsel %vm901_vm13, %v3946_v39, 0.0  ;;  %v4000_v10 = vsel %vm901_vm13, %v3939_v17, 0.0  ;;  %v1107_v2 = vsel %vm899_vm7, %v3939_v17, 0.0 }
 0x7a5   : > { %996 = vrot.lane.b32.xlu0 %v994_v1, %s3432_s18  ;;  %v3995_v58 = vsel %vm900_vm8, %v991_v38, %v992_v3  ;;  %vm902_vm4 = vcmp.ge.f32.partialorder %v3983_v0, 1.0  ;;  %vm1232_vm7 = vcmp.ne.f32.partialorder %v3979_v61, 0.0  ;;  %vm1235_vm13 = vcmp.ne.f32.partialorder %v3979_v61, 1.0 }
 0x7a6   : > { %1003 = vrot.lane.b32.xlu1 %v3995_v58, %s3433_s11  ;;  %v4026_v18 = vsel %vm902_vm4, %v3946_v39, 0.0  ;;  %v2402_v34 = vsel %vm1232_vm7, 1.0, %v3430_v9  ;;  %v2403_v37 = vsel %vm1235_vm13, 1.0, %v3430_v9 }
 0x7a7   : > { %v1238_v21 = vmul.f32 %v2403_v37, %v2402_v34 }
 0x7aa   : > { %1103 = vrot.lane.b32.xlu1 %v4000_v10, %s3433_s11 }
 0x817   : > { %v997_v24 = vpop.permute.xlu0 %996 }
 0x818   : > { %v1004_v28 = vpop.permute.xlu1 %1003  ;;  %v4007_v32 = vsel %vm898_vm14, %v991_v38, %v997_v24 }
 0x819   : > { %1006 = vst.msk [vmem:[#allocation3] sm:$0xff] %vm524_vm9, %v1004_v28  ;;  %1008 = vrot.lane.b32.xlu0 %v4007_v32, %s3433_s11  ;;  %1114 = vrot.lane.b32.xlu1 %v4007_v32, %s3434_s10 }
 0x81c   : > { %v1104_v41 = vpop.permute.xlu1 %1103 }
 0x81d   : > { %1109 = vrot.lane.b32.xlu0 %v1107_v2, %s3432_s18  ;;  %v4020_v8 = vsel %vm900_vm8, %v991_v38, %v1104_v41 }
 0x81e   : > { %1122 = vrot.lane.b32.xlu1 %v4020_v8, %s3432_s18 }
 0x821   : > { %1118 = vrot.lane.b32.xlu0 %v4026_v18, %s3433_s11 }
 0x88b   : > { %v1009_v19 = vpop.permute.xlu0 %1008  ;;  %v1115_v23 = vpop.permute.xlu1 %1114 }
 0x88c   : > { %1011 = vst.msk [vmem:[#allocation3] sm:$0xff] %vm530_vm10, %v1009_v19 }
 0x88f   : > { %v1110_v22 = vpop.permute.xlu0 %1109 }
 0x890   : > { %v1123_v59 = vpop.permute.xlu1 %1122 }
 0x893   : > { %v1012_v20 = vld [vmem:[#allocation3] sm:$0xff]  ;;  %v1119_v56 = vpop.permute.xlu0 %1118 }
 0x894   : > { %2792 = vmatmul.mubr.f32.vlgmr.msra.gmra.mrb[4].mxu1 %v1012_v20 }
 0x895   : > { %2861 = vmatprep.mubr.msk.f32.mxu1 %vm3431_vm1, %v3430_v9 }
 0x967   : > { %v1095_v45 = vpop.f32.mrb[4].mxu1 }
 0x968   : > { %v4033_v49 = vadd.f32 %v1095_v45, %v891_v44  ;;  %v2793_v42 = vpop.f32.mrb[5].mxu1  ;;  %v1379_v44 = vld [vmem:[%s4718_s3] sm:$0xff]  ;;  %v1380_v45 = vld [vmem:[%s4718_s3 + $0x8] sm:$0xff] }
 0x969   : > { %v1381_v42 = vld [vmem:[%s4718_s3 + $0x10] sm:$0xff] }
 0x96a   : > { %v4038_v51 = vsel %vm898_vm14, %v4033_v49, %v1110_v22  ;;  %vm903_vm14 = vcmp.gt.f32.partialorder %v3983_v0, 2.0 }
 0x96b   : > { %v1125_v16 = vsel %vm296_vm2, %v1115_v23, %v4038_v51 }
 0x96c   : > { %v1126_v62 = vsel %vm399_vm6, %v1125_v16, %v1119_v56 }
 0x96d   : > { %v1127_v25 = vsel %vm643_vm11, %v1126_v62, %v1123_v59  ;;  %v1384_v59 = vld [vmem:[%s4718_s3 + $0x28] sm:$0xff] }
 0x96e   : > { %2827 = vmatmul.mubr.f32.vlgmr.msra.gmra.mrb[12].mxu0 %v1127_v25  ;;  %v1385_v25 = vld [vmem:[%s4718_s3 + $0x30] sm:$0xff] }
 0x96f   : > { %2896 = vmatprep.mubr.msk.f32.mxu0 %vm3431_vm1, %v3430_v9 }
 0xa41   : > { %v1210_v7 = vpop.f32.mrb[12].mxu0 }
 0xa42   : > { %v2401_v47 = vmul.f32 -1.442695, %v1210_v7  ;;  %v2828_v26 = vpop.f32.mrb[13].mxu0  ;;  %v1386_v7 = vld [vmem:[%s4718_s3 + $0x38] sm:$0xff] }
 0xa43   : > { %v1387_v26 = vld [vmem:[%s4718_s3 + $0x40] sm:$0xff] }
 0xa44   : > { %3389 = vpow2.f32 %v2401_v47  ;;  %v4113_v47 = vpack.c.bf16 %v1386_v7, %v1385_v25 }
 0xa4e   : > { %v3390_v13 = vpop.eup %3389 }
 0xa4f   : > { %v1217_v31 = vadd.f32 1.0, %v3390_v13  ;;  %v1388_v13 = vld [vmem:[%s4718_s3 + $0x48] sm:$0xff] }
 0xa51   : > { %3391 = vrcp.f32 %v1217_v31  ;;  %v4123_v31 = vpack.c.bf16 %v1388_v13, %v1387_v26 }
 0xa5b   : > { %v3392_v33 = vpop.eup %3391 }
 0xa5c   : > { %v1220_v43 = vadd.f32 %v3392_v33, %v892_v29  ;;  %v1389_v29 = vld [vmem:[%s4718_s3 + $0x50] sm:$0xff]  ;;  %v1390_v33 = vld [vmem:[%s4718_s3 + $0x58] sm:$0xff] }
 0xa5e   : > { %v1221_v14 = vsel %vm738_vm12, %v1220_v43, -inf }
 0xa5f   : > { %1222 = vmax.xlane.f32.xlu0 %v1221_v14 }
 0xa75   : > { %1240 = vrot.lane.b32.xlu0 %v1238_v21, %s3435_s7  ;;  %v1392_v21 = vld [vmem:[%s4718_s3 + $0x68] sm:$0xff] }
 0xa79   : > { %1248 = vrot.lane.b32.xlu0 %v2402_v34, %s3436_s8 }
 0xaec   : > { %v1223_v40 = vpop.xlane.xlu0 %1222 }
 0xaed   : > { %v1224_v55 = vsub.f32 %v1220_v43, %v1223_v40  ;;  %v4133_v43 = vpack.c.bf16 %v1390_v33, %v1389_v29  ;;  %v1487_v29 = vld [vmem:[%s4719_s4] sm:$0xff] }
 0xaef   : > { %v1225_v48 = vmul.f32 1.442695, %v1224_v55  ;;  %v1113_v55 = vsel %vm903_vm14, %v3939_v17, 0.0  ;;  %v1394_v17 = vld [vmem:[%s4718_s3 + $0x78] sm:$0xff] }
 0xaf0   : > { %v1241_v27 = vpop.permute.xlu0 %1240 }
 0xaf1   : > { %3393 = vpow2.f32 %v1225_v48  ;;  %v1251_v36 = vsel %vm769_vm15, %v2402_v34, %v1241_v27  ;;  %v1001_v48 = vsel %vm903_vm14, %v3946_v39, 0.0  ;;  %v1393_v27 = vld [vmem:[%s4718_s3 + $0x70] sm:$0xff] }
 0xaf4   : > { %v1249_v60 = vpop.permute.xlu0 %1248 }
 0xafb   : > { %v3394_v50 = vpop.eup %3393 }
 0xafc   : > { %v1227_v53 = vsel %vm738_vm12, %v3394_v50, 0.0 }
 0xafd   : > { %1228 = vadd.xlane.f32.xlu1 %v1227_v53  ;;  %v1101_v53 = vsel %vm900_vm8, %v4033_v49, %v4000_v10 }
 0xb0e   : > { %1244 = vrot.lane.b32.xlu1 %v2403_v37, %s3437_s12  ;;  %v1391_v37 = vld [vmem:[%s4718_s3 + $0x60] sm:$0xff] }
 0xb0f   : > { %v4145_v40 = vpack.c.bf16 %v1392_v21, %v1391_v37 }
 0xb8a   : > { %v1229_v54 = vpop.xlane.xlu1 %1228 }
 0xb8b   : > { %3395 = vrcp.f32 %v1229_v54 }
 0xb8e   : > { %v1245_v30 = vpop.permute.xlu1 %1244 }
 0xb8f   : > { %v1252_v46 = vsel %vm771_vm0, %v1251_v36, %v1245_v30  ;;  %v4161_v36 = vpack.c.bf16 %v1394_v17, %v1393_v27  ;;  %v1493_v17 = vld [vmem:[%s4719_s4 + $0x30] sm:$0xff] }
 0xb90   : > { %v1253_v38 = vsel %vm773_vm3, %v1252_v46, %v1249_v60 }
 0xb95   : > { %v3396_v52 = vpop.eup %3395 }
 0xb96   : > { %v1231_v57 = vmul.f32 %v3396_v52, %v3394_v50 }
 0xb98   : > { %v1254_v63 = vmul.f32 %v1253_v38, %v1231_v57 }
 0xb9a   : > { %v1255_v1 = vmul.f32 %v1254_v63, %v1254_v63 }
 0xb9c   : > { %v1256_v3 = vsel %vm738_vm12, %v1255_v1, 0.0 }
 0xb9d   : > { %1257 = vadd.xlane.f32.xlu1 %v1256_v3  ;;  %v1318_v3 = vadd.f32 1.0, %v3979_v61 }
 0xc2a   : > { %v1258_v24 = vpop.xlane.xlu1 %1257 }
 0xc2b   : > { %v1259_v28 = vmax.f32 %v1258_v24, 1e-24 }
 0xc2d   : > { %3397 = vrsqrt.f32 %v1259_v28 }
 0xc37   : > { %v3398_v41 = vpop.eup %3397 }
 0xc38   : > { %v4060_v2 = vmul.f32 %v3398_v41, %v1254_v63 }
 0xc3a   : > { %1272 = vperm.xlu0 %3366, %v4060_v2   ;;  %v1305_v24 = vfloor.f32 %v4060_v2 }
 0xc3e   : > { %3367 = vset.pattern.permute.xlu0 %v3440_v15 }
 0xc3f   : > { %1276 = vperm.xlu0 %3367, %v4060_v2  }
 0xc43   : > { %3368 = vset.pattern.permute.xlu0 %v3428_v4 }
 0xc44   : > { %1264 = vperm.xlu0 %3368, %v4060_v2  }
 0xc48   : > { %3369 = vset.pattern.permute.xlu0 %v3438_v35 }
 0xc49   : > { %1268 = vperm.xlu0 %3369, %v4060_v2  }
 0xc4d   : > { %3370 = vset.pattern.permute.xlu0 %v3439_v12 }
 0xcb9   : > { %v1273_v19 = vpop.permute.xlu0 %1272 }
 0xcba   : > { %v1293_v20 = vmul.f32 %v1273_v19, %v4038_v51  ;;  %v1282_v22 = vmul.f32 %v1273_v19, %v4007_v32  ;;  %v4083_v51 = vpack.c.bf16 %v1380_v45, %v1379_v44  ;;  %v1382_v32 = vld [vmem:[%s4718_s3 + $0x18] sm:$0xff] }
 0xcbb   : > { %v4091_v16 = vpack.c.bf16 %v1382_v32, %v1381_v42  ;;  %v1306_v42 = vmul.f32 %v1305_v24, %v3979_v61 }
 0xcbc   : > { %1295 = vrot.lane.b32.xlu0 %v1293_v20, %s3434_s10  ;;  %3193 = vmatpush3.bf16.msra.mxu1 %v4083_v51 }
 0xcbd   : > { %3194 = vmatprep.subr.bf16.mxu1 %v3429_v5 }
 0xcbe   : > { %v1277_v23 = vpop.permute.xlu0 %1276 }
 0xcbf   : > { %v1299_v56 = vmul.f32 %v1277_v23, %v4020_v8  ;;  %v1383_v8 = vld [vmem:[%s4718_s3 + $0x20] sm:$0xff]  ;;  %v1288_v60 = vmul.f32 %v1277_v23, %v4026_v18 }
 0xcc0   : > { %1284 = vrot.lane.b32.xlu0 %v1282_v22, %s3434_s10  ;;  %3196 = vmatpush3.bf16.msra.mxu1 %v4091_v16  ;;  %v4103_v62 = vpack.c.bf16 %v1384_v59, %v1383_v8 }
 0xcc1   : > { %1301 = vrot.lane.b32.xlu1 %v1299_v56, %s3433_s11  ;;  %3197 = vmatprep.subr.bf16.mxu1 %v3429_v5 }
 0xcc3   : > { %v1265_v14 = vpop.permute.xlu0 %1264 }
 0xcc4   : > { %3199 = vmatpush3.bf16.msra.mxu1 %v4103_v62  ;;  %v1290_v39 = vmul.f32 %v1265_v14, %v1101_v53  ;;  %v1279_v46 = vmul.f32 %v1265_v14, %v3995_v58  ;;  %v2404_v58 = vadd.f32 -1.0, %v3979_v61  ;;  %v1492_v53 = vld [vmem:[%s4719_s4 + $0x28] sm:$0xff] }
 0xcc5   : > { %1329 = vrot.lane.b32.xlu1 %v3979_v61, %s3436_s8  ;;  %3200 = vmatprep.subr.bf16.mxu1 %v3429_v5  ;;  %v1488_v61 = vld [vmem:[%s4719_s4 + $0x8] sm:$0xff] }
 0xcc6   : > { %v4204_v14 = vpack.c.bf16 %v1488_v61, %v1487_v29  ;;  %v1608_v29 = vld [vmem:[%s4720_s5 + $0x30] sm:$0xff]  ;;  %v1609_v61 = vld [vmem:[%s4720_s5 + $0x38] sm:$0xff] }
 0xcc8   : > { %3202 = vmatpush3.bf16.msra.mxu1 %v4113_v47  ;;  %v1269_v34 = vpop.permute.xlu0 %1268  ;;  %3217 = vmatpush3.bf16.msra.mxu0 %v4204_v14 }
 0xcc9   : > { %3203 = vmatprep.subr.bf16.mxu1 %v3429_v5  ;;  %v1291_v50 = vmul.f32 %v1269_v34, %v1113_v55  ;;  %v1280_v54 = vmul.f32 %v1269_v34, %v1001_v48  ;;  %v1489_v34 = vld [vmem:[%s4719_s4 + $0x10] sm:$0xff]  ;;  %3218 = vmatprep.subr.bf16.mxu0 %v3429_v5 }
 0xccb   : > { %v1292_v52 = vadd.f32 %v1291_v50, %v1290_v39  ;;  %v1281_v0 = vadd.f32 %v1280_v54, %v1279_v46  ;;  %v1491_v50 = vld [vmem:[%s4719_s4 + $0x20] sm:$0xff]  ;;  %v1494_v39 = vld [vmem:[%s4719_s4 + $0x38] sm:$0xff] }
 0xccc   : > { %3205 = vmatpush3.bf16.msra.mxu1 %v4123_v31  ;;  %v4238_v54 = vpack.c.bf16 %v1492_v53, %v1491_v50  ;;  %v1495_v46 = vld [vmem:[%s4719_s4 + $0x40] sm:$0xff]  ;;  %v1612_v53 = vld [vmem:[%s4720_s5 + $0x50] sm:$0xff] }
 0xccd   : > { %3206 = vmatprep.subr.bf16.mxu1 %v3429_v5 }
 0xcd0   : > { %3208 = vmatpush3.bf16.msra.mxu1 %v4133_v43 }
 0xcd1   : > { %3209 = vmatprep.subr.bf16.mxu1 %v3429_v5 }
 0xcd4   : > { %3211 = vmatpush3.bf16.msra.mxu1 %v4145_v40 }
 0xcd5   : > { %3212 = vmatprep.subr.bf16.mxu1 %v3429_v5 }
 0xcd8   : > { %3214 = vmatpush3.bf16.msra.mxu1 %v4161_v36 }
 0xcd9   : > { %3239 = vmatprep.subr.bf16.mxu1 %v3429_v5 }
 0xd2e   : > { %v1296_v30 = vpop.permute.xlu0 %1295 }
 0xd2f   : > { %v1298_v10 = vadd.f32 %v1296_v30, %v1292_v52  ;;  %v4253_v30 = vpack.c.bf16 %v1494_v39, %v1493_v17  ;;  %v1496_v52 = vld [vmem:[%s4719_s4 + $0x48] sm:$0xff]  ;;  %v1613_v17 = vld [vmem:[%s4720_s5 + $0x58] sm:$0xff] }
 0xd30   : > { %v4381_v39 = vpack.c.bf16 %v1613_v17, %v1612_v53 }
 0xd32   : > { %v1285_v49 = vpop.permute.xlu0 %1284 }
 0xd33   : > { %v1287_v57 = vadd.f32 %v1285_v49, %v1281_v0  ;;  %v1302_v38 = vpop.permute.xlu1 %1301  ;;  %v4263_v0 = vpack.c.bf16 %v1496_v52, %v1495_v46  ;;  %v1498_v49 = vld [vmem:[%s4719_s4 + $0x58] sm:$0xff] }
 0xd34   : > { %v4167_v63 = vadd.f32 %v1302_v38, %v1298_v10  ;;  %v1497_v10 = vld [vmem:[%s4719_s4 + $0x50] sm:$0xff]  ;;  %v1500_v38 = vld [vmem:[%s4719_s4 + $0x68] sm:$0xff] }
 0xd35   : > { %v4169_v1 = vadd.f32 %v1288_v60, %v1287_v57  ;;  %v4273_v60 = vpack.c.bf16 %v1498_v49, %v1497_v10  ;;  %v1499_v57 = vld [vmem:[%s4719_s4 + $0x60] sm:$0xff]  ;;  %v1365_v10 = vld [vmem:[#allocation2 + $0x28] sm:$0xff] }
 0xd36   : > { %1353 = vrot.lane.b32.xlu0 %v4167_v63, %s3432_s18 }
 0xd37   : > { %1362 = vst.msk [vmem:[#allocation3] sm:$0xff] %vm296_vm2, %v4169_v1  ;;  %v1330_v19 = vpop.permute.xlu1 %1329  ;;  %1351 = vst.msk [vmem:[%s3500_s9 + $0x8] sm:$0xff] %vm296_vm2, %v4169_v1 }
 0xd38   : > { %v1332_v23 = vmul.f32 %v1330_v19, %v1305_v24  ;;  %v1603_v19 = vld [vmem:[%s4720_s5 + $0x8] sm:$0xff] }
 0xd3a   : > { %1309 = vrot.lane.b32.xlu0 %v2404_v58, %s3435_s7  ;;  %v4284_v58 = vpack.c.bf16 %v1500_v38, %v1499_v57 }
 0xd3e   : > { %1320 = vrot.lane.b32.xlu0 %v1318_v3, %s3437_s12  ;;  %v1501_v3 = vld [vmem:[%s4719_s4 + $0x70] sm:$0xff] }
 0xda8   : > { %v4179_v18 = vpop.permute.xlu0 %1353 }
 0xda9   : > { %1363 = vst.msk [vmem:[#allocation3] sm:$0xff] %vm880_vm5, %v4179_v18  ;;  %1356 = vst.msk [vmem:[%s3500_s9 + $0x8] sm:$0xff] %vm880_vm5, %v4179_v18 }
 0xdac   : > { %v1310_v28 = vpop.permute.xlu0 %1309 }
 0xdad   : > { %v1312_v41 = vmul.f32 %v1310_v28, %v1305_v24 }
 0xdaf   : > { %1314 = vrot.lane.b32.xlu0 %v1312_v41, %s3441_s13  ;;  %v1602_v41 = vld [vmem:[%s4720_s5] sm:$0xff] }
 0xdb0   : > { %v1321_v20 = vpop.permute.xlu0 %1320  ;;  %v1378_v22 = vld [vmem:[#allocation3] sm:$0xff] }
 0xdb1   : > { %v1323_v44 = vmul.f32 %v1321_v20, %v1305_v24  ;;  %2862 = vmatmul.mubr.f32.vlgmr.msra.gmra.mrb[6].mxu1 %v1378_v22  ;;  %v1502_v24 = vld [vmem:[%s4719_s4 + $0x78] sm:$0xff]  ;;  %v1604_v20 = vld [vmem:[%s4720_s5 + $0x10] sm:$0xff]  ;;  %v4307_v22 = vpack.c.bf16 %v1603_v19, %v1602_v41 }
 0xdb2   : > { %2931 = vmatprep.mubr.msk.f32.mxu1 %vm3431_vm1, %v3430_v9  ;;  %v4294_v28 = vpack.c.bf16 %v1502_v24, %v1501_v3 }
 0xdb3   : > { %1325 = vrot.lane.b32.xlu1 %v1323_v44, %s3443_s14  ;;  %1334 = vrot.lane.b32.xlu0 %v1332_v23, %s3442_s27  ;;  %v1605_v23 = vld [vmem:[%s4720_s5 + $0x18] sm:$0xff] }
 0xdb4   : > { %3241 = vmatpush3.bf16.msra.mxu1 %v4307_v22 }
 0xdb5   : > { %3242 = vmatprep.subr.bf16.mxu1 %v3429_v5 }
 0xe21   : > { %v1315_v45 = vpop.permute.xlu0 %1314 }
 0xe22   : > { %v1317_v56 = vadd.f32 %v1315_v45, %v1306_v42  ;;  %v4314_v45 = vpack.c.bf16 %v1605_v23, %v1604_v20 }
 0xe24   : > { %3244 = vmatpush3.bf16.msra.mxu1 %v4314_v45 }
 0xe25   : > { %v1326_v32 = vpop.permute.xlu1 %1325  ;;  %v1335_v59 = vpop.permute.xlu0 %1334  ;;  %3245 = vmatprep.subr.bf16.mxu1 %v3429_v5 }
 0xe26   : > { %v1328_v8 = vadd.f32 %v1326_v32, %v1317_v56  ;;  %v1606_v32 = vld [vmem:[%s4720_s5 + $0x20] sm:$0xff] }
 0xe28   : > { %v4190_v25 = vadd.f32 %v1335_v59, %v1328_v8  ;;  %v1607_v8 = vld [vmem:[%s4720_s5 + $0x28] sm:$0xff] }
 0xe29   : > { %v4334_v59 = vpack.c.bf16 %v1607_v8, %v1606_v32 }
 0xe2a   : > { %1369 = vperm.xlu1 %3365, %v4190_v25  }
 0xe2b   : > { %3247 = vmatpush3.bf16.msra.mxu1 %v4334_v59 }
 0xe2c   : > { %3248 = vmatprep.subr.bf16.mxu1 %v3429_v5 }
 0xe84   : > { %v1461_v7 = vpop.f32.mrb[6].mxu1 }
 0xe85   : > { %v4194_v26 = vadd.f32 %v1461_v7, %v3841_v6  ;;  %v2863_v13 = vpop.f32.mrb[7].mxu1  ;;  %v1490_v6 = vld [vmem:[%s4719_s4 + $0x18] sm:$0xff] }
 0xe86   : > { %v4227_v48 = vpack.c.bf16 %v1490_v6, %v1489_v34  ;;  %v4356_v6 = vpack.c.bf16 %v1609_v61, %v1608_v29 }
 0xe88   : > { %3220 = vmatpush3.bf16.msra.mxu0 %v4227_v48  ;;  %3250 = vmatpush3.bf16.msra.mxu1 %v4356_v6 }
 0xe89   : > { %3221 = vmatprep.subr.bf16.mxu0 %v3429_v5  ;;  %3251 = vmatprep.subr.bf16.mxu1 %v3429_v5 }
 0xe8c   : > { %3223 = vmatpush3.bf16.msra.mxu0 %v4238_v54 }
 0xe8d   : > { %3224 = vmatprep.subr.bf16.mxu0 %v3429_v5 }
 0xe90   : > { %3226 = vmatpush3.bf16.msra.mxu0 %v4253_v30 }
 0xe91   : > { %3227 = vmatprep.subr.bf16.mxu0 %v3429_v5 }
 0xe94   : > { %3229 = vmatpush3.bf16.msra.mxu0 %v4263_v0 }
 0xe95   : > { %3230 = vmatprep.subr.bf16.mxu0 %v3429_v5 }
 0xe98   : > { %3232 = vmatpush3.bf16.msra.mxu0 %v4273_v60 }
 0xe99   : > { %3233 = vmatprep.subr.bf16.mxu0 %v3429_v5 }
 0xe9c   : > { %3235 = vmatpush3.bf16.msra.mxu0 %v4284_v58 }
 0xe9d   : > { %3236 = vmatprep.subr.bf16.mxu0 %v3429_v5 }
 0xea0   : > { %3238 = vmatpush3.bf16.msra.mxu0 %v4294_v28 }
 0xea1   : > { %3263 = vmatprep.subr.bf16.mxu0 %v3429_v5 }
 0xea9   : > { %v4202_v33 = vpop.permute.xlu1 %1369 }
 0xeaa   : > { %vm1373_vm8 = vcmp.gt.f32.partialorder %v4202_v33, 0.0  ;;  %vm1374_vm4 = vcmp.eq.f32.partialorder %v4202_v33, 1.0  ;;  %vm1375_vm7 = vcmp.gt.f32.partialorder %v4202_v33, 1.0  ;;  %vm1372_vm13 = vcmp.eq.f32.partialorder %v4202_v33, 0.0 }
 0xeab   : > { %v1468_v37 = vsel %vm1373_vm8, %v4169_v1, 0.0  ;;  %v1466_v21 = vsel %vm1375_vm7, %v4169_v1, 0.0  ;;  %v4241_v27 = vsel %vm1375_vm7, %v4167_v63, 0.0  ;;  %v1581_v13 = vsel %vm1373_vm8, %v4167_v63, 0.0 }
 0xeac   : > { %1470 = vrot.lane.b32.xlu0 %v1468_v37, %s3432_s18  ;;  %v4224_v55 = vsel %vm1374_vm4, %v4194_v26, %v1466_v21  ;;  %vm1376_vm14 = vcmp.ge.f32.partialorder %v4202_v33, 1.0  ;;  %v1610_v21 = vld [vmem:[%s4720_s5 + $0x40] sm:$0xff]  ;;  %vm1706_vm8 = vcmp.ne.f32.partialorder %v4190_v25, 0.0  ;;  %vm1709_vm7 = vcmp.ne.f32.partialorder %v4190_v25, 1.0 }
 0xead   : > { %1477 = vrot.lane.b32.xlu1 %v4224_v55, %s3433_s11  ;;  %v4359_v37 = vsel %vm1376_vm14, %v4169_v1, 0.0 }
 0xeb1   : > { %1577 = vrot.lane.b32.xlu1 %v4241_v27, %s3433_s11 }
 0xf1e   : > { %v1471_v44 = vpop.permute.xlu0 %1470 }
 0xf1f   : > { %v1478_v42 = vpop.permute.xlu1 %1477  ;;  %v4319_v56 = vsel %vm1372_vm13, %v4194_v26, %v1471_v44 }
 0xf20   : > { %1480 = vst.msk [vmem:[#allocation3] sm:$0xff] %vm524_vm9, %v1478_v42  ;;  %1588 = vrot.lane.b32.xlu1 %v4319_v56, %s3434_s10  ;;  %1482 = vrot.lane.b32.xlu0 %v4319_v56, %s3433_s11 }
 0xf23   : > { %v1578_v7 = vpop.permute.xlu1 %1577 }
 0xf24   : > { %1583 = vrot.lane.b32.xlu0 %v1581_v13, %s3432_s18  ;;  %v4350_v34 = vsel %vm1374_vm4, %v4194_v26, %v1578_v7  ;;  %v1611_v26 = vld [vmem:[%s4720_s5 + $0x48] sm:$0xff] }
 0xf25   : > { %1596 = vrot.lane.b32.xlu1 %v4350_v34, %s3432_s18  ;;  %v4371_v50 = vpack.c.bf16 %v1611_v26, %v1610_v21 }
 0xf27   : > { %3253 = vmatpush3.bf16.msra.mxu1 %v4371_v50 }
 0xf28   : > { %1592 = vrot.lane.b32.xlu0 %v4359_v37, %s3433_s11  ;;  %3254 = vmatprep.subr.bf16.mxu1 %v3429_v5 }
 0xf2b   : > { %3256 = vmatpush3.bf16.msra.mxu1 %v4381_v39 }
 0xf2c   : > { %3257 = vmatprep.subr.bf16.mxu1 %v3429_v5 }
 0xf92   : > { %v1483_v46 = vpop.permute.xlu0 %1482 }
 0xf93   : > { %1485 = vst.msk [vmem:[#allocation3] sm:$0xff] %vm530_vm10, %v1483_v46 }
 0xf9a   : > { %v1486_v52 = vld [vmem:[#allocation3] sm:$0xff] }
 0xf9b   : > { %2897 = vmatmul.mubr.f32.vlgmr.msra.gmra.mrb[14].mxu0 %v1486_v52 }
 0xf9c   : > { %3265 = vmatpush3.bf16.msra.mxu0 %v4083_v51  ;;  %2966 = vmatprep.mubr.msk.f32.mxu0 %vm3431_vm1, %v3430_v9  ;;  %v1614_v51 = vld [vmem:[%s4720_s5 + $0x60] sm:$0xff] }
 0xf9d   : > { %3266 = vmatprep.subr.bf16.mxu0 %v3429_v5 }
 0xfa0   : > { %3268 = vmatpush3.bf16.msra.mxu0 %v4091_v16  ;;  %v1615_v16 = vld [vmem:[%s4720_s5 + $0x68] sm:$0xff] }
 0xfa1   : > { %3269 = vmatprep.subr.bf16.mxu0 %v3429_v5 }
 0xfa4   : > { %3271 = vmatpush3.bf16.msra.mxu0 %v4103_v62  ;;  %v4411_v62 = vpack.c.bf16 %v1615_v16, %v1614_v51 }
 0xfa5   : > { %3272 = vmatprep.subr.bf16.mxu0 %v3429_v5 }
 0xfa6   : > { %3259 = vmatpush3.bf16.msra.mxu1 %v4411_v62 }
 0xfa7   : > { %3260 = vmatprep.subr.bf16.mxu1 %v3429_v5 }
 0xfa8   : > { %3274 = vmatpush3.bf16.msra.mxu0 %v4113_v47  ;;  %v1616_v47 = vld [vmem:[%s4720_s5 + $0x70] sm:$0xff] }
 0xfa9   : > { %3275 = vmatprep.subr.bf16.mxu0 %v3429_v5 }
 0xfac   : > { %3277 = vmatpush3.bf16.msra.mxu0 %v4123_v31  ;;  %v1617_v31 = vld [vmem:[%s4720_s5 + $0x78] sm:$0xff] }
 0xfad   : > { %3278 = vmatprep.subr.bf16.mxu0 %v3429_v5 }
 0xfb0   : > { %3280 = vmatpush3.bf16.msra.mxu0 %v4133_v43  ;;  %v4421_v43 = vpack.c.bf16 %v1617_v31, %v1616_v47 }
 0xfb1   : > { %3281 = vmatprep.subr.bf16.mxu0 %v3429_v5 }
 0xfb2   : > { %3262 = vmatpush3.bf16.msra.mxu1 %v4421_v43 }
 0xfb3   : > { %3287 = vmatprep.subr.bf16.mxu1 %v3429_v5 }
 0xfb4   : > { %3283 = vmatpush3.bf16.msra.mxu0 %v4145_v40  ;;  %v1584_v40 = vpop.permute.xlu0 %1583 }
 0xfb5   : > { %3284 = vmatprep.subr.bf16.mxu0 %v3429_v5 }
 0xfb8   : > { %3286 = vmatpush3.bf16.msra.mxu0 %v4161_v36  ;;  %v1589_v36 = vpop.permute.xlu1 %1588  ;;  %v1593_v24 = vpop.permute.xlu0 %1592 }
 0xfb9   : > { %3311 = vmatprep.subr.bf16.mxu0 %v3429_v5 }
 0xfbc   : > { %v1597_v19 = vpop.permute.xlu1 %1596 }
0x106e   : > { %v1569_v49 = vpop.f32.mrb[14].mxu0 }
0x106f   : > { %v4425_v57 = vadd.f32 %v1569_v49, %v1365_v10  ;;  %v2898_v38 = vpop.f32.mrb[15].mxu0 }
0x1071   : > { %v4430_v3 = vsel %vm1372_vm13, %v4425_v57, %v1584_v40  ;;  %vm1377_vm13 = vcmp.gt.f32.partialorder %v4202_v33, 2.0  ;;  %v2408_v33 = vadd.f32 -1.0, %v4190_v25 }
0x1072   : > { %v1599_v41 = vsel %vm296_vm2, %v1589_v36, %v4430_v3 }
0x1073   : > { %v1600_v20 = vsel %vm399_vm6, %v1599_v41, %v1593_v24 }
0x1074   : > { %v1601_v23 = vsel %vm643_vm11, %v1600_v20, %v1597_v19 }
0x1075   : > { %2932 = vmatmul.mubr.f32.vlgmr.msra.gmra.mrb[8].mxu1 %v1601_v23 }
0x1076   : > { %3289 = vmatpush3.bf16.msra.mxu1 %v4204_v14  ;;  %3001 = vmatprep.mubr.msk.f32.mxu1 %vm3431_vm1, %v3430_v9 }
0x1077   : > { %3290 = vmatprep.subr.bf16.mxu1 %v3429_v5 }
0x107a   : > { %3292 = vmatpush3.bf16.msra.mxu1 %v4227_v48 }
0x107b   : > { %3293 = vmatprep.subr.bf16.mxu1 %v3429_v5 }
0x107e   : > { %3295 = vmatpush3.bf16.msra.mxu1 %v4238_v54 }
0x107f   : > { %3296 = vmatprep.subr.bf16.mxu1 %v3429_v5 }
0x1082   : > { %3298 = vmatpush3.bf16.msra.mxu1 %v4253_v30 }
0x1083   : > { %3299 = vmatprep.subr.bf16.mxu1 %v3429_v5 }
0x1086   : > { %3301 = vmatpush3.bf16.msra.mxu1 %v4263_v0  ;;  %v1366_v0 = vld [vmem:[%s3495_s30 + $0x10] sm:$0xff] }
0x1087   : > { %3302 = vmatprep.subr.bf16.mxu1 %v3429_v5 }
0x108a   : > { %3304 = vmatpush3.bf16.msra.mxu1 %v4273_v60 }
0x108b   : > { %3305 = vmatprep.subr.bf16.mxu1 %v3429_v5 }
0x108e   : > { %3307 = vmatpush3.bf16.msra.mxu1 %v4284_v58  ;;  %v2406_v58 = vsel %vm1706_vm8, 1.0, %v3430_v9 }
0x108f   : > { %3308 = vmatprep.subr.bf16.mxu1 %v3429_v5 }
0x1092   : > { %3310 = vmatpush3.bf16.msra.mxu1 %v4294_v28  ;;  %v2407_v28 = vsel %vm1709_vm7, 1.0, %v3430_v9 }
0x1093   : > { %v1712_v8 = vmul.f32 %v2407_v28, %v2406_v58 }
0x1148   : > { %v1684_v14 = vpop.f32.mrb[8].mxu1 }
0x1149   : > { %v2405_v48 = vmul.f32 -1.442695, %v1684_v14  ;;  %v2933_v54 = vpop.f32.mrb[9].mxu1 }
0x114b   : > { %3399 = vpow2.f32 %v2405_v48 }
0x1155   : > { %v3400_v30 = vpop.eup %3399 }
0x1156   : > { %v1691_v44 = vadd.f32 1.0, %v3400_v30  ;;  %v1475_v30 = vsel %vm1377_vm13, %v4169_v1, 0.0 }
0x1158   : > { %3401 = vrcp.f32 %v1691_v44 }
0x1162   : > { %v3402_v42 = vpop.eup %3401 }
0x1163   : > { %v1694_v32 = vadd.f32 %v3402_v42, %v1366_v0 }
0x1165   : > { %v1695_v60 = vsel %vm738_vm12, %v1694_v32, -inf }
0x1166   : > { %1696 = vmax.xlane.f32.xlu0 %v1695_v60 }
0x117c   : > { %1714 = vrot.lane.b32.xlu0 %v1712_v8, %s3435_s7 }
0x1180   : > { %1722 = vrot.lane.b32.xlu0 %v2406_v58, %s3436_s8 }
0x11f3   : > { %v1697_v7 = vpop.xlane.xlu0 %1696 }
0x11f4   : > { %v1698_v13 = vsub.f32 %v1694_v32, %v1697_v7 }
0x11f6   : > { %v1699_v29 = vmul.f32 1.442695, %v1698_v13 }
0x11f7   : > { %v1715_v53 = vpop.permute.xlu0 %1714 }
0x11f8   : > { %3403 = vpow2.f32 %v1699_v29  ;;  %v1725_v46 = vsel %vm769_vm15, %v2406_v58, %v1715_v53 }
0x11fb   : > { %v1723_v16 = vpop.permute.xlu0 %1722 }
0x1202   : > { %v3404_v61 = vpop.eup %3403 }
0x1203   : > { %v1701_v21 = vsel %vm738_vm12, %v3404_v61, 0.0 }
0x1204   : > { %1702 = vadd.xlane.f32.xlu1 %v1701_v21 }
0x1215   : > { %1718 = vrot.lane.b32.xlu1 %v2407_v28, %s3437_s12 }
0x1291   : > { %v1703_v26 = vpop.xlane.xlu1 %1702 }
0x1292   : > { %3405 = vrcp.f32 %v1703_v26 }
0x1295   : > { %v1719_v17 = vpop.permute.xlu1 %1718 }
0x1296   : > { %v1726_v52 = vsel %vm771_vm0, %v1725_v46, %v1719_v17 }
0x1297   : > { %v1727_v31 = vsel %vm773_vm3, %v1726_v52, %v1723_v16 }
0x129c   : > { %v3406_v51 = vpop.eup %3405 }
0x129d   : > { %v1705_v47 = vmul.f32 %v3406_v51, %v3404_v61 }
0x129f   : > { %v1728_v40 = vmul.f32 %v1727_v31, %v1705_v47 }
0x12a1   : > { %v1729_v36 = vmul.f32 %v1728_v40, %v1728_v40 }
0x12a3   : > { %v1730_v10 = vsel %vm738_vm12, %v1729_v36, 0.0 }
0x12a4   : > { %1731 = vadd.xlane.f32.xlu1 %v1730_v10 }
0x1331   : > { %v1732_v49 = vpop.xlane.xlu1 %1731 }
0x1332   : > { %v1733_v38 = vmax.f32 %v1732_v49, 1e-24 }
0x1334   : > { %3407 = vrsqrt.f32 %v1733_v38 }
0x133e   : > { %v3408_v24 = vpop.eup %3407 }
0x133f   : > { %v4467_v41 = vmul.f32 %v3408_v24, %v1728_v40 }
0x1341   : > { %1746 = vperm.xlu0 %3370, %v4467_v41  }
0x1345   : > { %3371 = vset.pattern.permute.xlu0 %v3440_v15 }
0x1346   : > { %1750 = vperm.xlu0 %3371, %v4467_v41  }
0x134a   : > { %3372 = vset.pattern.permute.xlu0 %v3428_v4 }
0x134b   : > { %1738 = vperm.xlu0 %3372, %v4467_v41  }
0x134f   : > { %3373 = vset.pattern.permute.xlu0 %v3438_v35 }
0x1350   : > { %1742 = vperm.xlu0 %3373, %v4467_v41  }
0x1354   : > { %3374 = vset.pattern.permute.xlu0 %v3439_v12 }
0x13c0   : > { %v1747_v19 = vpop.permute.xlu0 %1746 }
0x13c1   : > { %v1767_v20 = vmul.f32 %v1747_v19, %v4430_v3  ;;  %v1756_v23 = vmul.f32 %v1747_v19, %v4319_v56  ;;  %v1587_v3 = vsel %vm1377_vm13, %v4167_v63, 0.0  ;;  %v1575_v56 = vsel %vm1374_vm4, %v4425_v57, %v4241_v27 }
0x13c3   : > { %1769 = vrot.lane.b32.xlu0 %v1767_v20, %s3434_s10 }
0x13c5   : > { %v1751_v14 = vpop.permute.xlu0 %1750 }
0x13c6   : > { %v1773_v48 = vmul.f32 %v1751_v14, %v4350_v34  ;;  %v1762_v7 = vmul.f32 %v1751_v14, %v4359_v37  ;;  %v1779_v37 = vfloor.f32 %v4467_v41 }
0x13c7   : > { %1758 = vrot.lane.b32.xlu0 %v1756_v23, %s3434_s10 }
0x13c8   : > { %1775 = vrot.lane.b32.xlu1 %v1773_v48, %s3433_s11 }
0x13ca   : > { %v1739_v54 = vpop.permute.xlu0 %1738 }
0x13cb   : > { %v1764_v0 = vmul.f32 %v1739_v54, %v1575_v56  ;;  %v1753_v32 = vmul.f32 %v1739_v54, %v4224_v55  ;;  %v1792_v55 = vadd.f32 1.0, %v4190_v25 }
0x13cc   : > { %1803 = vrot.lane.b32.xlu1 %v4190_v25, %s3436_s8 }
0x13cf   : > { %v1743_v12 = vpop.permute.xlu0 %1742 }
0x13d0   : > { %v1765_v44 = vmul.f32 %v1743_v12, %v1587_v3  ;;  %v1754_v34 = vmul.f32 %v1743_v12, %v1475_v30  ;;  %v1839_v12 = vld [vmem:[#allocation2 + $0x38] sm:$0xff] }
0x13d2   : > { %v1766_v60 = vadd.f32 %v1765_v44, %v1764_v0  ;;  %v1755_v58 = vadd.f32 %v1754_v34, %v1753_v32 }
0x1435   : > { %v1770_v42 = vpop.permute.xlu0 %1769 }
0x1436   : > { %v1772_v28 = vadd.f32 %v1770_v42, %v1766_v60 }
0x1439   : > { %v1759_v8 = vpop.permute.xlu0 %1758 }
0x143a   : > { %v1761_v63 = vadd.f32 %v1759_v8, %v1755_v58  ;;  %v1776_v13 = vpop.permute.xlu1 %1775 }
0x143b   : > { %v4494_v29 = vadd.f32 %v1776_v13, %v1772_v28  ;;  %v1840_v13 = vld [vmem:[%s3495_s30 + $0x18] sm:$0xff] }
0x143c   : > { %v4496_v61 = vadd.f32 %v1762_v7, %v1761_v63 }
0x143d   : > { %1827 = vrot.lane.b32.xlu0 %v4494_v29, %s3432_s18 }
0x143e   : > { %1836 = vst.msk [vmem:[#allocation3] sm:$0xff] %vm296_vm2, %v4496_v61  ;;  %v1804_v26 = vpop.permute.xlu1 %1803  ;;  %1825 = vst.msk [vmem:[%s3500_s9 + $0x10] sm:$0xff] %vm296_vm2, %v4496_v61 }
0x143f   : > { %v1806_v46 = vmul.f32 %v1804_v26, %v1779_v37 }
0x1441   : > { %1783 = vrot.lane.b32.xlu0 %v2408_v33, %s3435_s7 }
0x1445   : > { %1794 = vrot.lane.b32.xlu0 %v1792_v55, %s3437_s12 }
0x14af   : > { %v4506_v27 = vpop.permute.xlu0 %1827 }
0x14b0   : > { %1837 = vst.msk [vmem:[#allocation3] sm:$0xff] %vm880_vm5, %v4506_v27  ;;  %1830 = vst.msk [vmem:[%s3500_s9 + $0x10] sm:$0xff] %vm880_vm5, %v4506_v27 }
0x14b3   : > { %v1784_v57 = vpop.permute.xlu0 %1783 }
0x14b4   : > { %v1786_v21 = vmul.f32 %v1784_v57, %v1779_v37 }
0x14b6   : > { %1788 = vrot.lane.b32.xlu0 %v1786_v21, %s3441_s13 }
0x14b7   : > { %v1795_v53 = vpop.permute.xlu0 %1794  ;;  %v1852_v17 = vld [vmem:[#allocation3] sm:$0xff] }
0x14b8   : > { %v1797_v52 = vmul.f32 %v1795_v53, %v1779_v37  ;;  %2967 = vmatmul.mubr.f32.vlgmr.msra.gmra.mrb[16].mxu0 %v1852_v17 }
0x14b9   : > { %3313 = vmatpush3.bf16.msra.mxu0 %v4307_v22  ;;  %3036 = vmatprep.mubr.msk.f32.mxu0 %vm3431_vm1, %v3430_v9 }
0x14ba   : > { %1808 = vrot.lane.b32.xlu0 %v1806_v46, %s3442_s27  ;;  %1799 = vrot.lane.b32.xlu1 %v1797_v52, %s3443_s14 }
0x14bb   : > { %3314 = vmatprep.subr.bf16.mxu0 %v3429_v5 }
0x14bd   : > { %3316 = vmatpush3.bf16.msra.mxu0 %v4314_v45  ;;  %v1780_v45 = vmul.f32 %v1779_v37, %v4190_v25 }
0x14be   : > { %3317 = vmatprep.subr.bf16.mxu0 %v3429_v5 }
0x14c1   : > { %3319 = vmatpush3.bf16.msra.mxu0 %v4334_v59 }
0x14c2   : > { %3320 = vmatprep.subr.bf16.mxu0 %v3429_v5 }
0x14c5   : > { %3322 = vmatpush3.bf16.msra.mxu0 %v4356_v6 }
0x14c6   : > { %3323 = vmatprep.subr.bf16.mxu0 %v3429_v5 }
0x14c9   : > { %3325 = vmatpush3.bf16.msra.mxu0 %v4371_v50 }
0x14ca   : > { %3326 = vmatprep.subr.bf16.mxu0 %v3429_v5 }
0x14cd   : > { %3328 = vmatpush3.bf16.msra.mxu0 %v4381_v39 }
0x14ce   : > { %3329 = vmatprep.subr.bf16.mxu0 %v3429_v5 }
0x14d1   : > { %3331 = vmatpush3.bf16.msra.mxu0 %v4411_v62  ;;  %v1838_v62 = vld [vmem:[#allocation2 + $0x30] sm:$0xff] }
0x14d2   : > { %3332 = vmatprep.subr.bf16.mxu0 %v3429_v5 }
0x14d5   : > { %3334 = vmatpush3.bf16.msra.mxu0 %v4421_v43 }
0x1528   : > { %v1789_v22 = vpop.permute.xlu0 %1788 }
0x1529   : > { %v1791_v59 = vadd.f32 %v1789_v22, %v1780_v45 }
0x152c   : > { %v1800_v6 = vpop.permute.xlu1 %1799  ;;  %v1809_v16 = vpop.permute.xlu0 %1808 }
0x152d   : > { %v1802_v51 = vadd.f32 %v1800_v6, %v1791_v59 }
0x152f   : > { %v4532_v50 = vadd.f32 %v1809_v16, %v1802_v51 }
0x1531   : > { %1843 = vperm.xlu1 %3365, %v4532_v50  }
0x1535   : > { %3377 = vset.pattern.permute.xlu1 %v3438_v35 }
0x158b   : > { %v1935_v39 = vpop.f32.mrb[16].mxu0 }
0x158c   : > { %v2968_v47 = vpop.f32.mrb[17].mxu0  ;;  %v1939_v5 = vadd.f32 %v1935_v39, %v1838_v62 }
0x15b0   : > { %v4536_v31 = vpop.permute.xlu1 %1843 }
0x15b1   : > { %vm1847_vm1 = vcmp.gt.f32.partialorder %v4536_v31, 0.0  ;;  %vm1848_vm4 = vcmp.eq.f32.partialorder %v4536_v31, 1.0  ;;  %vm1849_vm14 = vcmp.gt.f32.partialorder %v4536_v31, 1.0  ;;  %vm1846_vm8 = vcmp.eq.f32.partialorder %v4536_v31, 0.0 }
0x15b2   : > { %v1942_v25 = vsel %vm1847_vm1, %v4496_v61, 0.0  ;;  %v1940_v43 = vsel %vm1849_vm14, %v4496_v61, 0.0  ;;  %v4553_v40 = vsel %vm1849_vm14, %v4494_v29, 0.0  ;;  %v2055_v24 = vsel %vm1847_vm1, %v4494_v29, 0.0 }
0x15b3   : > { %1944 = vrot.lane.b32.xlu0 %v1942_v25, %s3432_s18  ;;  %v4548_v35 = vsel %vm1848_vm4, %v1939_v5, %v1940_v43  ;;  %vm1850_vm7 = vcmp.ge.f32.partialorder %v4536_v31, 1.0 }
0x15b4   : > { %1951 = vrot.lane.b32.xlu1 %v4548_v35, %s3433_s11  ;;  %v4579_v20 = vsel %vm1850_vm7, %v4496_v61, 0.0 }
0x15b8   : > { %2051 = vrot.lane.b32.xlu1 %v4553_v40, %s3433_s11 }
0x1625   : > { %v1945_v36 = vpop.permute.xlu0 %1944 }
0x1626   : > { %v4560_v10 = vsel %vm1846_vm8, %v1939_v5, %v1945_v36  ;;  %v1952_v49 = vpop.permute.xlu1 %1951 }
0x1627   : > { %1954 = vst.msk [vmem:[#allocation3] sm:$0xff] %vm524_vm9, %v1952_v49  ;;  %1956 = vrot.lane.b32.xlu0 %v4560_v10, %s3433_s11  ;;  %2062 = vrot.lane.b32.xlu1 %v4560_v10, %s3434_s10  ;;  %vm2180_vm9 = vcmp.ne.f32.partialorder %v4532_v50, 0.0 }
0x1628   : > { %v2410_v57 = vsel %vm2180_vm9, 1.0, %v3430_v9 }
0x162a   : > { %v2052_v38 = vpop.permute.xlu1 %2051 }
0x162b   : > { %2057 = vrot.lane.b32.xlu0 %v2055_v24, %s3432_s18  ;;  %v4573_v19 = vsel %vm1848_vm4, %v1939_v5, %v2052_v38 }
0x162c   : > { %2070 = vrot.lane.b32.xlu1 %v4573_v19, %s3432_s18 }
0x162f   : > { %2066 = vrot.lane.b32.xlu0 %v4579_v20, %s3433_s11 }
0x1699   : > { %v1957_v23 = vpop.permute.xlu0 %1956  ;;  %v2063_v54 = vpop.permute.xlu1 %2062 }
0x169a   : > { %1959 = vst.msk [vmem:[#allocation3] sm:$0xff] %vm530_vm10, %v1957_v23  ;;  %vm1851_vm10 = vcmp.gt.f32.partialorder %v4536_v31, 2.0 }
0x169d   : > { %v2058_v48 = vpop.permute.xlu0 %2057 }
0x169e   : > { %v2071_v42 = vpop.permute.xlu1 %2070 }
0x16a1   : > { %v1960_v14 = vld [vmem:[#allocation3] sm:$0xff]  ;;  %v2067_v34 = vpop.permute.xlu0 %2066 }
0x16a2   : > { %3002 = vmatmul.mubr.f32.vlgmr.msra.gmra.mrb[10].mxu1 %v1960_v14 }
0x1775   : > { %v2043_v3 = vpop.f32.mrb[10].mxu1 }
0x1776   : > { %v4584_v30 = vadd.f32 %v2043_v3, %v1839_v12  ;;  %v3003_v44 = vpop.f32.mrb[11].mxu1  ;;  %v2412_v3 = vadd.f32 -1.0, %v4532_v50 }
0x1778   : > { %v4589_v56 = vsel %vm1846_vm8, %v4584_v30, %v2058_v48 }
0x1779   : > { %v2073_v0 = vsel %vm296_vm2, %v2063_v54, %v4589_v56  ;;  %v2266_v54 = vadd.f32 1.0, %v4532_v50 }
0x177a   : > { %v2074_v32 = vsel %vm399_vm6, %v2073_v0, %v2067_v34  ;;  %vm2183_vm6 = vcmp.ne.f32.partialorder %v4532_v50, 1.0 }
0x177b   : > { %v2075_v60 = vsel %vm643_vm11, %v2074_v32, %v2071_v42  ;;  %v2411_v21 = vsel %vm2183_vm6, 1.0, %v3430_v9  ;;  %vm886_vm11 = vcmask 540160  }
0x177c   : > { %3037 = vmatmul.mubr.f32.vlgmr.msra.gmra.mrb[18].mxu0 %v2075_v60  ;;  %v2186_v26 = vmul.f32 %v2411_v21, %v2410_v57 }
0x184f   : > { %v2158_v58 = vpop.f32.mrb[18].mxu0 }
0x1850   : > { %v2409_v28 = vmul.f32 -1.442695, %v2158_v58  ;;  %v3038_v8 = vpop.f32.mrb[19].mxu0 }
0x1852   : > { %3409 = vpow2.f32 %v2409_v28 }
0x185c   : > { %v3410_v7 = vpop.eup %3409 }
0x185d   : > { %v2165_v63 = vadd.f32 1.0, %v3410_v7 }
0x185f   : > { %3411 = vrcp.f32 %v2165_v63 }
0x1869   : > { %v3412_v33 = vpop.eup %3411 }
0x186a   : > { %v2168_v55 = vadd.f32 %v3412_v33, %v1840_v13 }
0x186c   : > { %v2169_v37 = vsel %vm738_vm12, %v2168_v55, -inf }
0x186d   : > { %2170 = vmax.xlane.f32.xlu0 %v2169_v37 }
0x1883   : > { %2188 = vrot.lane.b32.xlu0 %v2186_v26, %s3435_s7 }
0x1887   : > { %2196 = vrot.lane.b32.xlu0 %v2410_v57, %s3436_s8 }
0x188b   : > { %862 = vrot.lane.b32.xlu0 %v3910_v11, %s3441_s13 }
0x188f   : > { %1338 = vrot.lane.b32.xlu0 %v4060_v2, %s3441_s13 }
0x18fa   : > { %v2171_v53 = vpop.xlane.xlu0 %2170 }
0x18fb   : > { %v2172_v17 = vsub.f32 %v2168_v55, %v2171_v53 }
0x18fd   : > { %v2173_v46 = vmul.f32 1.442695, %v2172_v17  ;;  %v1949_v17 = vsel %vm1851_vm10, %v4496_v61, 0.0 }
0x18fe   : > { %v2189_v45 = vpop.permute.xlu0 %2188 }
0x18ff   : > { %3413 = vpow2.f32 %v2173_v46  ;;  %v2199_v6 = vsel %vm769_vm15, %v2410_v57, %v2189_v45 }
0x1902   : > { %v2197_v39 = vpop.permute.xlu0 %2196 }
0x1906   : > { %v863_v36 = vpop.permute.xlu0 %862 }
0x1907   : > { %v865_v12 = vadd.f32 %v863_v36, %v3910_v11 }
0x1909   : > { %v3414_v52 = vpop.eup %3413 }
0x190a   : > { %v2175_v22 = vsel %vm738_vm12, %v3414_v52, 0.0  ;;  %v1339_v49 = vpop.permute.xlu0 %1338 }
0x190b   : > { %2176 = vadd.xlane.f32.xlu1 %v2175_v22  ;;  %v1341_v38 = vadd.f32 %v1339_v49, %v4060_v2 }
0x191c   : > { %2192 = vrot.lane.b32.xlu1 %v2411_v21, %s3437_s12 }
0x1998   : > { %v2177_v9 = vpop.xlane.xlu1 %2176 }
0x1999   : > { %3415 = vrcp.f32 %v2177_v9 }
0x199c   : > { %v2193_v59 = vpop.permute.xlu1 %2192 }
0x199d   : > { %v2200_v51 = vsel %vm771_vm0, %v2199_v6, %v2193_v59 }
0x199e   : > { %v2201_v62 = vsel %vm773_vm3, %v2200_v51, %v2197_v39 }
0x19a3   : > { %v3416_v16 = vpop.eup %3415 }
0x19a4   : > { %v2179_v47 = vmul.f32 %v3416_v16, %v3414_v52 }
0x19a6   : > { %v2202_v5 = vmul.f32 %v2201_v62, %v2179_v47 }
0x19a8   : > { %v2203_v25 = vmul.f32 %v2202_v5, %v2202_v5 }
0x19aa   : > { %v2204_v43 = vsel %vm738_vm12, %v2203_v25, 0.0 }
0x19ab   : > { %2205 = vadd.xlane.f32.xlu1 %v2204_v43 }
0x19bc   : > { %1347 = vrot.lane.b32.xlu1 %v1341_v38, %s3443_s14 }
0x1a38   : > { %v2206_v24 = vpop.xlane.xlu1 %2205 }
0x1a39   : > { %v2207_v23 = vmax.f32 %v2206_v24, 1e-24 }
0x1a3b   : > { %3417 = vrsqrt.f32 %v2207_v23 }
0x1a3c   : > { %v1348_v32 = vpop.permute.xlu1 %1347 }
0x1a45   : > { %v3418_v14 = vpop.eup %3417 }
0x1a46   : > { %v4615_v48 = vmul.f32 %v3418_v14, %v2202_v5 }
0x1a48   : > { %2220 = vperm.xlu0 %3374, %v4615_v48   ;;  %2216 = vperm.xlu1 %3377, %v4615_v48   ;;  %v2253_v33 = vfloor.f32 %v4615_v48 }
0x1a4a   : > { %v2254_v14 = vmul.f32 %v2253_v33, %v4532_v50 }
0x1a4c   : > { %3375 = vset.pattern.permute.xlu0 %v3440_v15  ;;  %2268 = vrot.lane.b32.xlu1 %v2266_v54, %s3437_s12 }
0x1a4d   : > { %2224 = vperm.xlu0 %3375, %v4615_v48  }
0x1a51   : > { %1812 = vrot.lane.b32.xlu0 %v4467_v41, %s3441_s13 }
0x1a52   : > { %3376 = vset.pattern.permute.xlu0 %v3428_v4 }
0x1a55   : > { %2286 = vrot.lane.b32.xlu0 %v4615_v48, %s3441_s13 }
0x1a59   : > { %866 = vrot.lane.b32.xlu0 %v3910_v11, %s3443_s14 }
0x1a5d   : > { %871 = vrot.lane.b32.xlu0 %v865_v12, %s3443_s14 }
0x1a61   : > { %1342 = vrot.lane.b32.xlu0 %v4060_v2, %s3443_s14 }
0x1a65   : > { %2257 = vrot.lane.b32.xlu0 %v2412_v3, %s3435_s7 }
0x1a69   : > { %1816 = vrot.lane.b32.xlu0 %v4467_v41, %s3443_s14 }
0x1a6d   : > { %2212 = vperm.xlu0 %3376, %v4615_v48  }
0x1a71   : > { %2277 = vrot.lane.b32.xlu0 %v4532_v50, %s3436_s8 }
0x1a72   : > { %3378 = vset.pattern.permute.xlu0 %v3440_v15 }
0x1ac7   : > { %v2221_v4 = vpop.permute.xlu0 %2220  ;;  %v2217_v58 = vpop.permute.xlu1 %2216 }
0x1ac8   : > { %v2241_v44 = vmul.f32 %v2221_v4, %v4589_v56  ;;  %v2228_v52 = vmul.f32 %v2217_v58, %v1949_v17 }
0x1aca   : > { %2243 = vrot.lane.b32.xlu0 %v2241_v44, %s3434_s10 }
0x1acb   : > { %v2269_v63 = vpop.permute.xlu1 %2268 }
0x1acc   : > { %v4644_v34 = vpop.permute.xlu0 %2224  ;;  %v2271_v55 = vmul.f32 %v2269_v63, %v2253_v33 }
0x1acd   : > { %v2247_v15 = vmul.f32 %v4644_v34, %v4573_v19  ;;  %v2236_v24 = vmul.f32 %v4644_v34, %v4579_v20 }
0x1ace   : > { %2290 = vrot.lane.b32.xlu0 %v4615_v48, %s3443_s14 }
0x1ad0   : > { %v1813_v0 = vpop.permute.xlu0 %1812 }
0x1ad1   : > { %v1815_v42 = vadd.f32 %v1813_v0, %v4467_v41 }
0x1ad3   : > { %1821 = vrot.lane.b32.xlu1 %v1815_v42, %s3443_s14 }
0x1ad4   : > { %v2287_v60 = vpop.permute.xlu0 %2286 }
0x1ad5   : > { %v2289_v28 = vadd.f32 %v2287_v60, %v4615_v48 }
0x1ad7   : > { %2249 = vrot.lane.b32.xlu1 %v2247_v15, %s3433_s11 }
0x1ad8   : > { %v867_v56 = vpop.permute.xlu0 %866 }
0x1ad9   : > { %v869_v8 = vadd.f32 %v867_v56, %v3910_v11  ;;  %v2230_v11 = vmul.f32 %v2221_v4, %v4560_v10  ;;  %v2049_v10 = vsel %vm1848_vm4, %v4584_v30, %v4553_v40 }
0x1adb   : > { %2295 = vrot.lane.b32.xlu1 %v2289_v28, %s3443_s14 }
0x1adc   : > { %v872_v7 = vpop.permute.xlu0 %871 }
0x1add   : > { %v874_v13 = vsel %vm769_vm15, %v872_v7, %v869_v8 }
0x1ade   : > { %883 = vrot.lane.b32.xlu0 %v874_v13, %s3433_s11 }
0x1ae0   : > { %v1343_v19 = vpop.permute.xlu0 %1342 }
0x1ae1   : > { %v1345_v37 = vadd.f32 %v1343_v19, %v4060_v2  ;;  %v2061_v2 = vsel %vm1851_vm10, %v4494_v29, 0.0 }
0x1ae2   : > { %2273 = vrot.lane.b32.xlu0 %v2271_v55, %s3443_s14  ;;  %v2239_v22 = vmul.f32 %v2217_v58, %v2061_v2 }
0x1ae3   : > { %v1350_v57 = vsel %vm769_vm15, %v1348_v32, %v1345_v37 }
0x1ae4   : > { %1358 = vrot.lane.b32.xlu1 %v1350_v57, %s3433_s11  ;;  %v2258_v21 = vpop.permute.xlu0 %2257 }
0x1ae5   : > { %v2260_v26 = vmul.f32 %v2258_v21, %v2253_v33 }
0x1ae6   : > { %2232 = vrot.lane.b32.xlu0 %v2230_v11, %s3434_s10 }
0x1ae8   : > { %2262 = vrot.lane.b32.xlu1 %v2260_v26, %s3441_s13  ;;  %v1817_v53 = vpop.permute.xlu0 %1816 }
0x1ae9   : > { %v1819_v29 = vadd.f32 %v1817_v53, %v4467_v41 }
0x1aec   : > { %v2213_v46 = vpop.permute.xlu0 %2212 }
0x1aed   : > { %v2227_v9 = vmul.f32 %v2213_v46, %v4548_v35  ;;  %v2238_v45 = vmul.f32 %v2213_v46, %v2049_v10 }
0x1aef   : > { %v2240_v59 = vadd.f32 %v2239_v22, %v2238_v45  ;;  %v2229_v6 = vadd.f32 %v2228_v52, %v2227_v9 }
0x1af0   : > { %v2278_v51 = vpop.permute.xlu0 %2277 }
0x1af1   : > { %v2280_v16 = vmul.f32 %v2278_v51, %v2253_v33 }
0x1af3   : > { %2282 = vrot.lane.b32.xlu0 %v2280_v16, %s3442_s27 }
0x1b3c   : > { %v2244_v39 = vpop.permute.xlu0 %2243 }
0x1b3d   : > { %v2246_v40 = vadd.f32 %v2244_v39, %v2240_v59 }
0x1b40   : > { %v2291_v35 = vpop.permute.xlu0 %2290 }
0x1b41   : > { %v2293_v5 = vadd.f32 %v2291_v35, %v4615_v48 }
0x1b45   : > { %v1822_v47 = vpop.permute.xlu1 %1821 }
0x1b46   : > { %v1824_v31 = vsel %vm769_vm15, %v1822_v47, %v1819_v29 }
0x1b47   : > { %1832 = vrot.lane.b32.xlu1 %v1824_v31, %s3433_s11 }
0x1b49   : > { %v2250_v30 = vpop.permute.xlu1 %2249 }
0x1b4a   : > { %v2252_v62 = vadd.f32 %v2250_v30, %v2246_v40 }
0x1b4c   : > { %2301 = vrot.lane.b32.xlu1 %v2252_v62, %s3432_s18 }
0x1b4d   : > { %v2296_v25 = vpop.permute.xlu1 %2295 }
0x1b4e   : > { %v2298_v41 = vsel %vm769_vm15, %v2296_v25, %v2293_v5 }
0x1b4f   : > { %2306 = vrot.lane.b32.xlu0 %v2298_v41, %s3433_s11 }
0x1b50   : > { %v884_v43 = vpop.permute.xlu0 %883 }
0x1b51   : > { %887 = vst.msk [vmem:[%s3500_s9] sm:$0xff] %vm886_vm11, %v884_v43 }
0x1b54   : > { %v2274_v36 = vpop.permute.xlu0 %2273 }
0x1b56   : > { %v1359_v49 = vpop.permute.xlu1 %1358 }
0x1b57   : > { %1361 = vst.msk [vmem:[%s3500_s9 + $0x8] sm:$0xff] %vm886_vm11, %v1359_v49 }
0x1b58   : > { %v2233_v38 = vpop.permute.xlu0 %2232 }
0x1b59   : > { %v2235_v1 = vadd.f32 %v2233_v38, %v2229_v6 }
0x1b5a   : > { %v2263_v18 = vpop.permute.xlu1 %2262 }
0x1b5b   : > { %v2237_v23 = vadd.f32 %v2236_v24, %v2235_v1  ;;  %v2265_v48 = vadd.f32 %v2263_v18, %v2254_v14 }
0x1b5d   : > { %2310 = vst.msk [vmem:[#allocation3] sm:$0xff] %vm296_vm2, %v2237_v23  ;;  %v2276_v54 = vadd.f32 %v2274_v36, %v2265_v48  ;;  %2299 = vst.msk [vmem:[%s3500_s9 + $0x18] sm:$0xff] %vm296_vm2, %v2237_v23 }
0x1b65   : > { %v2283_v61 = vpop.permute.xlu0 %2282 }
0x1b66   : > { %v2285_v12 = vadd.f32 %v2283_v61, %v2276_v54 }
0x1b68   : > { %2312 = vst.msk [vmem:[#allocation4] sm:$0xff] %vm769_vm15, %v2285_v12 }
0x1bb9   : > { %v1833_v3 = vpop.permute.xlu1 %1832 }
0x1bba   : > { %1835 = vst.msk [vmem:[%s3500_s9 + $0x10] sm:$0xff] %vm886_vm11, %v1833_v3 }
0x1bbe   : > { %v2302_v27 = vpop.permute.xlu1 %2301 }
0x1bbf   : > { %2304 = vst.msk [vmem:[%s3500_s9 + $0x18] sm:$0xff] %vm880_vm5, %v2302_v27  ;;  %2311 = vst.msk [vmem:[#allocation3] sm:$0xff] %vm880_vm5, %v2302_v27 }
0x1bc1   : > { %v2307_v20 = vpop.permute.xlu0 %2306 }
0x1bc2   : > { %2309 = vst.msk [vmem:[%s3500_s9 + $0x18] sm:$0xff] %vm886_vm11, %v2307_v20 }
0x1bc3 PF: > { %s16_s21 = sadd.s32 1, %s3425_s21  }
0x1bc4   : > { %p13_p5 = scmp.ge.s32.totalorder %s16_s21, 4  }
0x1bc6   :  { %15 = sbr.rel (!%p13_p5) target bundleno = 1 (0x1), region = 81 }

</bundles_post_ra>
